<compile_context>
chip_gen: v7x
topology: tpu7x:2x2x1
jax: 0.10.0
libtpu: 0.0.40
codegen_flags: <defaults>
</compile_context>

<pallas_src>
import functools
import math

import numpy as np
import jax
import jax.numpy as jnp
from jax import lax
from jax.experimental import pallas as pl
from jax.experimental.pallas import tpu as pltpu

MATMUL_DTYPE = jnp.bfloat16   # MXU operand dtype; accumulation is always f32.


# ----------------------------------------------------------------------------- in-kernel helpers

def _mm(x, w, b):
    """bf16 MXU operands, f32 accumulation, f32 bias add (w may already be bf16)."""
    return jnp.dot(x.astype(MATMUL_DTYPE), w.astype(MATMUL_DTYPE),
                   preferred_element_type=jnp.float32) + b


def _layer_norm(x, g, b, eps=1e-5):
    mu = jnp.mean(x, axis=-1, keepdims=True)
    var = jnp.mean(jnp.square(x - mu), axis=-1, keepdims=True)
    return (x - mu) * lax.rsqrt(var + eps) * g + b


def _softmax_exact(x):
    m = jnp.max(x, axis=-1, keepdims=True)
    e = jnp.exp(x - m)
    return e / jnp.sum(e, axis=-1, keepdims=True)


def _softmax_approx(x):
    m = jnp.max(x, axis=-1, keepdims=True)
    e = jnp.exp(x - m)
    return e * pl.reciprocal(jnp.sum(e, axis=-1, keepdims=True), approx=True)


# ----------------------------------------------------------------------------- fused decoder kernel

def _decoder_kernel(
        # per-batch data (constant block index along the layer axis)
        tgt_ref, qpos_ref, ref_ref, src_ref, keep_ref, sel_ref,
        # per-layer weights (block index follows the layer axis)
        sa_qk_w, sa_v_w, sa_o_w, val_w, offaw_w, out_w, ffn1_w, ffn2_w,
        vecs_ref, miscb_ref,
        # output
        o_ref,
        # scratch
        cur, val_sc,
        *, n_heads, n_levels, n_points, temporal_shapes, level_start,
        ref_dim, collect_intermediate):
    H, L, P = n_heads, n_levels, n_points
    Lq, D = cur.shape
    hd = D // H
    HLP = H * L * P

    layer = pl.program_id(1)

    # Layer 0: load this batch's queries into the VMEM-resident activation carry.
    @pl.when(layer == 0)
    def _():
        cur[...] = tgt_ref[0]

    tgt = cur[...]                 # (Lq, D) running activation
    qpos = qpos_ref[0]             # (Lq, D)
    vec = vecs_ref[0]              # (11, D) packed D-wide biases / LN params
    misc = miscb_ref[0]            # (1, 2D + 2HLP + d_ffn) packed wide biases

    # ---------------------------------------------------------- self attention (MHA, eval)
    q_in = tgt + qpos
    qk = _mm(q_in, sa_qk_w[0], misc[:, :2 * D])      # (Lq, 2D); q half pre-scaled by 1/sqrt(hd)
    vp = _mm(tgt, sa_v_w[0], vec[0:1])               # (Lq, D)   value uses tgt (no pos)
    heads = []
    for h in range(H):
        qh = qk[:, h * hd:(h + 1) * hd].astype(MATMUL_DTYPE)
        kh = qk[:, D + h * hd:D + (h + 1) * hd].astype(MATMUL_DTYPE)
        vh = vp[:, h * hd:(h + 1) * hd].astype(MATMUL_DTYPE)
        # contract on the feature dim of both operands: q @ k^T without a materialized transpose
        s = lax.dot_general(qh, kh, (((1,), (1,)), ((), ())),
                            preferred_element_type=jnp.float32)        # (Lq, Lq)
        p = _softmax_exact(s)
        heads.append(jnp.dot(p.astype(MATMUL_DTYPE), vh,
                             preferred_element_type=jnp.float32))      # (Lq, hd)
    attn = jnp.concatenate(heads, axis=-1)                             # one lane-dense (Lq, D)
    attn = _mm(attn, sa_o_w[0], vec[1:2])
    tgt1 = _layer_norm(tgt + attn, vec[2:3], vec[3:4])

    # ---------------------------------------------------------- deformable (1-D) cross attention
    q2 = tgt1 + qpos
    value = _mm(src_ref[0], val_w[0], vec[4:5]) * keep_ref[0]          # (Len_in, D), padded rows -> 0
    val_sc[...] = value.astype(MATMUL_DTYPE)                           # single full-width store

    offaw = _mm(q2, offaw_w[0], misc[:, 2 * D:2 * D + 2 * HLP])        # (Lq, 2*HLP): [offsets | attn_w]
    offs = offaw[:, :HLP]
    aw = jnp.concatenate(
        [_softmax_approx(offaw[:, HLP + h * L * P: HLP + (h + 1) * L * P]) for h in range(H)],
        axis=-1)                                                       # (Lq, HLP)

    # Sampling position for ALL taps at once (f32 elementwise; column order is (h, l, pt)).
    # sel[l, c] = T_l if level(c) == l else 0 -> base = ref_center * T_l broadcast per column.
    ref = ref_ref[0]                                                   # (Lq, L*ref_dim)
    sel = sel_ref[...]                                                 # (L, HLP)
    base = jnp.zeros((Lq, HLP), jnp.float32)
    for l in range(L):
        base = base + ref[:, l:l + 1] * sel[l:l + 1, :]
    if ref_dim == 2:
        wid = jnp.zeros((Lq, HLP), jnp.float32)
        for l in range(L):
            wid = wid + ref[:, L + l:L + l + 1] * sel[l:l + 1, :]
        px = base + offs * (wid * (0.5 / P)) - 0.5                     # loc*T_l - 0.5
    else:
        px = base + offs - 0.5
    i0f = jnp.floor(px)
    w1 = px - i0f
    w0 = 1.0 - w1
    i0 = i0f.astype(jnp.int32)                                         # level-local, UNCLIPPED
    i1 = i0 + 1
    c0 = aw * w0                                                       # (Lq, HLP) tap weights
    c1 = aw * w1

    # Per-level interpolation/attention matrices; OOB indices match no lane -> zero padding.
    # TODO(synk): the i1 one-hot could be derived from the i0 one-hot via pltpu.roll, but the
    # left-edge (i0 == -1) case needs a correction term, so two compares are kept.
    head_acc = [jnp.zeros((Lq, hd), jnp.float32) for _ in range(H)]
    for l in range(L):
        T_l = temporal_shapes[l]
        st = level_start[l]
        lane = lax.broadcasted_iota(jnp.int32, (Lq, T_l), 1)
        for h in range(H):
            bcol = (h * L + l) * P
            a = jnp.zeros((Lq, T_l), jnp.float32)
            for pt in range(P):
                c = bcol + pt
                a = (a
                     + (lane == i0[:, c:c + 1]).astype(jnp.float32) * c0[:, c:c + 1]
                     + (lane == i1[:, c:c + 1]).astype(jnp.float32) * c1[:, c:c + 1])
            vsl = val_sc[st:st + T_l, h * hd:(h + 1) * hd]             # bf16 value slice
            head_acc[h] = head_acc[h] + jnp.dot(a.astype(MATMUL_DTYPE), vsl,
                                                preferred_element_type=jnp.float32)
    ca = jnp.concatenate(head_acc, axis=-1)                            # one lane-dense (Lq, D)
    ca = _mm(ca, out_w[0], vec[5:6])
    tgt2 = _layer_norm(tgt1 + ca, vec[6:7], vec[7:8])

    # ---------------------------------------------------------- FFN
    h1 = jnp.maximum(_mm(tgt2, ffn1_w[0], misc[:, 2 * D + 2 * HLP:]), 0.0)
    h2 = _mm(h1, ffn2_w[0], vec[8:9])
    new = _layer_norm(tgt2 + h2, vec[9:10], vec[10:11])

    cur[...] = new
    if collect_intermediate:
        o_ref[0, 0] = new
    else:
        o_ref[0] = new   # constant block index along the layer axis -> last layer survives


# ----------------------------------------------------------------------------- parameter plumbing

def _build_level_selector(temporal_shapes, n_heads, n_points):
    L, H, P = len(temporal_shapes), n_heads, n_points
    sel = np.zeros((L, H * L * P), np.float32)
    for h in range(H):
        for l in range(L):
            for pt in range(P):
                sel[l, (h * L + l) * P + pt] = float(temporal_shapes[l])
    return jnp.asarray(sel)


def prepare_decoder_params(layer_params, n_heads):
    """Merge projections, fold the 1/sqrt(hd) scale, pre-cast matmul weights to bf16,
    pack small bias/LN vectors, and stack everything along a leading layer axis."""
    D = layer_params[0]["sa_q_w"].shape[0]
    scale = 1.0 / math.sqrt(D // n_heads)
    bf = lambda x: x.astype(MATMUL_DTYPE)

    def per_layer(p):
        c = p["cross"]
        sa_qk_w = jnp.concatenate([p["sa_q_w"] * scale, p["sa_k_w"]], axis=1)
        sa_qk_b = jnp.concatenate([p["sa_q_b"] * scale, p["sa_k_b"]], axis=0)
        offaw_w = jnp.concatenate([c["off_w"], c["aw_w"]], axis=1)
        offaw_b = jnp.concatenate([c["off_b"], c["aw_b"]], axis=0)
        vecs = jnp.stack([p["sa_v_b"], p["sa_o_b"], p["ln2_g"], p["ln2_b"],
                          c["value_b"], c["out_b"], p["ln1_g"], p["ln1_b"],
                          p["ffn2_b"], p["ln3_g"], p["ln3_b"]], axis=0)          # (11, D)
        miscb = jnp.concatenate([sa_qk_b, offaw_b, p["ffn1_b"]], axis=0)[None, :]
        return {
            "sa_qk_w": bf(sa_qk_w), "sa_v_w": bf(p["sa_v_w"]), "sa_o_w": bf(p["sa_o_w"]),
            "val_w": bf(c["value_w"]), "offaw_w": bf(offaw_w), "out_w": bf(c["out_w"]),
            "ffn1_w": bf(p["ffn1_w"]), "ffn2_w": bf(p["ffn2_w"]),
            "vecs": vecs.astype(jnp.float32), "miscb": miscb.astype(jnp.float32),
        }

    per = [per_layer(p) for p in layer_params]
    return jax.tree_util.tree_map(lambda *xs: jnp.stack(xs), *per)


# ----------------------------------------------------------------------------- pallas_call wrapper

def deformable_decoder_fused(stacked, lvl_sel, tgt, qpos, ref_in, src, keep, *,
                             n_heads, n_points, temporal_shapes, level_start, ref_dim,
                             return_intermediate):
    B, Lq, D = tgt.shape
    NL = stacked["sa_qk_w"].shape[0]
    Len_in = src.shape[1]
    L = len(temporal_shapes)
    HLP = n_heads * L * n_points

    data = [tgt, qpos, ref_in, src, keep, lvl_sel]
    data_specs = [
        pl.BlockSpec((1, Lq, D), lambda b, l: (b, 0, 0)),
        pl.BlockSpec((1, Lq, D), lambda b, l: (b, 0, 0)),
        pl.BlockSpec((1, Lq, L * ref_dim), lambda b, l: (b, 0, 0)),
        pl.BlockSpec((1, Len_in, D), lambda b, l: (b, 0, 0)),
        pl.BlockSpec((1, Len_in, 1), lambda b, l: (b, 0, 0)),
        pl.BlockSpec((L, HLP), lambda b, l: (0, 0)),
    ]
    wnames = ["sa_qk_w", "sa_v_w", "sa_o_w", "val_w", "offaw_w", "out_w",
              "ffn1_w", "ffn2_w", "vecs", "miscb"]
    weights = [stacked[n] for n in wnames]
    weight_specs = [pl.BlockSpec((1,) + w.shape[1:], lambda b, l: (l, 0, 0)) for w in weights]

    if return_intermediate:
        out_shape = jax.ShapeDtypeStruct((NL, B, Lq, D), jnp.float32)
        out_spec = pl.BlockSpec((1, 1, Lq, D), lambda b, l: (l, b, 0, 0))
    else:
        out_shape = jax.ShapeDtypeStruct((B, Lq, D), jnp.float32)
        out_spec = pl.BlockSpec((1, Lq, D), lambda b, l: (b, 0, 0))

    kernel = functools.partial(
        _decoder_kernel,
        n_heads=n_heads, n_levels=L, n_points=n_points,
        temporal_shapes=tuple(int(t) for t in temporal_shapes),
        level_start=tuple(int(s) for s in level_start),
        ref_dim=ref_dim, collect_intermediate=return_intermediate)

    return pl.pallas_call(
        kernel,
        grid=(B, NL),
        in_specs=data_specs + weight_specs,
        out_specs=out_spec,
        out_shape=out_shape,
        scratch_shapes=[pltpu.VMEM((Lq, D), jnp.float32),          # activation carry
                        pltpu.VMEM((Len_in, D), MATMUL_DTYPE)],    # projected value (bf16)
        compiler_params=pltpu.CompilerParams(
            dimension_semantics=("parallel", "arbitrary"),
            vmem_limit_bytes=48 * 1024 * 1024),
    )(*data, *weights)


# ----------------------------------------------------------------------------- decoder forward

def deformable_transformer_decoder_forward(layer_params, tgt, reference_points, src,
                                           src_temporal_shapes, src_level_start_index,
                                           src_valid_ratios, query_pos=None,
                                           src_padding_mask=None, query_padding_mask=None,
                                           disable_iterative_refine=False,
                                           return_intermediate=False,
                                           n_heads=4, n_points=2):
    # src_temporal_shapes is a *static* python tuple of per-level lengths; the level start
    # index is derived from it (kept in the signature for parity with the torch module).
    del src_level_start_index, disable_iterative_refine
    if query_padding_mask is not None:
        # TODO(synk): key_padding_mask for the self-attention branch not implemented (demo passes None).
        raise NotImplementedError("query_padding_mask is not supported")

    B, Lq, D = tgt.shape
    assert D % n_heads == 0
    temporal_shapes = tuple(int(t) for t in src_temporal_shapes)
    level_start = tuple(int(x) for x in np.concatenate([[0], np.cumsum(temporal_shapes)[:-1]]))
    Len_in = src.shape[1]
    assert sum(temporal_shapes) == Len_in

    ref_dim = int(reference_points.shape[-1])
    if ref_dim == 2:
        rpi = reference_points[:, :, None] * jnp.stack([src_valid_ratios, src_valid_ratios], -1)[:, None]
        ref_in = jnp.concatenate([rpi[..., 0], rpi[..., 1]], axis=-1)        # (B, Lq, 2L)
    else:
        assert ref_dim == 1
        rpi = reference_points[:, :, None] * src_valid_ratios[:, None, :, None]
        ref_in = rpi[..., 0]                                                 # (B, Lq, L)

    qpos = query_pos if query_pos is not None else jnp.zeros_like(tgt)
    if src_padding_mask is None:
        keep = jnp.ones((B, Len_in, 1), jnp.float32)
    else:
        keep = (1.0 - src_padding_mask.astype(jnp.float32))[..., None]

    stacked = prepare_decoder_params(layer_params, n_heads)
    lvl_sel = _build_level_selector(temporal_shapes, n_heads, n_points)
    src_bf16 = src.astype(MATMUL_DTYPE)   # src only feeds the bf16 value GEMM

    # TODO(synk): batch-folding (multiple batch elements per block) to fill the 256-row MXU
    # on v6e/v7x is not implemented; the demo M is tiny anyway.
    out = deformable_decoder_fused(
        stacked, lvl_sel, tgt, qpos, ref_in, src_bf16, keep,
        n_heads=n_heads, n_points=n_points, temporal_shapes=temporal_shapes,
        level_start=level_start, ref_dim=ref_dim, return_intermediate=return_intermediate)

    # bbox_head is None in the reference __init__ -> reference_points pass through unchanged.
    if return_intermediate:
        num_layers = len(layer_params)
        inter_refs = jnp.broadcast_to(reference_points[None],
                                      (num_layers,) + reference_points.shape)
        return out, inter_refs
    return out, reference_points


# ----------------------------------------------------------------------------- deterministic init

def init_layer_params(key, d_model, d_ffn, n_heads, n_levels, n_points):
    ks = jax.random.split(key, 12)

    def w(k, shp, scale=0.05):
        return jax.random.normal(k, shp, jnp.float32) * scale

    HLP = n_heads * n_levels * n_points
    return {
        "sa_q_w": w(ks[0], (d_model, d_model)), "sa_q_b": jnp.zeros((d_model,), jnp.float32),
        "sa_k_w": w(ks[1], (d_model, d_model)), "sa_k_b": jnp.zeros((d_model,), jnp.float32),
        "sa_v_w": w(ks[2], (d_model, d_model)), "sa_v_b": jnp.zeros((d_model,), jnp.float32),
        "sa_o_w": w(ks[3], (d_model, d_model)), "sa_o_b": jnp.zeros((d_model,), jnp.float32),
        "ln1_g": jnp.ones((d_model,), jnp.float32), "ln1_b": jnp.zeros((d_model,), jnp.float32),
        "ln2_g": jnp.ones((d_model,), jnp.float32), "ln2_b": jnp.zeros((d_model,), jnp.float32),
        "ln3_g": jnp.ones((d_model,), jnp.float32), "ln3_b": jnp.zeros((d_model,), jnp.float32),
        "ffn1_w": w(ks[4], (d_model, d_ffn)), "ffn1_b": jnp.zeros((d_ffn,), jnp.float32),
        "ffn2_w": w(ks[5], (d_ffn, d_model)), "ffn2_b": jnp.zeros((d_model,), jnp.float32),
        "cross": {
            "value_w": w(ks[6], (d_model, d_model)), "value_b": jnp.zeros((d_model,), jnp.float32),
            "off_w": w(ks[7], (d_model, HLP)), "off_b": w(ks[8], (HLP,), 0.5),
            "aw_w": w(ks[9], (d_model, HLP)), "aw_b": jnp.zeros((HLP,), jnp.float32),
            "out_w": w(ks[10], (d_model, d_model)), "out_b": jnp.zeros((d_model,), jnp.float32),
        },
    }


# ----------------------------------------------------------------------------- demo

if __name__ == "__main__":
    key = jax.random.PRNGKey(0)
    B, Lq, d_model, d_ffn = 2, 8, 32, 64
    n_heads, n_levels, n_points, num_layers = 4, 2, 2, 2
    temporal_shapes = (16, 8)                       # static per-level temporal lengths
    Len_in = sum(temporal_shapes)

    k1, k2, k3, k4, kp = jax.random.split(key, 5)
    tgt = jax.random.normal(k1, (B, Lq, d_model), jnp.float32)
    query_pos = jax.random.normal(k2, (B, Lq, d_model), jnp.float32)
    src = jax.random.normal(k3, (B, Len_in, d_model), jnp.float32)
    reference_points = jax.nn.sigmoid(jax.random.normal(k4, (B, Lq, 1), jnp.float32))
    src_valid_ratios = jnp.ones((B, n_levels), jnp.float32)
    src_level_start_index = jnp.array([0, temporal_shapes[0]], jnp.int32)

    layer_params = [init_layer_params(k, d_model, d_ffn, n_heads, n_levels, n_points)
                    for k in jax.random.split(kp, num_layers)]

    fwd = jax.jit(lambda lp, t, r, s, vr, qp: deformable_transformer_decoder_forward(
        lp, t, r, s, temporal_shapes, src_level_start_index, vr, query_pos=qp,
        n_heads=n_heads, n_points=n_points))

    out, ref = fwd(layer_params, tgt, reference_points, src, src_valid_ratios, query_pos)
    out = jax.block_until_ready(out)
    ref = jax.block_until_ready(ref)

    assert out.shape == (B, Lq, d_model)
    assert ref.shape == (B, Lq, 1)
    assert bool(jnp.all(jnp.isfinite(out)))
    print("KERNEL_OK")
</pallas_src>

<mosaic_0001>
module attributes {stable_mosaic.version = 11 : i64} {
  func.func @_decoder_kernel(%arg0: i32, %arg1: i32, %arg2: memref<1x8x32xf32, #tpu.memory_space<vmem>>, %arg3: memref<1x8x32xf32, #tpu.memory_space<vmem>>, %arg4: memref<1x8x2xf32, #tpu.memory_space<vmem>>, %arg5: memref<1x24x32xbf16, #tpu.memory_space<vmem>>, %arg6: memref<1x24x1xf32, #tpu.memory_space<vmem>>, %arg7: memref<2x16xf32, #tpu.memory_space<vmem>>, %arg8: memref<1x32x64xbf16, #tpu.memory_space<vmem>>, %arg9: memref<1x32x32xbf16, #tpu.memory_space<vmem>>, %arg10: memref<1x32x32xbf16, #tpu.memory_space<vmem>>, %arg11: memref<1x32x32xbf16, #tpu.memory_space<vmem>>, %arg12: memref<1x32x32xbf16, #tpu.memory_space<vmem>>, %arg13: memref<1x32x32xbf16, #tpu.memory_space<vmem>>, %arg14: memref<1x32x64xbf16, #tpu.memory_space<vmem>>, %arg15: memref<1x64x32xbf16, #tpu.memory_space<vmem>>, %arg16: memref<1x11x32xf32, #tpu.memory_space<vmem>>, %arg17: memref<1x1x160xf32, #tpu.memory_space<vmem>>, %arg18: memref<1x8x32xf32, #tpu.memory_space<vmem>>, %arg19: memref<8x32xf32, #tpu.memory_space<vmem>>, %arg20: memref<24x32xbf16, #tpu.memory_space<vmem>>) attributes {dimension_semantics = [#tpu.dimension_semantics<parallel>, #tpu.dimension_semantics<arbitrary>], iteration_bounds = array<i64: 2, 2>, scalar_prefetch = 0 : i64, scratch_operands = 2 : i64, tpu.core_type = #tpu.core_type<tc>, window_params = [{transform_indices = @transform_0, window_bounds = array<i64: 1, 8, 32>}, {transform_indices = @transform_1, window_bounds = array<i64: 1, 8, 32>}, {transform_indices = @transform_2, window_bounds = array<i64: 1, 8, 2>}, {transform_indices = @transform_3, window_bounds = array<i64: 1, 24, 32>}, {transform_indices = @transform_4, window_bounds = array<i64: 1, 24, 1>}, {pipeline_mode = #tpu.pipeline_mode<synchronous>, transform_indices = @transform_5, window_bounds = array<i64: 2, 16>}, {transform_indices = @transform_6, window_bounds = array<i64: 1, 32, 64>}, {transform_indices = @transform_7, window_bounds = array<i64: 1, 32, 32>}, {transform_indices = @transform_8, window_bounds = array<i64: 1, 32, 32>}, {transform_indices = @transform_9, window_bounds = array<i64: 1, 32, 32>}, {transform_indices = @transform_10, window_bounds = array<i64: 1, 32, 32>}, {transform_indices = @transform_11, window_bounds = array<i64: 1, 32, 32>}, {transform_indices = @transform_12, window_bounds = array<i64: 1, 32, 64>}, {transform_indices = @transform_13, window_bounds = array<i64: 1, 64, 32>}, {transform_indices = @transform_14, window_bounds = array<i64: 1, 11, 32>}, {transform_indices = @transform_15, window_bounds = array<i64: 1, 1, 160>}, {transform_indices = @transform_16, window_bounds = array<i64: 1, 8, 32>}]} {
    %c0_i32 = arith.constant 0 : i32
    %0 = arith.cmpi eq, %arg1, %c0_i32 : i32
    %1 = arith.extui %0 : i1 to i32
    %c0_i32_0 = arith.constant 0 : i32
    %2 = arith.cmpi ne, %1, %c0_i32_0 : i32
    scf.if %2 {
      %c0_136 = arith.constant 0 : index
      %c0_137 = arith.constant 0 : index
      %c0_138 = arith.constant 0 : index
      %638 = vector.load %arg2[%c0_136, %c0_137, %c0_138] : memref<1x8x32xf32, #tpu.memory_space<vmem>>, vector<1x8x32xf32>
      %639 = vector.shape_cast %638 : vector<1x8x32xf32> to vector<8x32xf32>
      %c0_139 = arith.constant 0 : index
      %c0_140 = arith.constant 0 : index
      %640 = vector.load %arg19[%c0_139, %c0_140] : memref<8x32xf32, #tpu.memory_space<vmem>>, vector<8x32xf32>
      tpu.vector_store %arg19[%c0_139, %c0_140], %639 {strides = array<i32>} : memref<8x32xf32, #tpu.memory_space<vmem>>, vector<8x32xf32>,
    } else {
    }
    %c0 = arith.constant 0 : index
    %c0_1 = arith.constant 0 : index
    %3 = vector.load %arg19[%c0, %c0_1] : memref<8x32xf32, #tpu.memory_space<vmem>>, vector<8x32xf32>
    %c0_2 = arith.constant 0 : index
    %c0_3 = arith.constant 0 : index
    %c0_4 = arith.constant 0 : index
    %4 = vector.load %arg3[%c0_2, %c0_3, %c0_4] : memref<1x8x32xf32, #tpu.memory_space<vmem>>, vector<1x8x32xf32>
    %5 = vector.shape_cast %4 : vector<1x8x32xf32> to vector<8x32xf32>
    %c0_5 = arith.constant 0 : index
    %c0_6 = arith.constant 0 : index
    %c0_7 = arith.constant 0 : index
    %6 = vector.load %arg16[%c0_5, %c0_6, %c0_7] : memref<1x11x32xf32, #tpu.memory_space<vmem>>, vector<1x11x32xf32>
    %7 = vector.shape_cast %6 : vector<1x11x32xf32> to vector<11x32xf32>
    %c0_8 = arith.constant 0 : index
    %c0_9 = arith.constant 0 : index
    %c0_10 = arith.constant 0 : index
    %8 = vector.load %arg17[%c0_8, %c0_9, %c0_10] : memref<1x1x160xf32, #tpu.memory_space<vmem>>, vector<1x1x160xf32>
    %9 = vector.shape_cast %8 : vector<1x1x160xf32> to vector<1x160xf32>
    %10 = arith.addf %3, %5 : vector<8x32xf32>
    %c0_11 = arith.constant 0 : index
    %c0_12 = arith.constant 0 : index
    %c0_13 = arith.constant 0 : index
    %11 = vector.load %arg8[%c0_11, %c0_12, %c0_13] : memref<1x32x64xbf16, #tpu.memory_space<vmem>>, vector<1x32x64xbf16>
    %12 = vector.shape_cast %11 : vector<1x32x64xbf16> to vector<32x64xbf16>
    %13 = vector.extract_strided_slice %9 {offsets = [0, 0], sizes = [1, 64], strides = [1, 1]} : vector<1x160xf32> to vector<1x64xf32>
    %14 = arith.truncf %10 : vector<8x32xf32> to vector<8x32xbf16>
    %cst = arith.constant dense<0.000000e+00> : vector<8x64xf32>
    %15 = tpu.matmul %14, %12, %cst {dimension_numbers = #tpu.dot_dimension_numbers<[1], [0], [0], [1], [0, 0, 1, 1], [], []>} : vector<8x32xbf16>, vector<32x64xbf16>, vector<8x64xf32> -> vector<8x64xf32>
    %16 = vector.broadcast %13 : vector<1x64xf32> to vector<8x64xf32>
    %17 = arith.addf %15, %16 : vector<8x64xf32>
    %c0_14 = arith.constant 0 : index
    %c0_15 = arith.constant 0 : index
    %c0_16 = arith.constant 0 : index
    %18 = vector.load %arg9[%c0_14, %c0_15, %c0_16] : memref<1x32x32xbf16, #tpu.memory_space<vmem>>, vector<1x32x32xbf16>
    %19 = vector.shape_cast %18 : vector<1x32x32xbf16> to vector<32x32xbf16>
    %20 = vector.extract_strided_slice %7 {offsets = [0, 0], sizes = [1, 32], strides = [1, 1]} : vector<11x32xf32> to vector<1x32xf32>
    %21 = arith.truncf %3 : vector<8x32xf32> to vector<8x32xbf16>
    %cst_17 = arith.constant dense<0.000000e+00> : vector<8x32xf32>
    %22 = tpu.matmul %21, %19, %cst_17 {dimension_numbers = #tpu.dot_dimension_numbers<[1], [0], [0], [1], [0, 0, 1, 1], [], []>} : vector<8x32xbf16>, vector<32x32xbf16>, vector<8x32xf32> -> vector<8x32xf32>
    %23 = vector.broadcast %20 : vector<1x32xf32> to vector<8x32xf32>
    %24 = arith.addf %22, %23 : vector<8x32xf32>
    %25 = vector.extract_strided_slice %17 {offsets = [0, 0], sizes = [8, 8], strides = [1, 1]} : vector<8x64xf32> to vector<8x8xf32>
    %26 = arith.truncf %25 : vector<8x8xf32> to vector<8x8xbf16>
    %27 = vector.extract_strided_slice %17 {offsets = [0, 32], sizes = [8, 8], strides = [1, 1]} : vector<8x64xf32> to vector<8x8xf32>
    %28 = arith.truncf %27 : vector<8x8xf32> to vector<8x8xbf16>
    %29 = vector.extract_strided_slice %24 {offsets = [0, 0], sizes = [8, 8], strides = [1, 1]} : vector<8x32xf32> to vector<8x8xf32>
    %30 = arith.truncf %29 : vector<8x8xf32> to vector<8x8xbf16>
    %cst_18 = arith.constant dense<0.000000e+00> : vector<8x8xf32>
    %31 = tpu.matmul %26, %28, %cst_18 {dimension_numbers = #tpu.dot_dimension_numbers<[1], [1], [0], [0], [0, 0, 1, 0], [], []>} : vector<8x8xbf16>, vector<8x8xbf16>, vector<8x8xf32> -> vector<8x8xf32>
    %cst_19 = arith.constant dense<0xFF800000> : vector<8xf32>
    %32 = vector.multi_reduction <maximumf>, %31, %cst_19 [1] : vector<8x8xf32> to vector<8xf32>
    %33 = vector.shape_cast %32 : vector<8xf32> to vector<8x1xf32>
    %34 = vector.broadcast %33 : vector<8x1xf32> to vector<8x8xf32>
    %35 = arith.subf %31, %34 : vector<8x8xf32>
    %36 = math.exp %35 : vector<8x8xf32>
    %cst_20 = arith.constant dense<0.000000e+00> : vector<8xf32>
    %37 = vector.multi_reduction <add>, %36, %cst_20 [1] : vector<8x8xf32> to vector<8xf32>
    %38 = vector.shape_cast %37 : vector<8xf32> to vector<8x1xf32>
    %39 = vector.broadcast %38 : vector<8x1xf32> to vector<8x8xf32>
    %40 = arith.divf %36, %39 : vector<8x8xf32>
    %41 = arith.truncf %40 : vector<8x8xf32> to vector<8x8xbf16>
    %cst_21 = arith.constant dense<0.000000e+00> : vector<8x8xf32>
    %42 = tpu.matmul %41, %30, %cst_21 {dimension_numbers = #tpu.dot_dimension_numbers<[1], [0], [0], [1], [0, 0, 1, 1], [], []>} : vector<8x8xbf16>, vector<8x8xbf16>, vector<8x8xf32> -> vector<8x8xf32>
    %43 = vector.extract_strided_slice %17 {offsets = [0, 8], sizes = [8, 8], strides = [1, 1]} : vector<8x64xf32> to vector<8x8xf32>
    %44 = arith.truncf %43 : vector<8x8xf32> to vector<8x8xbf16>
    %45 = vector.extract_strided_slice %17 {offsets = [0, 40], sizes = [8, 8], strides = [1, 1]} : vector<8x64xf32> to vector<8x8xf32>
    %46 = arith.truncf %45 : vector<8x8xf32> to vector<8x8xbf16>
    %47 = vector.extract_strided_slice %24 {offsets = [0, 8], sizes = [8, 8], strides = [1, 1]} : vector<8x32xf32> to vector<8x8xf32>
    %48 = arith.truncf %47 : vector<8x8xf32> to vector<8x8xbf16>
    %cst_22 = arith.constant dense<0.000000e+00> : vector<8x8xf32>
    %49 = tpu.matmul %44, %46, %cst_22 {dimension_numbers = #tpu.dot_dimension_numbers<[1], [1], [0], [0], [0, 0, 1, 0], [], []>} : vector<8x8xbf16>, vector<8x8xbf16>, vector<8x8xf32> -> vector<8x8xf32>
    %cst_23 = arith.constant dense<0xFF800000> : vector<8xf32>
    %50 = vector.multi_reduction <maximumf>, %49, %cst_23 [1] : vector<8x8xf32> to vector<8xf32>
    %51 = vector.shape_cast %50 : vector<8xf32> to vector<8x1xf32>
    %52 = vector.broadcast %51 : vector<8x1xf32> to vector<8x8xf32>
    %53 = arith.subf %49, %52 : vector<8x8xf32>
    %54 = math.exp %53 : vector<8x8xf32>
    %cst_24 = arith.constant dense<0.000000e+00> : vector<8xf32>
    %55 = vector.multi_reduction <add>, %54, %cst_24 [1] : vector<8x8xf32> to vector<8xf32>
    %56 = vector.shape_cast %55 : vector<8xf32> to vector<8x1xf32>
    %57 = vector.broadcast %56 : vector<8x1xf32> to vector<8x8xf32>
    %58 = arith.divf %54, %57 : vector<8x8xf32>
    %59 = arith.truncf %58 : vector<8x8xf32> to vector<8x8xbf16>
    %cst_25 = arith.constant dense<0.000000e+00> : vector<8x8xf32>
    %60 = tpu.matmul %59, %48, %cst_25 {dimension_numbers = #tpu.dot_dimension_numbers<[1], [0], [0], [1], [0, 0, 1, 1], [], []>} : vector<8x8xbf16>, vector<8x8xbf16>, vector<8x8xf32> -> vector<8x8xf32>
    %61 = vector.extract_strided_slice %17 {offsets = [0, 16], sizes = [8, 8], strides = [1, 1]} : vector<8x64xf32> to vector<8x8xf32>
    %62 = arith.truncf %61 : vector<8x8xf32> to vector<8x8xbf16>
    %63 = vector.extract_strided_slice %17 {offsets = [0, 48], sizes = [8, 8], strides = [1, 1]} : vector<8x64xf32> to vector<8x8xf32>
    %64 = arith.truncf %63 : vector<8x8xf32> to vector<8x8xbf16>
    %65 = vector.extract_strided_slice %24 {offsets = [0, 16], sizes = [8, 8], strides = [1, 1]} : vector<8x32xf32> to vector<8x8xf32>
    %66 = arith.truncf %65 : vector<8x8xf32> to vector<8x8xbf16>
    %cst_26 = arith.constant dense<0.000000e+00> : vector<8x8xf32>
    %67 = tpu.matmul %62, %64, %cst_26 {dimension_numbers = #tpu.dot_dimension_numbers<[1], [1], [0], [0], [0, 0, 1, 0], [], []>} : vector<8x8xbf16>, vector<8x8xbf16>, vector<8x8xf32> -> vector<8x8xf32>
    %cst_27 = arith.constant dense<0xFF800000> : vector<8xf32>
    %68 = vector.multi_reduction <maximumf>, %67, %cst_27 [1] : vector<8x8xf32> to vector<8xf32>
    %69 = vector.shape_cast %68 : vector<8xf32> to vector<8x1xf32>
    %70 = vector.broadcast %69 : vector<8x1xf32> to vector<8x8xf32>
    %71 = arith.subf %67, %70 : vector<8x8xf32>
    %72 = math.exp %71 : vector<8x8xf32>
    %cst_28 = arith.constant dense<0.000000e+00> : vector<8xf32>
    %73 = vector.multi_reduction <add>, %72, %cst_28 [1] : vector<8x8xf32> to vector<8xf32>
    %74 = vector.shape_cast %73 : vector<8xf32> to vector<8x1xf32>
    %75 = vector.broadcast %74 : vector<8x1xf32> to vector<8x8xf32>
    %76 = arith.divf %72, %75 : vector<8x8xf32>
    %77 = arith.truncf %76 : vector<8x8xf32> to vector<8x8xbf16>
    %cst_29 = arith.constant dense<0.000000e+00> : vector<8x8xf32>
    %78 = tpu.matmul %77, %66, %cst_29 {dimension_numbers = #tpu.dot_dimension_numbers<[1], [0], [0], [1], [0, 0, 1, 1], [], []>} : vector<8x8xbf16>, vector<8x8xbf16>, vector<8x8xf32> -> vector<8x8xf32>
    %79 = vector.extract_strided_slice %17 {offsets = [0, 24], sizes = [8, 8], strides = [1, 1]} : vector<8x64xf32> to vector<8x8xf32>
    %80 = arith.truncf %79 : vector<8x8xf32> to vector<8x8xbf16>
    %81 = vector.extract_strided_slice %17 {offsets = [0, 56], sizes = [8, 8], strides = [1, 1]} : vector<8x64xf32> to vector<8x8xf32>
    %82 = arith.truncf %81 : vector<8x8xf32> to vector<8x8xbf16>
    %83 = vector.extract_strided_slice %24 {offsets = [0, 24], sizes = [8, 8], strides = [1, 1]} : vector<8x32xf32> to vector<8x8xf32>
    %84 = arith.truncf %83 : vector<8x8xf32> to vector<8x8xbf16>
    %cst_30 = arith.constant dense<0.000000e+00> : vector<8x8xf32>
    %85 = tpu.matmul %80, %82, %cst_30 {dimension_numbers = #tpu.dot_dimension_numbers<[1], [1], [0], [0], [0, 0, 1, 0], [], []>} : vector<8x8xbf16>, vector<8x8xbf16>, vector<8x8xf32> -> vector<8x8xf32>
    %cst_31 = arith.constant dense<0xFF800000> : vector<8xf32>
    %86 = vector.multi_reduction <maximumf>, %85, %cst_31 [1] : vector<8x8xf32> to vector<8xf32>
    %87 = vector.shape_cast %86 : vector<8xf32> to vector<8x1xf32>
    %88 = vector.broadcast %87 : vector<8x1xf32> to vector<8x8xf32>
    %89 = arith.subf %85, %88 : vector<8x8xf32>
    %90 = math.exp %89 : vector<8x8xf32>
    %cst_32 = arith.constant dense<0.000000e+00> : vector<8xf32>
    %91 = vector.multi_reduction <add>, %90, %cst_32 [1] : vector<8x8xf32> to vector<8xf32>
    %92 = vector.shape_cast %91 : vector<8xf32> to vector<8x1xf32>
    %93 = vector.broadcast %92 : vector<8x1xf32> to vector<8x8xf32>
    %94 = arith.divf %90, %93 : vector<8x8xf32>
    %95 = arith.truncf %94 : vector<8x8xf32> to vector<8x8xbf16>
    %cst_33 = arith.constant dense<0.000000e+00> : vector<8x8xf32>
    %96 = tpu.matmul %95, %84, %cst_33 {dimension_numbers = #tpu.dot_dimension_numbers<[1], [0], [0], [1], [0, 0, 1, 1], [], []>} : vector<8x8xbf16>, vector<8x8xbf16>, vector<8x8xf32> -> vector<8x8xf32>
    %97 = tpu.concatenate %42, %60, %78, %96 in 1 : vector<8x8xf32>, vector<8x8xf32>, vector<8x8xf32>, vector<8x8xf32> -> vector<8x32xf32>
    %c0_34 = arith.constant 0 : index
    %c0_35 = arith.constant 0 : index
    %c0_36 = arith.constant 0 : index
    %98 = vector.load %arg10[%c0_34, %c0_35, %c0_36] : memref<1x32x32xbf16, #tpu.memory_space<vmem>>, vector<1x32x32xbf16>
    %99 = vector.shape_cast %98 : vector<1x32x32xbf16> to vector<32x32xbf16>
    %100 = vector.extract_strided_slice %7 {offsets = [1, 0], sizes = [1, 32], strides = [1, 1]} : vector<11x32xf32> to vector<1x32xf32>
    %101 = arith.truncf %97 : vector<8x32xf32> to vector<8x32xbf16>
    %cst_37 = arith.constant dense<0.000000e+00> : vector<8x32xf32>
    %102 = tpu.matmul %101, %99, %cst_37 {dimension_numbers = #tpu.dot_dimension_numbers<[1], [0], [0], [1], [0, 0, 1, 1], [], []>} : vector<8x32xbf16>, vector<32x32xbf16>, vector<8x32xf32> -> vector<8x32xf32>
    %103 = vector.broadcast %100 : vector<1x32xf32> to vector<8x32xf32>
    %104 = arith.addf %102, %103 : vector<8x32xf32>
    %105 = arith.addf %3, %104 : vector<8x32xf32>
    %106 = vector.extract_strided_slice %7 {offsets = [2, 0], sizes = [1, 32], strides = [1, 1]} : vector<11x32xf32> to vector<1x32xf32>
    %107 = vector.extract_strided_slice %7 {offsets = [3, 0], sizes = [1, 32], strides = [1, 1]} : vector<11x32xf32> to vector<1x32xf32>
    %cst_38 = arith.constant dense<0.000000e+00> : vector<8xf32>
    %108 = vector.multi_reduction <add>, %105, %cst_38 [1] : vector<8x32xf32> to vector<8xf32>
    %109 = vector.shape_cast %108 : vector<8xf32> to vector<8x1xf32>
    %cst_39 = arith.constant 3.200000e+01 : f32
    %110 = vector.broadcast %cst_39 : f32 to vector<8x1xf32>
    %111 = arith.divf %109, %110 : vector<8x1xf32>
    %112 = vector.broadcast %111 : vector<8x1xf32> to vector<8x32xf32>
    %113 = arith.subf %105, %112 : vector<8x32xf32>
    %114 = arith.mulf %113, %113 : vector<8x32xf32>
    %cst_40 = arith.constant dense<0.000000e+00> : vector<8xf32>
    %115 = vector.multi_reduction <add>, %114, %cst_40 [1] : vector<8x32xf32> to vector<8xf32>
    %116 = vector.shape_cast %115 : vector<8xf32> to vector<8x1xf32>
    %cst_41 = arith.constant 3.200000e+01 : f32
    %117 = vector.broadcast %cst_41 : f32 to vector<8x1xf32>
    %118 = arith.divf %116, %117 : vector<8x1xf32>
    %119 = vector.broadcast %111 : vector<8x1xf32> to vector<8x32xf32>
    %120 = arith.subf %105, %119 : vector<8x32xf32>
    %cst_42 = arith.constant 9.99999974E-6 : f32
    %121 = vector.broadcast %cst_42 : f32 to vector<8x1xf32>
    %122 = arith.addf %118, %121 : vector<8x1xf32>
    %123 = math.rsqrt %122 : vector<8x1xf32>
    %124 = vector.broadcast %123 : vector<8x1xf32> to vector<8x32xf32>
    %125 = arith.mulf %120, %124 : vector<8x32xf32>
    %126 = vector.broadcast %106 : vector<1x32xf32> to vector<8x32xf32>
    %127 = arith.mulf %125, %126 : vector<8x32xf32>
    %128 = vector.broadcast %107 : vector<1x32xf32> to vector<8x32xf32>
    %129 = arith.addf %127, %128 : vector<8x32xf32>
    %130 = arith.addf %129, %5 : vector<8x32xf32>
    %c0_43 = arith.constant 0 : index
    %c0_44 = arith.constant 0 : index
    %c0_45 = arith.constant 0 : index
    %131 = vector.load %arg5[%c0_43, %c0_44, %c0_45] : memref<1x24x32xbf16, #tpu.memory_space<vmem>>, vector<1x24x32xbf16>
    %132 = vector.shape_cast %131 : vector<1x24x32xbf16> to vector<24x32xbf16>
    %c0_46 = arith.constant 0 : index
    %c0_47 = arith.constant 0 : index
    %c0_48 = arith.constant 0 : index
    %133 = vector.load %arg11[%c0_46, %c0_47, %c0_48] : memref<1x32x32xbf16, #tpu.memory_space<vmem>>, vector<1x32x32xbf16>
    %134 = vector.shape_cast %133 : vector<1x32x32xbf16> to vector<32x32xbf16>
    %135 = vector.extract_strided_slice %7 {offsets = [4, 0], sizes = [1, 32], strides = [1, 1]} : vector<11x32xf32> to vector<1x32xf32>
    %cst_49 = arith.constant dense<0.000000e+00> : vector<24x32xf32>
    %136 = tpu.matmul %132, %134, %cst_49 {dimension_numbers = #tpu.dot_dimension_numbers<[1], [0], [0], [1], [0, 0, 1, 1], [], []>} : vector<24x32xbf16>, vector<32x32xbf16>, vector<24x32xf32> -> vector<24x32xf32>
    %137 = vector.broadcast %135 : vector<1x32xf32> to vector<24x32xf32>
    %138 = arith.addf %136, %137 : vector<24x32xf32>
    %c0_50 = arith.constant 0 : index
    %c0_51 = arith.constant 0 : index
    %c0_52 = arith.constant 0 : index
    %139 = vector.load %arg6[%c0_50, %c0_51, %c0_52] : memref<1x24x1xf32, #tpu.memory_space<vmem>>, vector<1x24x1xf32>
    %140 = vector.shape_cast %139 : vector<1x24x1xf32> to vector<24x1xf32>
    %141 = vector.broadcast %140 : vector<24x1xf32> to vector<24x32xf32>
    %142 = arith.mulf %138, %141 : vector<24x32xf32>
    %143 = arith.truncf %142 : vector<24x32xf32> to vector<24x32xbf16>
    %c0_53 = arith.constant 0 : index
    %c0_54 = arith.constant 0 : index
    %144 = vector.load %arg20[%c0_53, %c0_54] : memref<24x32xbf16, #tpu.memory_space<vmem>>, vector<24x32xbf16>
    tpu.vector_store %arg20[%c0_53, %c0_54], %143 {strides = array<i32>} : memref<24x32xbf16, #tpu.memory_space<vmem>>, vector<24x32xbf16>,
    %c0_55 = arith.constant 0 : index
    %c0_56 = arith.constant 0 : index
    %c0_57 = arith.constant 0 : index
    %145 = vector.load %arg12[%c0_55, %c0_56, %c0_57] : memref<1x32x32xbf16, #tpu.memory_space<vmem>>, vector<1x32x32xbf16>
    %146 = vector.shape_cast %145 : vector<1x32x32xbf16> to vector<32x32xbf16>
    %147 = vector.extract_strided_slice %9 {offsets = [0, 64], sizes = [1, 32], strides = [1, 1]} : vector<1x160xf32> to vector<1x32xf32>
    %148 = arith.truncf %130 : vector<8x32xf32> to vector<8x32xbf16>
    %cst_58 = arith.constant dense<0.000000e+00> : vector<8x32xf32>
    %149 = tpu.matmul %148, %146, %cst_58 {dimension_numbers = #tpu.dot_dimension_numbers<[1], [0], [0], [1], [0, 0, 1, 1], [], []>} : vector<8x32xbf16>, vector<32x32xbf16>, vector<8x32xf32> -> vector<8x32xf32>
    %150 = vector.broadcast %147 : vector<1x32xf32> to vector<8x32xf32>
    %151 = arith.addf %149, %150 : vector<8x32xf32>
    %152 = vector.extract_strided_slice %151 {offsets = [0, 0], sizes = [8, 16], strides = [1, 1]} : vector<8x32xf32> to vector<8x16xf32>
    %153 = vector.extract_strided_slice %151 {offsets = [0, 16], sizes = [8, 4], strides = [1, 1]} : vector<8x32xf32> to vector<8x4xf32>
    %cst_59 = arith.constant dense<0xFF800000> : vector<8xf32>
    %154 = vector.multi_reduction <maximumf>, %153, %cst_59 [1] : vector<8x4xf32> to vector<8xf32>
    %155 = vector.shape_cast %154 : vector<8xf32> to vector<8x1xf32>
    %156 = vector.broadcast %155 : vector<8x1xf32> to vector<8x4xf32>
    %157 = arith.subf %153, %156 : vector<8x4xf32>
    %158 = math.exp %157 : vector<8x4xf32>
    %cst_60 = arith.constant dense<0.000000e+00> : vector<8xf32>
    %159 = vector.multi_reduction <add>, %158, %cst_60 [1] : vector<8x4xf32> to vector<8xf32>
    %160 = vector.shape_cast %159 : vector<8xf32> to vector<8x1xf32>
    %161 = tpu.reciprocal %160 {approx = true} : vector<8x1xf32> -> vector<8x1xf32>
    %162 = vector.broadcast %161 : vector<8x1xf32> to vector<8x4xf32>
    %163 = arith.mulf %158, %162 : vector<8x4xf32>
    %164 = vector.extract_strided_slice %151 {offsets = [0, 20], sizes = [8, 4], strides = [1, 1]} : vector<8x32xf32> to vector<8x4xf32>
    %cst_61 = arith.constant dense<0xFF800000> : vector<8xf32>
    %165 = vector.multi_reduction <maximumf>, %164, %cst_61 [1] : vector<8x4xf32> to vector<8xf32>
    %166 = vector.shape_cast %165 : vector<8xf32> to vector<8x1xf32>
    %167 = vector.broadcast %166 : vector<8x1xf32> to vector<8x4xf32>
    %168 = arith.subf %164, %167 : vector<8x4xf32>
    %169 = math.exp %168 : vector<8x4xf32>
    %cst_62 = arith.constant dense<0.000000e+00> : vector<8xf32>
    %170 = vector.multi_reduction <add>, %169, %cst_62 [1] : vector<8x4xf32> to vector<8xf32>
    %171 = vector.shape_cast %170 : vector<8xf32> to vector<8x1xf32>
    %172 = tpu.reciprocal %171 {approx = true} : vector<8x1xf32> -> vector<8x1xf32>
    %173 = vector.broadcast %172 : vector<8x1xf32> to vector<8x4xf32>
    %174 = arith.mulf %169, %173 : vector<8x4xf32>
    %175 = vector.extract_strided_slice %151 {offsets = [0, 24], sizes = [8, 4], strides = [1, 1]} : vector<8x32xf32> to vector<8x4xf32>
    %cst_63 = arith.constant dense<0xFF800000> : vector<8xf32>
    %176 = vector.multi_reduction <maximumf>, %175, %cst_63 [1] : vector<8x4xf32> to vector<8xf32>
    %177 = vector.shape_cast %176 : vector<8xf32> to vector<8x1xf32>
    %178 = vector.broadcast %177 : vector<8x1xf32> to vector<8x4xf32>
    %179 = arith.subf %175, %178 : vector<8x4xf32>
    %180 = math.exp %179 : vector<8x4xf32>
    %cst_64 = arith.constant dense<0.000000e+00> : vector<8xf32>
    %181 = vector.multi_reduction <add>, %180, %cst_64 [1] : vector<8x4xf32> to vector<8xf32>
    %182 = vector.shape_cast %181 : vector<8xf32> to vector<8x1xf32>
    %183 = tpu.reciprocal %182 {approx = true} : vector<8x1xf32> -> vector<8x1xf32>
    %184 = vector.broadcast %183 : vector<8x1xf32> to vector<8x4xf32>
    %185 = arith.mulf %180, %184 : vector<8x4xf32>
    %186 = vector.extract_strided_slice %151 {offsets = [0, 28], sizes = [8, 4], strides = [1, 1]} : vector<8x32xf32> to vector<8x4xf32>
    %cst_65 = arith.constant dense<0xFF800000> : vector<8xf32>
    %187 = vector.multi_reduction <maximumf>, %186, %cst_65 [1] : vector<8x4xf32> to vector<8xf32>
    %188 = vector.shape_cast %187 : vector<8xf32> to vector<8x1xf32>
    %189 = vector.broadcast %188 : vector<8x1xf32> to vector<8x4xf32>
    %190 = arith.subf %186, %189 : vector<8x4xf32>
    %191 = math.exp %190 : vector<8x4xf32>
    %cst_66 = arith.constant dense<0.000000e+00> : vector<8xf32>
    %192 = vector.multi_reduction <add>, %191, %cst_66 [1] : vector<8x4xf32> to vector<8xf32>
    %193 = vector.shape_cast %192 : vector<8xf32> to vector<8x1xf32>
    %194 = tpu.reciprocal %193 {approx = true} : vector<8x1xf32> -> vector<8x1xf32>
    %195 = vector.broadcast %194 : vector<8x1xf32> to vector<8x4xf32>
    %196 = arith.mulf %191, %195 : vector<8x4xf32>
    %197 = tpu.concatenate %163, %174, %185, %196 in 1 : vector<8x4xf32>, vector<8x4xf32>, vector<8x4xf32>, vector<8x4xf32> -> vector<8x16xf32>
    %c0_67 = arith.constant 0 : index
    %c0_68 = arith.constant 0 : index
    %c0_69 = arith.constant 0 : index
    %198 = vector.load %arg4[%c0_67, %c0_68, %c0_69] : memref<1x8x2xf32, #tpu.memory_space<vmem>>, vector<1x8x2xf32>
    %199 = vector.shape_cast %198 : vector<1x8x2xf32> to vector<8x2xf32>
    %c0_70 = arith.constant 0 : index
    %c0_71 = arith.constant 0 : index
    %200 = vector.load %arg7[%c0_70, %c0_71] : memref<2x16xf32, #tpu.memory_space<vmem>>, vector<2x16xf32>
    %cst_72 = arith.constant 0.000000e+00 : f32
    %201 = vector.broadcast %cst_72 : f32 to vector<8x16xf32>
    %202 = vector.extract_strided_slice %199 {offsets = [0, 0], sizes = [8, 1], strides = [1, 1]} : vector<8x2xf32> to vector<8x1xf32>
    %203 = vector.extract_strided_slice %200 {offsets = [0, 0], sizes = [1, 16], strides = [1, 1]} : vector<2x16xf32> to vector<1x16xf32>
    %204 = vector.broadcast %202 : vector<8x1xf32> to vector<8x16xf32>
    %205 = vector.broadcast %203 : vector<1x16xf32> to vector<8x16xf32>
    %206 = arith.mulf %204, %205 : vector<8x16xf32>
    %207 = arith.addf %201, %206 : vector<8x16xf32>
    %208 = vector.extract_strided_slice %199 {offsets = [0, 1], sizes = [8, 1], strides = [1, 1]} : vector<8x2xf32> to vector<8x1xf32>
    %209 = vector.extract_strided_slice %200 {offsets = [1, 0], sizes = [1, 16], strides = [1, 1]} : vector<2x16xf32> to vector<1x16xf32>
    %210 = vector.broadcast %208 : vector<8x1xf32> to vector<8x16xf32>
    %211 = vector.broadcast %209 : vector<1x16xf32> to vector<8x16xf32>
    %212 = arith.mulf %210, %211 : vector<8x16xf32>
    %213 = arith.addf %207, %212 : vector<8x16xf32>
    %214 = arith.addf %213, %152 : vector<8x16xf32>
    %cst_73 = arith.constant 5.000000e-01 : f32
    %215 = vector.broadcast %cst_73 : f32 to vector<8x16xf32>
    %216 = arith.subf %214, %215 : vector<8x16xf32>
    %217 = math.floor %216 : vector<8x16xf32>
    %218 = arith.subf %216, %217 : vector<8x16xf32>
    %cst_74 = arith.constant 1.000000e+00 : f32
    %219 = vector.broadcast %cst_74 : f32 to vector<8x16xf32>
    %220 = arith.subf %219, %218 : vector<8x16xf32>
    %221 = arith.fptosi %217 : vector<8x16xf32> to vector<8x16xi32>
    %c1_i32 = arith.constant 1 : i32
    %222 = vector.broadcast %c1_i32 : i32 to vector<8x16xi32>
    %223 = arith.addi %221, %222 : vector<8x16xi32>
    %224 = arith.mulf %197, %220 : vector<8x16xf32>
    %225 = arith.mulf %197, %218 : vector<8x16xf32>
    %cst_75 = arith.constant 0.000000e+00 : f32
    %226 = vector.broadcast %cst_75 : f32 to vector<8x8xf32>
    %cst_76 = arith.constant 0.000000e+00 : f32
    %227 = vector.broadcast %cst_76 : f32 to vector<8x8xf32>
    %cst_77 = arith.constant 0.000000e+00 : f32
    %228 = vector.broadcast %cst_77 : f32 to vector<8x8xf32>
    %cst_78 = arith.constant 0.000000e+00 : f32
    %229 = vector.broadcast %cst_78 : f32 to vector<8x8xf32>
    %230 = tpu.iota {dimensions = array<i32: 1>} : vector<8x16xi32>
    %cst_79 = arith.constant 0.000000e+00 : f32
    %231 = vector.broadcast %cst_79 : f32 to vector<8x16xf32>
    %232 = vector.extract_strided_slice %221 {offsets = [0, 0], sizes = [8, 1], strides = [1, 1]} : vector<8x16xi32> to vector<8x1xi32>
    %233 = vector.broadcast %232 : vector<8x1xi32> to vector<8x16xi32>
    %234 = arith.cmpi eq, %230, %233 : vector<8x16xi32>
    %235 = arith.extui %234 : vector<8x16xi1> to vector<8x16xi32>
    %236 = arith.sitofp %235 : vector<8x16xi32> to vector<8x16xf32>
    %237 = vector.extract_strided_slice %224 {offsets = [0, 0], sizes = [8, 1], strides = [1, 1]} : vector<8x16xf32> to vector<8x1xf32>
    %238 = vector.broadcast %237 : vector<8x1xf32> to vector<8x16xf32>
    %239 = arith.mulf %236, %238 : vector<8x16xf32>
    %240 = arith.addf %231, %239 : vector<8x16xf32>
    %241 = vector.extract_strided_slice %223 {offsets = [0, 0], sizes = [8, 1], strides = [1, 1]} : vector<8x16xi32> to vector<8x1xi32>
    %242 = vector.broadcast %241 : vector<8x1xi32> to vector<8x16xi32>
    %243 = arith.cmpi eq, %230, %242 : vector<8x16xi32>
    %244 = arith.extui %243 : vector<8x16xi1> to vector<8x16xi32>
    %245 = arith.sitofp %244 : vector<8x16xi32> to vector<8x16xf32>
    %246 = vector.extract_strided_slice %225 {offsets = [0, 0], sizes = [8, 1], strides = [1, 1]} : vector<8x16xf32> to vector<8x1xf32>
    %247 = vector.broadcast %246 : vector<8x1xf32> to vector<8x16xf32>
    %248 = arith.mulf %245, %247 : vector<8x16xf32>
    %249 = arith.addf %240, %248 : vector<8x16xf32>
    %250 = vector.extract_strided_slice %221 {offsets = [0, 1], sizes = [8, 1], strides = [1, 1]} : vector<8x16xi32> to vector<8x1xi32>
    %251 = vector.broadcast %250 : vector<8x1xi32> to vector<8x16xi32>
    %252 = arith.cmpi eq, %230, %251 : vector<8x16xi32>
    %253 = arith.extui %252 : vector<8x16xi1> to vector<8x16xi32>
    %254 = arith.sitofp %253 : vector<8x16xi32> to vector<8x16xf32>
    %255 = vector.extract_strided_slice %224 {offsets = [0, 1], sizes = [8, 1], strides = [1, 1]} : vector<8x16xf32> to vector<8x1xf32>
    %256 = vector.broadcast %255 : vector<8x1xf32> to vector<8x16xf32>
    %257 = arith.mulf %254, %256 : vector<8x16xf32>
    %258 = arith.addf %249, %257 : vector<8x16xf32>
    %259 = vector.extract_strided_slice %223 {offsets = [0, 1], sizes = [8, 1], strides = [1, 1]} : vector<8x16xi32> to vector<8x1xi32>
    %260 = vector.broadcast %259 : vector<8x1xi32> to vector<8x16xi32>
    %261 = arith.cmpi eq, %230, %260 : vector<8x16xi32>
    %262 = arith.extui %261 : vector<8x16xi1> to vector<8x16xi32>
    %263 = arith.sitofp %262 : vector<8x16xi32> to vector<8x16xf32>
    %264 = vector.extract_strided_slice %225 {offsets = [0, 1], sizes = [8, 1], strides = [1, 1]} : vector<8x16xf32> to vector<8x1xf32>
    %265 = vector.broadcast %264 : vector<8x1xf32> to vector<8x16xf32>
    %266 = arith.mulf %263, %265 : vector<8x16xf32>
    %267 = arith.addf %258, %266 : vector<8x16xf32>
    %c0_80 = arith.constant 0 : index
    %c0_81 = arith.constant 0 : index
    %268 = vector.load %arg20[%c0_80, %c0_81] : memref<24x32xbf16, #tpu.memory_space<vmem>>, vector<16x8xbf16>
    %269 = arith.truncf %267 : vector<8x16xf32> to vector<8x16xbf16>
    %cst_82 = arith.constant dense<0.000000e+00> : vector<8x8xf32>
    %270 = tpu.matmul %269, %268, %cst_82 {dimension_numbers = #tpu.dot_dimension_numbers<[1], [0], [0], [1], [0, 0, 1, 1], [], []>} : vector<8x16xbf16>, vector<16x8xbf16>, vector<8x8xf32> -> vector<8x8xf32>
    %271 = arith.addf %226, %270 : vector<8x8xf32>
    %cst_83 = arith.constant 0.000000e+00 : f32
    %272 = vector.broadcast %cst_83 : f32 to vector<8x16xf32>
    %273 = vector.extract_strided_slice %221 {offsets = [0, 4], sizes = [8, 1], strides = [1, 1]} : vector<8x16xi32> to vector<8x1xi32>
    %274 = vector.broadcast %273 : vector<8x1xi32> to vector<8x16xi32>
    %275 = arith.cmpi eq, %230, %274 : vector<8x16xi32>
    %276 = arith.extui %275 : vector<8x16xi1> to vector<8x16xi32>
    %277 = arith.sitofp %276 : vector<8x16xi32> to vector<8x16xf32>
    %278 = vector.extract_strided_slice %224 {offsets = [0, 4], sizes = [8, 1], strides = [1, 1]} : vector<8x16xf32> to vector<8x1xf32>
    %279 = vector.broadcast %278 : vector<8x1xf32> to vector<8x16xf32>
    %280 = arith.mulf %277, %279 : vector<8x16xf32>
    %281 = arith.addf %272, %280 : vector<8x16xf32>
    %282 = vector.extract_strided_slice %223 {offsets = [0, 4], sizes = [8, 1], strides = [1, 1]} : vector<8x16xi32> to vector<8x1xi32>
    %283 = vector.broadcast %282 : vector<8x1xi32> to vector<8x16xi32>
    %284 = arith.cmpi eq, %230, %283 : vector<8x16xi32>
    %285 = arith.extui %284 : vector<8x16xi1> to vector<8x16xi32>
    %286 = arith.sitofp %285 : vector<8x16xi32> to vector<8x16xf32>
    %287 = vector.extract_strided_slice %225 {offsets = [0, 4], sizes = [8, 1], strides = [1, 1]} : vector<8x16xf32> to vector<8x1xf32>
    %288 = vector.broadcast %287 : vector<8x1xf32> to vector<8x16xf32>
    %289 = arith.mulf %286, %288 : vector<8x16xf32>
    %290 = arith.addf %281, %289 : vector<8x16xf32>
    %291 = vector.extract_strided_slice %221 {offsets = [0, 5], sizes = [8, 1], strides = [1, 1]} : vector<8x16xi32> to vector<8x1xi32>
    %292 = vector.broadcast %291 : vector<8x1xi32> to vector<8x16xi32>
    %293 = arith.cmpi eq, %230, %292 : vector<8x16xi32>
    %294 = arith.extui %293 : vector<8x16xi1> to vector<8x16xi32>
    %295 = arith.sitofp %294 : vector<8x16xi32> to vector<8x16xf32>
    %296 = vector.extract_strided_slice %224 {offsets = [0, 5], sizes = [8, 1], strides = [1, 1]} : vector<8x16xf32> to vector<8x1xf32>
    %297 = vector.broadcast %296 : vector<8x1xf32> to vector<8x16xf32>
    %298 = arith.mulf %295, %297 : vector<8x16xf32>
    %299 = arith.addf %290, %298 : vector<8x16xf32>
    %300 = vector.extract_strided_slice %223 {offsets = [0, 5], sizes = [8, 1], strides = [1, 1]} : vector<8x16xi32> to vector<8x1xi32>
    %301 = vector.broadcast %300 : vector<8x1xi32> to vector<8x16xi32>
    %302 = arith.cmpi eq, %230, %301 : vector<8x16xi32>
    %303 = arith.extui %302 : vector<8x16xi1> to vector<8x16xi32>
    %304 = arith.sitofp %303 : vector<8x16xi32> to vector<8x16xf32>
    %305 = vector.extract_strided_slice %225 {offsets = [0, 5], sizes = [8, 1], strides = [1, 1]} : vector<8x16xf32> to vector<8x1xf32>
    %306 = vector.broadcast %305 : vector<8x1xf32> to vector<8x16xf32>
    %307 = arith.mulf %304, %306 : vector<8x16xf32>
    %308 = arith.addf %299, %307 : vector<8x16xf32>
    %c0_84 = arith.constant 0 : index
    %c8 = arith.constant 8 : index
    %309 = vector.load %arg20[%c0_84, %c8] : memref<24x32xbf16, #tpu.memory_space<vmem>>, vector<16x8xbf16>
    %310 = arith.truncf %308 : vector<8x16xf32> to vector<8x16xbf16>
    %cst_85 = arith.constant dense<0.000000e+00> : vector<8x8xf32>
    %311 = tpu.matmul %310, %309, %cst_85 {dimension_numbers = #tpu.dot_dimension_numbers<[1], [0], [0], [1], [0, 0, 1, 1], [], []>} : vector<8x16xbf16>, vector<16x8xbf16>, vector<8x8xf32> -> vector<8x8xf32>
    %312 = arith.addf %227, %311 : vector<8x8xf32>
    %cst_86 = arith.constant 0.000000e+00 : f32
    %313 = vector.broadcast %cst_86 : f32 to vector<8x16xf32>
    %314 = vector.extract_strided_slice %221 {offsets = [0, 8], sizes = [8, 1], strides = [1, 1]} : vector<8x16xi32> to vector<8x1xi32>
    %315 = vector.broadcast %314 : vector<8x1xi32> to vector<8x16xi32>
    %316 = arith.cmpi eq, %230, %315 : vector<8x16xi32>
    %317 = arith.extui %316 : vector<8x16xi1> to vector<8x16xi32>
    %318 = arith.sitofp %317 : vector<8x16xi32> to vector<8x16xf32>
    %319 = vector.extract_strided_slice %224 {offsets = [0, 8], sizes = [8, 1], strides = [1, 1]} : vector<8x16xf32> to vector<8x1xf32>
    %320 = vector.broadcast %319 : vector<8x1xf32> to vector<8x16xf32>
    %321 = arith.mulf %318, %320 : vector<8x16xf32>
    %322 = arith.addf %313, %321 : vector<8x16xf32>
    %323 = vector.extract_strided_slice %223 {offsets = [0, 8], sizes = [8, 1], strides = [1, 1]} : vector<8x16xi32> to vector<8x1xi32>
    %324 = vector.broadcast %323 : vector<8x1xi32> to vector<8x16xi32>
    %325 = arith.cmpi eq, %230, %324 : vector<8x16xi32>
    %326 = arith.extui %325 : vector<8x16xi1> to vector<8x16xi32>
    %327 = arith.sitofp %326 : vector<8x16xi32> to vector<8x16xf32>
    %328 = vector.extract_strided_slice %225 {offsets = [0, 8], sizes = [8, 1], strides = [1, 1]} : vector<8x16xf32> to vector<8x1xf32>
    %329 = vector.broadcast %328 : vector<8x1xf32> to vector<8x16xf32>
    %330 = arith.mulf %327, %329 : vector<8x16xf32>
    %331 = arith.addf %322, %330 : vector<8x16xf32>
    %332 = vector.extract_strided_slice %221 {offsets = [0, 9], sizes = [8, 1], strides = [1, 1]} : vector<8x16xi32> to vector<8x1xi32>
    %333 = vector.broadcast %332 : vector<8x1xi32> to vector<8x16xi32>
    %334 = arith.cmpi eq, %230, %333 : vector<8x16xi32>
    %335 = arith.extui %334 : vector<8x16xi1> to vector<8x16xi32>
    %336 = arith.sitofp %335 : vector<8x16xi32> to vector<8x16xf32>
    %337 = vector.extract_strided_slice %224 {offsets = [0, 9], sizes = [8, 1], strides = [1, 1]} : vector<8x16xf32> to vector<8x1xf32>
    %338 = vector.broadcast %337 : vector<8x1xf32> to vector<8x16xf32>
    %339 = arith.mulf %336, %338 : vector<8x16xf32>
    %340 = arith.addf %331, %339 : vector<8x16xf32>
    %341 = vector.extract_strided_slice %223 {offsets = [0, 9], sizes = [8, 1], strides = [1, 1]} : vector<8x16xi32> to vector<8x1xi32>
    %342 = vector.broadcast %341 : vector<8x1xi32> to vector<8x16xi32>
    %343 = arith.cmpi eq, %230, %342 : vector<8x16xi32>
    %344 = arith.extui %343 : vector<8x16xi1> to vector<8x16xi32>
    %345 = arith.sitofp %344 : vector<8x16xi32> to vector<8x16xf32>
    %346 = vector.extract_strided_slice %225 {offsets = [0, 9], sizes = [8, 1], strides = [1, 1]} : vector<8x16xf32> to vector<8x1xf32>
    %347 = vector.broadcast %346 : vector<8x1xf32> to vector<8x16xf32>
    %348 = arith.mulf %345, %347 : vector<8x16xf32>
    %349 = arith.addf %340, %348 : vector<8x16xf32>
    %c0_87 = arith.constant 0 : index
    %c16 = arith.constant 16 : index
    %350 = vector.load %arg20[%c0_87, %c16] : memref<24x32xbf16, #tpu.memory_space<vmem>>, vector<16x8xbf16>
    %351 = arith.truncf %349 : vector<8x16xf32> to vector<8x16xbf16>
    %cst_88 = arith.constant dense<0.000000e+00> : vector<8x8xf32>
    %352 = tpu.matmul %351, %350, %cst_88 {dimension_numbers = #tpu.dot_dimension_numbers<[1], [0], [0], [1], [0, 0, 1, 1], [], []>} : vector<8x16xbf16>, vector<16x8xbf16>, vector<8x8xf32> -> vector<8x8xf32>
    %353 = arith.addf %228, %352 : vector<8x8xf32>
    %cst_89 = arith.constant 0.000000e+00 : f32
    %354 = vector.broadcast %cst_89 : f32 to vector<8x16xf32>
    %355 = vector.extract_strided_slice %221 {offsets = [0, 12], sizes = [8, 1], strides = [1, 1]} : vector<8x16xi32> to vector<8x1xi32>
    %356 = vector.broadcast %355 : vector<8x1xi32> to vector<8x16xi32>
    %357 = arith.cmpi eq, %230, %356 : vector<8x16xi32>
    %358 = arith.extui %357 : vector<8x16xi1> to vector<8x16xi32>
    %359 = arith.sitofp %358 : vector<8x16xi32> to vector<8x16xf32>
    %360 = vector.extract_strided_slice %224 {offsets = [0, 12], sizes = [8, 1], strides = [1, 1]} : vector<8x16xf32> to vector<8x1xf32>
    %361 = vector.broadcast %360 : vector<8x1xf32> to vector<8x16xf32>
    %362 = arith.mulf %359, %361 : vector<8x16xf32>
    %363 = arith.addf %354, %362 : vector<8x16xf32>
    %364 = vector.extract_strided_slice %223 {offsets = [0, 12], sizes = [8, 1], strides = [1, 1]} : vector<8x16xi32> to vector<8x1xi32>
    %365 = vector.broadcast %364 : vector<8x1xi32> to vector<8x16xi32>
    %366 = arith.cmpi eq, %230, %365 : vector<8x16xi32>
    %367 = arith.extui %366 : vector<8x16xi1> to vector<8x16xi32>
    %368 = arith.sitofp %367 : vector<8x16xi32> to vector<8x16xf32>
    %369 = vector.extract_strided_slice %225 {offsets = [0, 12], sizes = [8, 1], strides = [1, 1]} : vector<8x16xf32> to vector<8x1xf32>
    %370 = vector.broadcast %369 : vector<8x1xf32> to vector<8x16xf32>
    %371 = arith.mulf %368, %370 : vector<8x16xf32>
    %372 = arith.addf %363, %371 : vector<8x16xf32>
    %373 = vector.extract_strided_slice %221 {offsets = [0, 13], sizes = [8, 1], strides = [1, 1]} : vector<8x16xi32> to vector<8x1xi32>
    %374 = vector.broadcast %373 : vector<8x1xi32> to vector<8x16xi32>
    %375 = arith.cmpi eq, %230, %374 : vector<8x16xi32>
    %376 = arith.extui %375 : vector<8x16xi1> to vector<8x16xi32>
    %377 = arith.sitofp %376 : vector<8x16xi32> to vector<8x16xf32>
    %378 = vector.extract_strided_slice %224 {offsets = [0, 13], sizes = [8, 1], strides = [1, 1]} : vector<8x16xf32> to vector<8x1xf32>
    %379 = vector.broadcast %378 : vector<8x1xf32> to vector<8x16xf32>
    %380 = arith.mulf %377, %379 : vector<8x16xf32>
    %381 = arith.addf %372, %380 : vector<8x16xf32>
    %382 = vector.extract_strided_slice %223 {offsets = [0, 13], sizes = [8, 1], strides = [1, 1]} : vector<8x16xi32> to vector<8x1xi32>
    %383 = vector.broadcast %382 : vector<8x1xi32> to vector<8x16xi32>
    %384 = arith.cmpi eq, %230, %383 : vector<8x16xi32>
    %385 = arith.extui %384 : vector<8x16xi1> to vector<8x16xi32>
    %386 = arith.sitofp %385 : vector<8x16xi32> to vector<8x16xf32>
    %387 = vector.extract_strided_slice %225 {offsets = [0, 13], sizes = [8, 1], strides = [1, 1]} : vector<8x16xf32> to vector<8x1xf32>
    %388 = vector.broadcast %387 : vector<8x1xf32> to vector<8x16xf32>
    %389 = arith.mulf %386, %388 : vector<8x16xf32>
    %390 = arith.addf %381, %389 : vector<8x16xf32>
    %c0_90 = arith.constant 0 : index
    %c24 = arith.constant 24 : index
    %391 = vector.load %arg20[%c0_90, %c24] : memref<24x32xbf16, #tpu.memory_space<vmem>>, vector<16x8xbf16>
    %392 = arith.truncf %390 : vector<8x16xf32> to vector<8x16xbf16>
    %cst_91 = arith.constant dense<0.000000e+00> : vector<8x8xf32>
    %393 = tpu.matmul %392, %391, %cst_91 {dimension_numbers = #tpu.dot_dimension_numbers<[1], [0], [0], [1], [0, 0, 1, 1], [], []>} : vector<8x16xbf16>, vector<16x8xbf16>, vector<8x8xf32> -> vector<8x8xf32>
    %394 = arith.addf %229, %393 : vector<8x8xf32>
    %395 = tpu.iota {dimensions = array<i32: 1>} : vector<8x8xi32>
    %cst_92 = arith.constant 0.000000e+00 : f32
    %396 = vector.broadcast %cst_92 : f32 to vector<8x8xf32>
    %397 = vector.extract_strided_slice %221 {offsets = [0, 2], sizes = [8, 1], strides = [1, 1]} : vector<8x16xi32> to vector<8x1xi32>
    %398 = vector.broadcast %397 : vector<8x1xi32> to vector<8x8xi32>
    %399 = arith.cmpi eq, %395, %398 : vector<8x8xi32>
    %400 = arith.extui %399 : vector<8x8xi1> to vector<8x8xi32>
    %401 = arith.sitofp %400 : vector<8x8xi32> to vector<8x8xf32>
    %402 = vector.extract_strided_slice %224 {offsets = [0, 2], sizes = [8, 1], strides = [1, 1]} : vector<8x16xf32> to vector<8x1xf32>
    %403 = vector.broadcast %402 : vector<8x1xf32> to vector<8x8xf32>
    %404 = arith.mulf %401, %403 : vector<8x8xf32>
    %405 = arith.addf %396, %404 : vector<8x8xf32>
    %406 = vector.extract_strided_slice %223 {offsets = [0, 2], sizes = [8, 1], strides = [1, 1]} : vector<8x16xi32> to vector<8x1xi32>
    %407 = vector.broadcast %406 : vector<8x1xi32> to vector<8x8xi32>
    %408 = arith.cmpi eq, %395, %407 : vector<8x8xi32>
    %409 = arith.extui %408 : vector<8x8xi1> to vector<8x8xi32>
    %410 = arith.sitofp %409 : vector<8x8xi32> to vector<8x8xf32>
    %411 = vector.extract_strided_slice %225 {offsets = [0, 2], sizes = [8, 1], strides = [1, 1]} : vector<8x16xf32> to vector<8x1xf32>
    %412 = vector.broadcast %411 : vector<8x1xf32> to vector<8x8xf32>
    %413 = arith.mulf %410, %412 : vector<8x8xf32>
    %414 = arith.addf %405, %413 : vector<8x8xf32>
    %415 = vector.extract_strided_slice %221 {offsets = [0, 3], sizes = [8, 1], strides = [1, 1]} : vector<8x16xi32> to vector<8x1xi32>
    %416 = vector.broadcast %415 : vector<8x1xi32> to vector<8x8xi32>
    %417 = arith.cmpi eq, %395, %416 : vector<8x8xi32>
    %418 = arith.extui %417 : vector<8x8xi1> to vector<8x8xi32>
    %419 = arith.sitofp %418 : vector<8x8xi32> to vector<8x8xf32>
    %420 = vector.extract_strided_slice %224 {offsets = [0, 3], sizes = [8, 1], strides = [1, 1]} : vector<8x16xf32> to vector<8x1xf32>
    %421 = vector.broadcast %420 : vector<8x1xf32> to vector<8x8xf32>
    %422 = arith.mulf %419, %421 : vector<8x8xf32>
    %423 = arith.addf %414, %422 : vector<8x8xf32>
    %424 = vector.extract_strided_slice %223 {offsets = [0, 3], sizes = [8, 1], strides = [1, 1]} : vector<8x16xi32> to vector<8x1xi32>
    %425 = vector.broadcast %424 : vector<8x1xi32> to vector<8x8xi32>
    %426 = arith.cmpi eq, %395, %425 : vector<8x8xi32>
    %427 = arith.extui %426 : vector<8x8xi1> to vector<8x8xi32>
    %428 = arith.sitofp %427 : vector<8x8xi32> to vector<8x8xf32>
    %429 = vector.extract_strided_slice %225 {offsets = [0, 3], sizes = [8, 1], strides = [1, 1]} : vector<8x16xf32> to vector<8x1xf32>
    %430 = vector.broadcast %429 : vector<8x1xf32> to vector<8x8xf32>
    %431 = arith.mulf %428, %430 : vector<8x8xf32>
    %432 = arith.addf %423, %431 : vector<8x8xf32>
    %c16_93 = arith.constant 16 : index
    %c0_94 = arith.constant 0 : index
    %433 = vector.load %arg20[%c16_93, %c0_94] : memref<24x32xbf16, #tpu.memory_space<vmem>>, vector<8x8xbf16>
    %434 = arith.truncf %432 : vector<8x8xf32> to vector<8x8xbf16>
    %cst_95 = arith.constant dense<0.000000e+00> : vector<8x8xf32>
    %435 = tpu.matmul %434, %433, %cst_95 {dimension_numbers = #tpu.dot_dimension_numbers<[1], [0], [0], [1], [0, 0, 1, 1], [], []>} : vector<8x8xbf16>, vector<8x8xbf16>, vector<8x8xf32> -> vector<8x8xf32>
    %436 = arith.addf %271, %435 : vector<8x8xf32>
    %cst_96 = arith.constant 0.000000e+00 : f32
    %437 = vector.broadcast %cst_96 : f32 to vector<8x8xf32>
    %438 = vector.extract_strided_slice %221 {offsets = [0, 6], sizes = [8, 1], strides = [1, 1]} : vector<8x16xi32> to vector<8x1xi32>
    %439 = vector.broadcast %438 : vector<8x1xi32> to vector<8x8xi32>
    %440 = arith.cmpi eq, %395, %439 : vector<8x8xi32>
    %441 = arith.extui %440 : vector<8x8xi1> to vector<8x8xi32>
    %442 = arith.sitofp %441 : vector<8x8xi32> to vector<8x8xf32>
    %443 = vector.extract_strided_slice %224 {offsets = [0, 6], sizes = [8, 1], strides = [1, 1]} : vector<8x16xf32> to vector<8x1xf32>
    %444 = vector.broadcast %443 : vector<8x1xf32> to vector<8x8xf32>
    %445 = arith.mulf %442, %444 : vector<8x8xf32>
    %446 = arith.addf %437, %445 : vector<8x8xf32>
    %447 = vector.extract_strided_slice %223 {offsets = [0, 6], sizes = [8, 1], strides = [1, 1]} : vector<8x16xi32> to vector<8x1xi32>
    %448 = vector.broadcast %447 : vector<8x1xi32> to vector<8x8xi32>
    %449 = arith.cmpi eq, %395, %448 : vector<8x8xi32>
    %450 = arith.extui %449 : vector<8x8xi1> to vector<8x8xi32>
    %451 = arith.sitofp %450 : vector<8x8xi32> to vector<8x8xf32>
    %452 = vector.extract_strided_slice %225 {offsets = [0, 6], sizes = [8, 1], strides = [1, 1]} : vector<8x16xf32> to vector<8x1xf32>
    %453 = vector.broadcast %452 : vector<8x1xf32> to vector<8x8xf32>
    %454 = arith.mulf %451, %453 : vector<8x8xf32>
    %455 = arith.addf %446, %454 : vector<8x8xf32>
    %456 = vector.extract_strided_slice %221 {offsets = [0, 7], sizes = [8, 1], strides = [1, 1]} : vector<8x16xi32> to vector<8x1xi32>
    %457 = vector.broadcast %456 : vector<8x1xi32> to vector<8x8xi32>
    %458 = arith.cmpi eq, %395, %457 : vector<8x8xi32>
    %459 = arith.extui %458 : vector<8x8xi1> to vector<8x8xi32>
    %460 = arith.sitofp %459 : vector<8x8xi32> to vector<8x8xf32>
    %461 = vector.extract_strided_slice %224 {offsets = [0, 7], sizes = [8, 1], strides = [1, 1]} : vector<8x16xf32> to vector<8x1xf32>
    %462 = vector.broadcast %461 : vector<8x1xf32> to vector<8x8xf32>
    %463 = arith.mulf %460, %462 : vector<8x8xf32>
    %464 = arith.addf %455, %463 : vector<8x8xf32>
    %465 = vector.extract_strided_slice %223 {offsets = [0, 7], sizes = [8, 1], strides = [1, 1]} : vector<8x16xi32> to vector<8x1xi32>
    %466 = vector.broadcast %465 : vector<8x1xi32> to vector<8x8xi32>
    %467 = arith.cmpi eq, %395, %466 : vector<8x8xi32>
    %468 = arith.extui %467 : vector<8x8xi1> to vector<8x8xi32>
    %469 = arith.sitofp %468 : vector<8x8xi32> to vector<8x8xf32>
    %470 = vector.extract_strided_slice %225 {offsets = [0, 7], sizes = [8, 1], strides = [1, 1]} : vector<8x16xf32> to vector<8x1xf32>
    %471 = vector.broadcast %470 : vector<8x1xf32> to vector<8x8xf32>
    %472 = arith.mulf %469, %471 : vector<8x8xf32>
    %473 = arith.addf %464, %472 : vector<8x8xf32>
    %c16_97 = arith.constant 16 : index
    %c8_98 = arith.constant 8 : index
    %474 = vector.load %arg20[%c16_97, %c8_98] : memref<24x32xbf16, #tpu.memory_space<vmem>>, vector<8x8xbf16>
    %475 = arith.truncf %473 : vector<8x8xf32> to vector<8x8xbf16>
    %cst_99 = arith.constant dense<0.000000e+00> : vector<8x8xf32>
    %476 = tpu.matmul %475, %474, %cst_99 {dimension_numbers = #tpu.dot_dimension_numbers<[1], [0], [0], [1], [0, 0, 1, 1], [], []>} : vector<8x8xbf16>, vector<8x8xbf16>, vector<8x8xf32> -> vector<8x8xf32>
    %477 = arith.addf %312, %476 : vector<8x8xf32>
    %cst_100 = arith.constant 0.000000e+00 : f32
    %478 = vector.broadcast %cst_100 : f32 to vector<8x8xf32>
    %479 = vector.extract_strided_slice %221 {offsets = [0, 10], sizes = [8, 1], strides = [1, 1]} : vector<8x16xi32> to vector<8x1xi32>
    %480 = vector.broadcast %479 : vector<8x1xi32> to vector<8x8xi32>
    %481 = arith.cmpi eq, %395, %480 : vector<8x8xi32>
    %482 = arith.extui %481 : vector<8x8xi1> to vector<8x8xi32>
    %483 = arith.sitofp %482 : vector<8x8xi32> to vector<8x8xf32>
    %484 = vector.extract_strided_slice %224 {offsets = [0, 10], sizes = [8, 1], strides = [1, 1]} : vector<8x16xf32> to vector<8x1xf32>
    %485 = vector.broadcast %484 : vector<8x1xf32> to vector<8x8xf32>
    %486 = arith.mulf %483, %485 : vector<8x8xf32>
    %487 = arith.addf %478, %486 : vector<8x8xf32>
    %488 = vector.extract_strided_slice %223 {offsets = [0, 10], sizes = [8, 1], strides = [1, 1]} : vector<8x16xi32> to vector<8x1xi32>
    %489 = vector.broadcast %488 : vector<8x1xi32> to vector<8x8xi32>
    %490 = arith.cmpi eq, %395, %489 : vector<8x8xi32>
    %491 = arith.extui %490 : vector<8x8xi1> to vector<8x8xi32>
    %492 = arith.sitofp %491 : vector<8x8xi32> to vector<8x8xf32>
    %493 = vector.extract_strided_slice %225 {offsets = [0, 10], sizes = [8, 1], strides = [1, 1]} : vector<8x16xf32> to vector<8x1xf32>
    %494 = vector.broadcast %493 : vector<8x1xf32> to vector<8x8xf32>
    %495 = arith.mulf %492, %494 : vector<8x8xf32>
    %496 = arith.addf %487, %495 : vector<8x8xf32>
    %497 = vector.extract_strided_slice %221 {offsets = [0, 11], sizes = [8, 1], strides = [1, 1]} : vector<8x16xi32> to vector<8x1xi32>
    %498 = vector.broadcast %497 : vector<8x1xi32> to vector<8x8xi32>
    %499 = arith.cmpi eq, %395, %498 : vector<8x8xi32>
    %500 = arith.extui %499 : vector<8x8xi1> to vector<8x8xi32>
    %501 = arith.sitofp %500 : vector<8x8xi32> to vector<8x8xf32>
    %502 = vector.extract_strided_slice %224 {offsets = [0, 11], sizes = [8, 1], strides = [1, 1]} : vector<8x16xf32> to vector<8x1xf32>
    %503 = vector.broadcast %502 : vector<8x1xf32> to vector<8x8xf32>
    %504 = arith.mulf %501, %503 : vector<8x8xf32>
    %505 = arith.addf %496, %504 : vector<8x8xf32>
    %506 = vector.extract_strided_slice %223 {offsets = [0, 11], sizes = [8, 1], strides = [1, 1]} : vector<8x16xi32> to vector<8x1xi32>
    %507 = vector.broadcast %506 : vector<8x1xi32> to vector<8x8xi32>
    %508 = arith.cmpi eq, %395, %507 : vector<8x8xi32>
    %509 = arith.extui %508 : vector<8x8xi1> to vector<8x8xi32>
    %510 = arith.sitofp %509 : vector<8x8xi32> to vector<8x8xf32>
    %511 = vector.extract_strided_slice %225 {offsets = [0, 11], sizes = [8, 1], strides = [1, 1]} : vector<8x16xf32> to vector<8x1xf32>
    %512 = vector.broadcast %511 : vector<8x1xf32> to vector<8x8xf32>
    %513 = arith.mulf %510, %512 : vector<8x8xf32>
    %514 = arith.addf %505, %513 : vector<8x8xf32>
    %c16_101 = arith.constant 16 : index
    %c16_102 = arith.constant 16 : index
    %515 = vector.load %arg20[%c16_101, %c16_102] : memref<24x32xbf16, #tpu.memory_space<vmem>>, vector<8x8xbf16>
    %516 = arith.truncf %514 : vector<8x8xf32> to vector<8x8xbf16>
    %cst_103 = arith.constant dense<0.000000e+00> : vector<8x8xf32>
    %517 = tpu.matmul %516, %515, %cst_103 {dimension_numbers = #tpu.dot_dimension_numbers<[1], [0], [0], [1], [0, 0, 1, 1], [], []>} : vector<8x8xbf16>, vector<8x8xbf16>, vector<8x8xf32> -> vector<8x8xf32>
    %518 = arith.addf %353, %517 : vector<8x8xf32>
    %cst_104 = arith.constant 0.000000e+00 : f32
    %519 = vector.broadcast %cst_104 : f32 to vector<8x8xf32>
    %520 = vector.extract_strided_slice %221 {offsets = [0, 14], sizes = [8, 1], strides = [1, 1]} : vector<8x16xi32> to vector<8x1xi32>
    %521 = vector.broadcast %520 : vector<8x1xi32> to vector<8x8xi32>
    %522 = arith.cmpi eq, %395, %521 : vector<8x8xi32>
    %523 = arith.extui %522 : vector<8x8xi1> to vector<8x8xi32>
    %524 = arith.sitofp %523 : vector<8x8xi32> to vector<8x8xf32>
    %525 = vector.extract_strided_slice %224 {offsets = [0, 14], sizes = [8, 1], strides = [1, 1]} : vector<8x16xf32> to vector<8x1xf32>
    %526 = vector.broadcast %525 : vector<8x1xf32> to vector<8x8xf32>
    %527 = arith.mulf %524, %526 : vector<8x8xf32>
    %528 = arith.addf %519, %527 : vector<8x8xf32>
    %529 = vector.extract_strided_slice %223 {offsets = [0, 14], sizes = [8, 1], strides = [1, 1]} : vector<8x16xi32> to vector<8x1xi32>
    %530 = vector.broadcast %529 : vector<8x1xi32> to vector<8x8xi32>
    %531 = arith.cmpi eq, %395, %530 : vector<8x8xi32>
    %532 = arith.extui %531 : vector<8x8xi1> to vector<8x8xi32>
    %533 = arith.sitofp %532 : vector<8x8xi32> to vector<8x8xf32>
    %534 = vector.extract_strided_slice %225 {offsets = [0, 14], sizes = [8, 1], strides = [1, 1]} : vector<8x16xf32> to vector<8x1xf32>
    %535 = vector.broadcast %534 : vector<8x1xf32> to vector<8x8xf32>
    %536 = arith.mulf %533, %535 : vector<8x8xf32>
    %537 = arith.addf %528, %536 : vector<8x8xf32>
    %538 = vector.extract_strided_slice %221 {offsets = [0, 15], sizes = [8, 1], strides = [1, 1]} : vector<8x16xi32> to vector<8x1xi32>
    %539 = vector.broadcast %538 : vector<8x1xi32> to vector<8x8xi32>
    %540 = arith.cmpi eq, %395, %539 : vector<8x8xi32>
    %541 = arith.extui %540 : vector<8x8xi1> to vector<8x8xi32>
    %542 = arith.sitofp %541 : vector<8x8xi32> to vector<8x8xf32>
    %543 = vector.extract_strided_slice %224 {offsets = [0, 15], sizes = [8, 1], strides = [1, 1]} : vector<8x16xf32> to vector<8x1xf32>
    %544 = vector.broadcast %543 : vector<8x1xf32> to vector<8x8xf32>
    %545 = arith.mulf %542, %544 : vector<8x8xf32>
    %546 = arith.addf %537, %545 : vector<8x8xf32>
    %547 = vector.extract_strided_slice %223 {offsets = [0, 15], sizes = [8, 1], strides = [1, 1]} : vector<8x16xi32> to vector<8x1xi32>
    %548 = vector.broadcast %547 : vector<8x1xi32> to vector<8x8xi32>
    %549 = arith.cmpi eq, %395, %548 : vector<8x8xi32>
    %550 = arith.extui %549 : vector<8x8xi1> to vector<8x8xi32>
    %551 = arith.sitofp %550 : vector<8x8xi32> to vector<8x8xf32>
    %552 = vector.extract_strided_slice %225 {offsets = [0, 15], sizes = [8, 1], strides = [1, 1]} : vector<8x16xf32> to vector<8x1xf32>
    %553 = vector.broadcast %552 : vector<8x1xf32> to vector<8x8xf32>
    %554 = arith.mulf %551, %553 : vector<8x8xf32>
    %555 = arith.addf %546, %554 : vector<8x8xf32>
    %c16_105 = arith.constant 16 : index
    %c24_106 = arith.constant 24 : index
    %556 = vector.load %arg20[%c16_105, %c24_106] : memref<24x32xbf16, #tpu.memory_space<vmem>>, vector<8x8xbf16>
    %557 = arith.truncf %555 : vector<8x8xf32> to vector<8x8xbf16>
    %cst_107 = arith.constant dense<0.000000e+00> : vector<8x8xf32>
    %558 = tpu.matmul %557, %556, %cst_107 {dimension_numbers = #tpu.dot_dimension_numbers<[1], [0], [0], [1], [0, 0, 1, 1], [], []>} : vector<8x8xbf16>, vector<8x8xbf16>, vector<8x8xf32> -> vector<8x8xf32>
    %559 = arith.addf %394, %558 : vector<8x8xf32>
    %560 = tpu.concatenate %436, %477, %518, %559 in 1 : vector<8x8xf32>, vector<8x8xf32>, vector<8x8xf32>, vector<8x8xf32> -> vector<8x32xf32>
    %c0_108 = arith.constant 0 : index
    %c0_109 = arith.constant 0 : index
    %c0_110 = arith.constant 0 : index
    %561 = vector.load %arg13[%c0_108, %c0_109, %c0_110] : memref<1x32x32xbf16, #tpu.memory_space<vmem>>, vector<1x32x32xbf16>
    %562 = vector.shape_cast %561 : vector<1x32x32xbf16> to vector<32x32xbf16>
    %563 = vector.extract_strided_slice %7 {offsets = [5, 0], sizes = [1, 32], strides = [1, 1]} : vector<11x32xf32> to vector<1x32xf32>
    %564 = arith.truncf %560 : vector<8x32xf32> to vector<8x32xbf16>
    %cst_111 = arith.constant dense<0.000000e+00> : vector<8x32xf32>
    %565 = tpu.matmul %564, %562, %cst_111 {dimension_numbers = #tpu.dot_dimension_numbers<[1], [0], [0], [1], [0, 0, 1, 1], [], []>} : vector<8x32xbf16>, vector<32x32xbf16>, vector<8x32xf32> -> vector<8x32xf32>
    %566 = vector.broadcast %563 : vector<1x32xf32> to vector<8x32xf32>
    %567 = arith.addf %565, %566 : vector<8x32xf32>
    %568 = arith.addf %129, %567 : vector<8x32xf32>
    %569 = vector.extract_strided_slice %7 {offsets = [6, 0], sizes = [1, 32], strides = [1, 1]} : vector<11x32xf32> to vector<1x32xf32>
    %570 = vector.extract_strided_slice %7 {offsets = [7, 0], sizes = [1, 32], strides = [1, 1]} : vector<11x32xf32> to vector<1x32xf32>
    %cst_112 = arith.constant dense<0.000000e+00> : vector<8xf32>
    %571 = vector.multi_reduction <add>, %568, %cst_112 [1] : vector<8x32xf32> to vector<8xf32>
    %572 = vector.shape_cast %571 : vector<8xf32> to vector<8x1xf32>
    %cst_113 = arith.constant 3.200000e+01 : f32
    %573 = vector.broadcast %cst_113 : f32 to vector<8x1xf32>
    %574 = arith.divf %572, %573 : vector<8x1xf32>
    %575 = vector.broadcast %574 : vector<8x1xf32> to vector<8x32xf32>
    %576 = arith.subf %568, %575 : vector<8x32xf32>
    %577 = arith.mulf %576, %576 : vector<8x32xf32>
    %cst_114 = arith.constant dense<0.000000e+00> : vector<8xf32>
    %578 = vector.multi_reduction <add>, %577, %cst_114 [1] : vector<8x32xf32> to vector<8xf32>
    %579 = vector.shape_cast %578 : vector<8xf32> to vector<8x1xf32>
    %cst_115 = arith.constant 3.200000e+01 : f32
    %580 = vector.broadcast %cst_115 : f32 to vector<8x1xf32>
    %581 = arith.divf %579, %580 : vector<8x1xf32>
    %582 = vector.broadcast %574 : vector<8x1xf32> to vector<8x32xf32>
    %583 = arith.subf %568, %582 : vector<8x32xf32>
    %cst_116 = arith.constant 9.99999974E-6 : f32
    %584 = vector.broadcast %cst_116 : f32 to vector<8x1xf32>
    %585 = arith.addf %581, %584 : vector<8x1xf32>
    %586 = math.rsqrt %585 : vector<8x1xf32>
    %587 = vector.broadcast %586 : vector<8x1xf32> to vector<8x32xf32>
    %588 = arith.mulf %583, %587 : vector<8x32xf32>
    %589 = vector.broadcast %569 : vector<1x32xf32> to vector<8x32xf32>
    %590 = arith.mulf %588, %589 : vector<8x32xf32>
    %591 = vector.broadcast %570 : vector<1x32xf32> to vector<8x32xf32>
    %592 = arith.addf %590, %591 : vector<8x32xf32>
    %c0_117 = arith.constant 0 : index
    %c0_118 = arith.constant 0 : index
    %c0_119 = arith.constant 0 : index
    %593 = vector.load %arg14[%c0_117, %c0_118, %c0_119] : memref<1x32x64xbf16, #tpu.memory_space<vmem>>, vector<1x32x64xbf16>
    %594 = vector.shape_cast %593 : vector<1x32x64xbf16> to vector<32x64xbf16>
    %595 = vector.extract_strided_slice %9 {offsets = [0, 96], sizes = [1, 64], strides = [1, 1]} : vector<1x160xf32> to vector<1x64xf32>
    %596 = arith.truncf %592 : vector<8x32xf32> to vector<8x32xbf16>
    %cst_120 = arith.constant dense<0.000000e+00> : vector<8x64xf32>
    %597 = tpu.matmul %596, %594, %cst_120 {dimension_numbers = #tpu.dot_dimension_numbers<[1], [0], [0], [1], [0, 0, 1, 1], [], []>} : vector<8x32xbf16>, vector<32x64xbf16>, vector<8x64xf32> -> vector<8x64xf32>
    %598 = vector.broadcast %595 : vector<1x64xf32> to vector<8x64xf32>
    %599 = arith.addf %597, %598 : vector<8x64xf32>
    %cst_121 = arith.constant 0.000000e+00 : f32
    %600 = vector.broadcast %cst_121 : f32 to vector<8x64xf32>
    %601 = arith.maximumf %599, %600 : vector<8x64xf32>
    %c0_122 = arith.constant 0 : index
    %c0_123 = arith.constant 0 : index
    %c0_124 = arith.constant 0 : index
    %602 = vector.load %arg15[%c0_122, %c0_123, %c0_124] : memref<1x64x32xbf16, #tpu.memory_space<vmem>>, vector<1x64x32xbf16>
    %603 = vector.shape_cast %602 : vector<1x64x32xbf16> to vector<64x32xbf16>
    %604 = vector.extract_strided_slice %7 {offsets = [8, 0], sizes = [1, 32], strides = [1, 1]} : vector<11x32xf32> to vector<1x32xf32>
    %605 = arith.truncf %601 : vector<8x64xf32> to vector<8x64xbf16>
    %cst_125 = arith.constant dense<0.000000e+00> : vector<8x32xf32>
    %606 = tpu.matmul %605, %603, %cst_125 {dimension_numbers = #tpu.dot_dimension_numbers<[1], [0], [0], [1], [0, 0, 1, 1], [], []>} : vector<8x64xbf16>, vector<64x32xbf16>, vector<8x32xf32> -> vector<8x32xf32>
    %607 = vector.broadcast %604 : vector<1x32xf32> to vector<8x32xf32>
    %608 = arith.addf %606, %607 : vector<8x32xf32>
    %609 = arith.addf %592, %608 : vector<8x32xf32>
    %610 = vector.extract_strided_slice %7 {offsets = [9, 0], sizes = [1, 32], strides = [1, 1]} : vector<11x32xf32> to vector<1x32xf32>
    %611 = vector.extract_strided_slice %7 {offsets = [10, 0], sizes = [1, 32], strides = [1, 1]} : vector<11x32xf32> to vector<1x32xf32>
    %cst_126 = arith.constant dense<0.000000e+00> : vector<8xf32>
    %612 = vector.multi_reduction <add>, %609, %cst_126 [1] : vector<8x32xf32> to vector<8xf32>
    %613 = vector.shape_cast %612 : vector<8xf32> to vector<8x1xf32>
    %cst_127 = arith.constant 3.200000e+01 : f32
    %614 = vector.broadcast %cst_127 : f32 to vector<8x1xf32>
    %615 = arith.divf %613, %614 : vector<8x1xf32>
    %616 = vector.broadcast %615 : vector<8x1xf32> to vector<8x32xf32>
    %617 = arith.subf %609, %616 : vector<8x32xf32>
    %618 = arith.mulf %617, %617 : vector<8x32xf32>
    %cst_128 = arith.constant dense<0.000000e+00> : vector<8xf32>
    %619 = vector.multi_reduction <add>, %618, %cst_128 [1] : vector<8x32xf32> to vector<8xf32>
    %620 = vector.shape_cast %619 : vector<8xf32> to vector<8x1xf32>
    %cst_129 = arith.constant 3.200000e+01 : f32
    %621 = vector.broadcast %cst_129 : f32 to vector<8x1xf32>
    %622 = arith.divf %620, %621 : vector<8x1xf32>
    %623 = vector.broadcast %615 : vector<8x1xf32> to vector<8x32xf32>
    %624 = arith.subf %609, %623 : vector<8x32xf32>
    %cst_130 = arith.constant 9.99999974E-6 : f32
    %625 = vector.broadcast %cst_130 : f32 to vector<8x1xf32>
    %626 = arith.addf %622, %625 : vector<8x1xf32>
    %627 = math.rsqrt %626 : vector<8x1xf32>
    %628 = vector.broadcast %627 : vector<8x1xf32> to vector<8x32xf32>
    %629 = arith.mulf %624, %628 : vector<8x32xf32>
    %630 = vector.broadcast %610 : vector<1x32xf32> to vector<8x32xf32>
    %631 = arith.mulf %629, %630 : vector<8x32xf32>
    %632 = vector.broadcast %611 : vector<1x32xf32> to vector<8x32xf32>
    %633 = arith.addf %631, %632 : vector<8x32xf32>
    %c0_131 = arith.constant 0 : index
    %c0_132 = arith.constant 0 : index
    %634 = vector.load %arg19[%c0_131, %c0_132] : memref<8x32xf32, #tpu.memory_space<vmem>>, vector<8x32xf32>
    tpu.vector_store %arg19[%c0_131, %c0_132], %633 {strides = array<i32>} : memref<8x32xf32, #tpu.memory_space<vmem>>, vector<8x32xf32>,
    %c0_133 = arith.constant 0 : index
    %c0_134 = arith.constant 0 : index
    %c0_135 = arith.constant 0 : index
    %635 = vector.load %arg18[%c0_133, %c0_134, %c0_135] : memref<1x8x32xf32, #tpu.memory_space<vmem>>, vector<1x8x32xf32>
    %636 = vector.shape_cast %635 : vector<1x8x32xf32> to vector<8x32xf32>
    %637 = vector.shape_cast %633 : vector<8x32xf32> to vector<1x8x32xf32>
    tpu.vector_store %arg18[%c0_133, %c0_134, %c0_135], %637 {strides = array<i32>} : memref<1x8x32xf32, #tpu.memory_space<vmem>>, vector<1x8x32xf32>,
    return
  }
  func.func @transform_0(%arg0: i32, %arg1: i32) -> (i32, i32, i32) {
    %c0_i32 = arith.constant 0 : i32
    %c0_i32_0 = arith.constant 0 : i32
    %c0_i32_1 = arith.constant 0 : i32
    return %arg0, %c0_i32, %c0_i32_0 : i32, i32, i32
  }
  func.func @transform_1(%arg0: i32, %arg1: i32) -> (i32, i32, i32) {
    %c0_i32 = arith.constant 0 : i32
    %c0_i32_0 = arith.constant 0 : i32
    %c0_i32_1 = arith.constant 0 : i32
    return %arg0, %c0_i32, %c0_i32_0 : i32, i32, i32
  }
  func.func @transform_2(%arg0: i32, %arg1: i32) -> (i32, i32, i32) {
    %c0_i32 = arith.constant 0 : i32
    %c0_i32_0 = arith.constant 0 : i32
    %c0_i32_1 = arith.constant 0 : i32
    return %arg0, %c0_i32, %c0_i32_0 : i32, i32, i32
  }
  func.func @transform_3(%arg0: i32, %arg1: i32) -> (i32, i32, i32) {
    %c0_i32 = arith.constant 0 : i32
    %c0_i32_0 = arith.constant 0 : i32
    %c0_i32_1 = arith.constant 0 : i32
    return %arg0, %c0_i32, %c0_i32_0 : i32, i32, i32
  }
  func.func @transform_4(%arg0: i32, %arg1: i32) -> (i32, i32, i32) {
    %c0_i32 = arith.constant 0 : i32
    %c0_i32_0 = arith.constant 0 : i32
    %c0_i32_1 = arith.constant 0 : i32
    return %arg0, %c0_i32, %c0_i32_0 : i32, i32, i32
  }
  func.func @transform_5(%arg0: i32, %arg1: i32) -> (i32, i32) {
    %c0_i32 = arith.constant 0 : i32
    %c0_i32_0 = arith.constant 0 : i32
    %c0_i32_1 = arith.constant 0 : i32
    return %c0_i32, %c0_i32_0 : i32, i32
  }
  func.func @transform_6(%arg0: i32, %arg1: i32) -> (i32, i32, i32) {
    %c0_i32 = arith.constant 0 : i32
    %c0_i32_0 = arith.constant 0 : i32
    %c0_i32_1 = arith.constant 0 : i32
    return %arg1, %c0_i32, %c0_i32_0 : i32, i32, i32
  }
  func.func @transform_7(%arg0: i32, %arg1: i32) -> (i32, i32, i32) {
    %c0_i32 = arith.constant 0 : i32
    %c0_i32_0 = arith.constant 0 : i32
    %c0_i32_1 = arith.constant 0 : i32
    return %arg1, %c0_i32, %c0_i32_0 : i32, i32, i32
  }
  func.func @transform_8(%arg0: i32, %arg1: i32) -> (i32, i32, i32) {
    %c0_i32 = arith.constant 0 : i32
    %c0_i32_0 = arith.constant 0 : i32
    %c0_i32_1 = arith.constant 0 : i32
    return %arg1, %c0_i32, %c0_i32_0 : i32, i32, i32
  }
  func.func @transform_9(%arg0: i32, %arg1: i32) -> (i32, i32, i32) {
    %c0_i32 = arith.constant 0 : i32
    %c0_i32_0 = arith.constant 0 : i32
    %c0_i32_1 = arith.constant 0 : i32
    return %arg1, %c0_i32, %c0_i32_0 : i32, i32, i32
  }
  func.func @transform_10(%arg0: i32, %arg1: i32) -> (i32, i32, i32) {
    %c0_i32 = arith.constant 0 : i32
    %c0_i32_0 = arith.constant 0 : i32
    %c0_i32_1 = arith.constant 0 : i32
    return %arg1, %c0_i32, %c0_i32_0 : i32, i32, i32
  }
  func.func @transform_11(%arg0: i32, %arg1: i32) -> (i32, i32, i32) {
    %c0_i32 = arith.constant 0 : i32
    %c0_i32_0 = arith.constant 0 : i32
    %c0_i32_1 = arith.constant 0 : i32
    return %arg1, %c0_i32, %c0_i32_0 : i32, i32, i32
  }
  func.func @transform_12(%arg0: i32, %arg1: i32) -> (i32, i32, i32) {
    %c0_i32 = arith.constant 0 : i32
    %c0_i32_0 = arith.constant 0 : i32
    %c0_i32_1 = arith.constant 0 : i32
    return %arg1, %c0_i32, %c0_i32_0 : i32, i32, i32
  }
  func.func @transform_13(%arg0: i32, %arg1: i32) -> (i32, i32, i32) {
    %c0_i32 = arith.constant 0 : i32
    %c0_i32_0 = arith.constant 0 : i32
    %c0_i32_1 = arith.constant 0 : i32
    return %arg1, %c0_i32, %c0_i32_0 : i32, i32, i32
  }
  func.func @transform_14(%arg0: i32, %arg1: i32) -> (i32, i32, i32) {
    %c0_i32 = arith.constant 0 : i32
    %c0_i32_0 = arith.constant 0 : i32
    %c0_i32_1 = arith.constant 0 : i32
    return %arg1, %c0_i32, %c0_i32_0 : i32, i32, i32
  }
  func.func @transform_15(%arg0: i32, %arg1: i32) -> (i32, i32, i32) {
    %c0_i32 = arith.constant 0 : i32
    %c0_i32_0 = arith.constant 0 : i32
    %c0_i32_1 = arith.constant 0 : i32
    return %arg1, %c0_i32, %c0_i32_0 : i32, i32, i32
  }
  func.func @transform_16(%arg0: i32, %arg1: i32) -> (i32, i32, i32) {
    %c0_i32 = arith.constant 0 : i32
    %c0_i32_0 = arith.constant 0 : i32
    %c0_i32_1 = arith.constant 0 : i32
    return %arg0, %c0_i32, %c0_i32_0 : i32, i32, i32
  }
}

</mosaic_0001>

<bundles_post_ra>
// kernel: _lambda_.1
= control target key start
LH: loop header
LB: loop body
LE: loop exit
PB: predicated region body
PF: predicated region fallthrough
CT: control target
= control target key end

     0   :  { %s4732_s0 = inlined_call_operand.vmem [shape: f32[2,8,32], index: 0, kind: input, shape index: {}]   ;;  %s4733_s1 = inlined_call_operand.vmem [shape: f32[2,8,32], index: 1, kind: input, shape index: {}]   ;;  %s4734_s2 = inlined_call_operand.vmem [shape: f32[2,8,2], index: 2, kind: input, shape index: {}]   ;;  %s4735_s3 = inlined_call_operand.vmem [shape: bf16[2,24,32], index: 3, kind: input, shape index: {}]   ;;  %s4736_s4 = inlined_call_operand.vmem [shape: f32[2,24,1], index: 4, kind: input, shape index: {}]   ;;  %s4737_s5 = inlined_call_operand.vmem [shape: f32[2,16], index: 5, kind: input, shape index: {}]   ;;  %s4738_s6 = inlined_call_operand.vmem [shape: bf16[2,32,64], index: 6, kind: input, shape index: {}]   ;;  %s4739_s7 = inlined_call_operand.vmem [shape: bf16[2,32,32], index: 7, kind: input, shape index: {}]   ;;  %s4740_s8 = inlined_call_operand.vmem [shape: bf16[2,32,32], index: 8, kind: input, shape index: {}]   ;;  %s4741_s9 = inlined_call_operand.vmem [shape: bf16[2,32,32], index: 9, kind: input, shape index: {}]   ;;  %s4742_s10 = inlined_call_operand.vmem [shape: bf16[2,32,32], index: 10, kind: input, shape index: {}]   ;;  %s4743_s11 = inlined_call_operand.vmem [shape: bf16[2,32,32], index: 11, kind: input, shape index: {}]   ;;  %s4744_s12 = inlined_call_operand.vmem [shape: bf16[2,32,64], index: 12, kind: input, shape index: {}]   ;;  %s4745_s13 = inlined_call_operand.vmem [shape: bf16[2,64,32], index: 13, kind: input, shape index: {}]   ;;  %s4746_s14 = inlined_call_operand.vmem [shape: f32[2,11,32], index: 14, kind: input, shape index: {}]   ;;  %s4747_s15 = inlined_call_operand.vmem [shape: f32[2,1,160], index: 15, kind: input, shape index: {}]   ;;  %s4748_s16 = inlined_call_operand.hbm [shape: f32[2,8,32], index: 16, kind: output, shape index: {}]  }
   0x1   :  { %4766 = sst [smem:[#allocation22_spill]] %s4732_s0 }
   0x2   :  { %4767 = sst [smem:[#allocation23_spill]] %s4735_s3 }
   0x3   :  { %4768 = sst [smem:[#allocation24_spill]] %s4736_s4 }
   0x4   :  { %4769 = sst [smem:[#allocation25_spill]] %s4737_s5 }
   0x5   :  { %4770 = sst [smem:[#allocation26_spill]] %s4738_s6 }
   0x6   :  { %4771 = sst [smem:[#allocation27_spill]] %s4739_s7 }
   0x7   :  { %4772 = sst [smem:[#allocation28_spill]] %s4740_s8 }
   0x8   :  { %4773 = sst [smem:[#allocation29_spill]] %s4741_s9 }
   0x9   :  { %4774 = sst [smem:[#allocation30_spill]] %s4742_s10 }
   0xa   :  { %4775 = sst [smem:[#allocation31_spill]] %s4743_s11 }
   0xb   :  { %4776 = sst [smem:[#allocation32_spill]] %s4744_s12 }
   0xc   :  { %4777 = sst [smem:[#allocation33_spill]] %s4745_s13 }
   0xd   :  { %4778 = sst [smem:[#allocation34_spill]] %s4746_s14 }
   0xe   :  { %4779 = sst [smem:[#allocation35_spill]] %s4747_s15 }
   0xf   :  { %4780 = sst [smem:[#allocation36_spill]] %s4748_s16 }
  0x10   :  { %21 = vsyncpa [#allocation5], 0 }
  0x11   :  { %23 = vsyncpa [#allocation5 + $0x1], 0  ;;  %s3915_s21 = smov 0   ;;  %s3917_s22 = smov 0  }
  0x12   :  { %s3919_s23 = smov 0   ;;  %s3921_s24 = smov 0  }
  0x13   :  { %s3923_s25 = smov 0   ;;  %s3925_s26 = smov 0  }
  0x14   :  { %s3927_s27 = smov 0   ;;  %s3929_s28 = smov 0  }
  0x15 LB: > { %4781 = sst [smem:[#allocation7_spill]] %s3767_s21  ;;  %s3109_s29 = sadd.s32 4294967295, %s3795_s28   ;;  %s3795_s28 = sphi %s3929_s28, %s29_s28   ;;  %s3791_s27 = sphi %s3927_s27, %s4832_s27   ;;  %s3787_s26 = sphi %s3925_s26, %s4831_s26   ;;  %s3783_s25 = sphi %s3923_s25, %s4830_s25   ;;  %s3779_s24 = sphi %s3921_s24, %s4829_s24   ;;  %s3775_s23 = sphi %s3919_s23, %s4828_s23   ;;  %s3771_s22 = sphi %s3917_s22, %s4827_s22   ;;  %s3767_s21 = sphi %s3915_s21, %s4826_s21  }
  0x16   : > { %4782 = sst [smem:[#allocation8_spill]] %s3771_s22  ;;  %s3110_s30 = sadd.s32 4294967294, %s3795_s28  }
  0x17   : > { %4783 = sst [smem:[#allocation9_spill]] %s3775_s23  ;;  %s38_s0 = sadd.s32 1, %s3787_s26 }
  0x18   : > { %4784 = sst [smem:[#allocation10_spill]] %s3779_s24  ;;  %p39_p0 = scmp.ge.s32.totalorder %s38_s0, 2 }
  0x19   : > { %4785 = sst [smem:[#allocation11_spill]] %s3783_s25  ;;  %s41_s17 = sadd.s32 1, %s3791_s27 }
  0x1a   : > { %4786 = sst [smem:[#allocation12_spill]] %s3787_s26  ;;  %p469_p1 = scmp.ne.s32.totalorder %s3775_s23, %s3771_s22 }
  0x1b   : > { %4787 = sst [smem:[#allocation13_spill]] %s3791_s27  ;;  %p470_p2 = scmp.eq.s32.totalorder %s3109_s29, 3 }
  0x1c   : > { %4788 = sst [smem:[#allocation14_spill]] %s3795_s28  ;;  %s4834_s0 = smov (%p39_p0, %s38_s0), 0 }
  0x1d   : > { %4789 = sst [smem:[#allocation15_spill]] %s4834_s0  ;;  %s4836_s17 = smov (!%p39_p0, %s41_s17), %s3791_s27 }
  0x1e   : > { %p3964_p3 = por %p470_p2, %p469_p1  ;;  %p475_p4 = scmp.ne.s32.totalorder %s3771_s22, %s3767_s21 }
  0x1f   : > { %p43_p5 = scmp.ge.s32.totalorder %s4836_s17, 2  ;;  %p476_p6 = scmp.eq.s32.totalorder %s3110_s30, 3 }
  0x20   : > { %s4790_s18 = scalar_select %p3964_p3, 1, 0 }
  0x21   : > { %p3113_p7 = scmp.ge.s32.totalorder %s3795_s28, 1  ;;  %p613_p8 = scmp.lt.s32.totalorder %s3795_s28, 5 }
  0x22   : > { %4791 = sst [smem:[#allocation16_spill]] %s4790_s18  ;;  %s4838_s17 = smov (%p43_p5, %s4836_s17), 0 }
  0x23   : > { %4792 = sst [smem:[#allocation17_spill]] %s4838_s17  ;;  %p3974_p9 = por %p476_p6, %p475_p4 }
  0x24   : > { %p614_p10 = pnand %p3113_p7, %p613_p8  ;;  %s456_s20 = ssub.s32 %s3791_s27, %s4838_s17 }
  0x25   : > { %s4793_s19 = scalar_select %p3974_p9, 1, 0 }
  0x26   : > { %s459_s29 = sadd.s32 1, %s3775_s23  ;;  %p457_p11 = scmp.eq.s32.totalorder %s456_s20, 0 }
  0x27   : > { %4794 = sst [smem:[#allocation18_spill]] %s4793_s19  ;;  %617 = sbr.rel (%p614_p10) target bundleno = 4553 (0x11c9), region = 84 }
  0x28   : > { %s3982_s0 = scalar_select %p457_p11, %s3775_s23, %s459_s29  }
  0x2a   : > { %4795 = sst [smem:[#allocation19_spill]] %s3982_s0 }
  0x2e   : > { %s4761_s30 = sand.u32 1, %s3771_s22   ;;  %p729_p12 = scmp.lt.s32.totalorder %s3783_s25, 1 }
  0x2f   : > { %s3988_s26 = sshll.u32 %s4761_s30, 3  ;;  %p751_p13 = scmp.lt.s32.totalorder %s3779_s24, 1 }
  0x30   : > { %s730_s19 = scalar_select %p729_p12, %s3783_s25, 1 }
  0x31   : > { %s752_s21 = scalar_select %p751_p13, %s3779_s24, 1 }
  0x32   : > { %s3993_s17 = sshll.u32 %s730_s19, 3  ;;  %s3478_s20 = smul.u32 12, %s730_s19 }
  0x33   : > { %s4796_s0 = sld [smem:[#allocation22_spill]]  ;;  %s4797_s3 = sld [smem:[#allocation23_spill]] }
  0x34   : > { %s3479_s13 = smul.u32 24, %s730_s19  ;;  %s3227_s14 = sshll.u32 %s752_s21, 4 }
  0x35   : > { %s4798_s6 = sld [smem:[#allocation26_spill]]  ;;  %s4799_s7 = sld [smem:[#allocation27_spill]] }
  0x36   : > { %s4800_s4 = sld [smem:[#allocation24_spill]]  ;;  %s4802_s8 = sld [smem:[#allocation28_spill]] }
  0x37   : > { %s4803_s9 = sld [smem:[#allocation29_spill]]  ;;  %s4804_s10 = sld [smem:[#allocation30_spill]] }
  0x38   : > { %s4805_s28 = sld [smem:[#allocation31_spill]]  ;;  %s4807_s24 = sld [smem:[#allocation32_spill]] }
  0x39   : > { %s732_s23 = scalar_lea.vmem %s4796_s0, %s3993_s17  ;;  %s4010_s15 = scalar_lea.vmem %s4797_s3, %s3478_s20 }
  0x3a   : > { %s4808_s19 = sld [smem:[#allocation34_spill]]  ;;  %s4809_s12 = sld [smem:[#allocation33_spill]] }
  0x3b   : > { %s755_s27 = scalar_lea.vmem %s4798_s6, %s3227_s14  ;;  %s4018_s16 = scalar_lea.vmem %s4799_s7, %s3227_s14 }
  0x3c   : > { %s4023_s30 = scalar_lea.vmem %s4800_s4, %s3479_s13  ;;  %s4028_s20 = scalar_lea.vmem %s4802_s8, %s3227_s14 }
  0x3d   : > { %4801 = sst [smem:[#allocation20_spill]] %s4023_s30  ;;  %s4033_s11 = scalar_lea.vmem %s4803_s9, %s3227_s14 }
  0x3e   : > { %s4038_s0 = scalar_lea.vmem %s4804_s10, %s3227_s14  ;;  %s4043_s13 = scalar_lea.vmem %s4805_s28, %s3227_s14 }
  0x3f   : > { %4806 = sst [smem:[#allocation21_spill]] %s4043_s13  ;;  %s4048_s25 = scalar_lea.vmem %s4807_s24, %s3227_s14 }
  0x40   : > { %s3234_s6 = sshll.u32 %s752_s21, 5  ;;  %s4053_s8 = scalar_lea.vmem %s4808_s19, %s3227_s14 }
  0x41   : > { %s4058_s10 = scalar_lea.vmem %s4809_s12, %s3234_s6  ;;  %s3138_s30 = sshll.u32 %s752_s21, 1 }
  0x42   : > { %s4810_s28 = sld [smem:[#allocation35_spill]]  ;;  %s728_s4 = scalar_lea.vmem [#allocation4], %s3988_s26 }
  0x43   : > { %s4811_s22 = sld [smem:[#allocation10_spill]] }
  0x48   : > { %s4063_s13 = scalar_lea.vmem %s4810_s28, %s3138_s30 }
  0x49   : > { %p3139_p0 = scmp.ne.s32.totalorder %s4811_s22, 0 }
  0x4a   : > { %v805_v0 = vld [vmem:[%s732_s23] sm:$0xff] (!%p3139_p0)  ;;  %vm806_vm0 = vcmask (!%p3139_p0), 261120  }
  0x4b   : > { %804 = sbr.rel (%p3139_p0) target bundleno = 82 (0x52), region = 88  ;;  %807 = vst.msk [vmem:[#allocation2] sm:$0xff] (!%p3139_p0), %vm806_vm0, %v805_v0 }
  0x52 PF: > { %v3640_v1 = vld [vmem:[%s755_s27] sm:$0xff]   ;;  %v3797_v2 = vmov 0.0   ;;  %v3641_v3 = vld [vmem:[%s755_s27 + $0x8] sm:$0xff]   ;;  %vm3798_vm1 = vmmov 0   ;;  %s4812_s9 = scalar_lea.vmem %s4733_s1, %s3993_s17  ;;  %vm837_vm2 = vcmask 261120   ;;  %v820_v8 = vlaneseq  ;;  %s3799_s14 = smov 120  }
  0x53   : > { %3298 = vmatprep.subr.bf16.mxu0 %v3797_v2  ;;  %3306 = vmatprep.subr.bf16.mxu1 %v3797_v2  ;;  %v4071_v4 = vld [vmem:[#allocation2] sm:$0xff]  ;;  %s3800_s21 = smov 96   ;;  %s3801_s23 = smov 80   ;;  %v3643_v20 = vld [vmem:[%s4018_s16 + $0x8] sm:$0xff]   ;;  %vm950_vm3 = vcmask 64512   ;;  %vm1012_vm4 = vcmask 1043456  }
  0x54   : > { %3299 = vmatpush3.bf16.msra.mxu0 %v3640_v1  ;;  %3302 = vmatprep.mubr.msk.bf16.mxu0 %vm3798_vm1, %v3797_v2  ;;  %v4078_v5 = vld [vmem:[%s4812_s9] sm:$0xff]  ;;  %v4090_v9 = vshrl.u32 %v820_v8, 7  ;;  %s3802_s27 = smov 88   ;;  %s3803_s30 = smov 72   ;;  %v885_v21 = vpack.c.bf16 %v4071_v4, %v4071_v4  ;;  %vm1400_vm5 = vcmask 130048   ;;  %vm1402_vm6 = vcmask 195584  }
  0x55   : > { %3300 = vmatprep.subr.bf16.mxu0 %v3797_v2  ;;  %v813_v6 = vadd.f32 %v4078_v5, %v4071_v4  ;;  %3310 = vmatprep.mubr.msk.bf16.mxu1 %vm3798_vm1, %v3797_v2  ;;  %v812_v11 = vld [vmem:[%s4063_s13] sm:$0x3]  ;;  %s3804_s24 = smov 112   ;;  %s3805_s5 = smov 104   ;;  %vm1680_vm7 = vcmask 162944   ;;  %vm1697_vm8 = vcmask 195744  }
  0x56   : > { %v4093_v10 = vsub.s32 0, %v4090_v9  ;;  %v3642_v19 = vld [vmem:[%s4018_s16] sm:$0xff]   ;;  %s3806_s16 = smov 8   ;;  %s3807_s19 = smov 16   ;;  %vm1713_vm9 = vcmask 228544   ;;  %vm1729_vm10 = vcmask 261344  }
  0x57   : > { %v818_v7 = vpack.c.bf16 %v813_v6, %v813_v6  ;;  %3307 = vmatpush3.bf16.msra.mxu1 %v3642_v19  ;;  %v4137_v53 = vld [vmem:[%s4053_s8] sm:$0xff]  ;;  %s3808_s18 = smov 24   ;;  %s4814_s12 = sld [smem:[#allocation20_spill]]  ;;  %vm1613_vm11 = vcmask 257024   ;;  %vm1691_vm12 = vcmask 31744   ;;  %vm1763_vm13 = vcmask 97280  }
  0x58   : > { %3301 = vmatpush3.bf16.msra.mxu0 %v3641_v3  ;;  %v4097_v12 = vrot.slane %v812_v11, %v4093_v10  ;;  %3308 = vmatprep.subr.bf16.mxu1 %v3797_v2  ;;  %v889_v55 = vrot.slane %v4137_v53, %v4093_v10  ;;  %s4815_s29 = sld [smem:[#allocation25_spill]]  ;;  %s3814_s28 = smov 108  }
  0x59   : > { %3314 = vmatprep.subr.bf16.mxu0 %v3797_v2  ;;  %s3817_s22 = smov 100   ;;  %s4816_s6 = sld [smem:[#allocation21_spill]] }
  0x5a   : > { %s3828_s7 = smov 32   ;;  %s2871_s9 = sshll.u32 %s728_s4, 4  ;;  %s4675_s9 = int_to_ptr.vmem [resolvable:$true] %s2871_s9 }
  0x5b   : > { %3303 = vmatmul.mubr.msk.bf16.vlgmr.msra.gmra.mrb[0].mxu0 %vm837_vm2, %v818_v7  ;;  %3309 = vmatpush3.bf16.msra.mxu1 %v3643_v20 }
  0x5c   : > { %3316 = vmatprep.mubr.msk.bf16.mxu0 %vm3798_vm1, %v3797_v2  ;;  %3320 = vmatprep.subr.bf16.mxu1 %v3797_v2 }
  0x5e   : > { %3311 = vmatmul.mubr.msk.bf16.vlgmr.msra.gmra.mrb[0].mxu1 %vm837_vm2, %v885_v21 }
  0x5f   : > { %3322 = vmatprep.mubr.msk.bf16.mxu1 %vm3798_vm1, %v3797_v2 }
 0x12e   : > { %v875_v13 = vpop.f32.mrb[0].mxu0 }
 0x12f   : > { %v876_v14 = vadd.f32 %v875_v13, %v4097_v12  ;;  %v3304_v15 = vpop.f32.mrb[1].mxu0 }
 0x130   : > { %v878_v16 = vpop.f32.mrb[2].mxu0 }
 0x131   : > { %v945_v17 = vpack.c.bf16 %v876_v14, %v876_v14  ;;  %v3305_v18 = vpop.f32.mrb[3].mxu0  ;;  %v939_v54 = vpop.f32.mrb[0].mxu1 }
 0x132   : > { %v3312_v56 = vpop.f32.mrb[1].mxu1  ;;  %v940_v58 = vadd.f32 %v939_v54, %v889_v55 }
 0x133   : > { %1056 = vrot.lane.b32.xlu1 %v945_v17, %s3799_s14  ;;  %948 = vrot.lane.b32.xlu0 %v945_v17, %s3800_s21  ;;  %v942_v57 = vpop.f32.mrb[2].mxu1 }
 0x134   : > { %v3313_v59 = vpop.f32.mrb[3].mxu1  ;;  %v946_v60 = vpack.c.bf16 %v940_v58, %v940_v58 }
 0x136   : > { %v1014_v61 = vsel %vm1012_vm4, %v946_v60, 0 }
 0x137   : > { %1169 = vrot.lane.b32.xlu1 %v945_v17, %s3801_s23  ;;  %1058 = vrot.lane.b32.xlu0 %v945_v17, %s3802_s27  ;;  %s4820_s23 = sld [smem:[#allocation36_spill]] }
 0x138   : > { %3321 = vmatpush3.bf16.msra.mxu1 %v1014_v61  ;;  %v3645_v61 = vld [vmem:[%s4028_s20 + $0x8] sm:$0xff]  }
 0x139   : > { %3332 = vmatprep.subr.bf16.mxu1 %v3797_v2 }
 0x13b   : > { %1279 = vrot.lane.b32.xlu1 %v945_v17, %s3803_s30  ;;  %1167 = vrot.lane.b32.xlu0 %v945_v17, %s3804_s24 }
 0x13d   : > { %s4821_s30 = smov %s4820_s23 }
 0x13f   : > { %1277 = vrot.lane.b32.xlu0 %v945_v17, %s3805_s5 }
 0x1a5   : > { %v949_v22 = vpop.permute.xlu0 %948  ;;  %v1057_v25 = vpop.permute.xlu1 %1056 }
 0x1a6   : > { %v955_v23 = vsel %vm950_vm3, %v949_v22, 0 }
 0x1a7   : > { %3315 = vmatpush3.bf16.xpose.msra.mxu0 %v955_v23 }
 0x1a8   : > { %3326 = vmatprep.subr.bf16.mxu0 %v3797_v2 }
 0x1a9   : > { %v1059_v24 = vpop.permute.xlu0 %1058  ;;  %v1170_v27 = vpop.permute.xlu1 %1169 }
 0x1aa   : > { %v1064_v26 = vsel %vm950_vm3, %v1059_v24, 0  ;;  %v1175_v28 = vsel %vm950_vm3, %v1170_v27, 0 }
 0x1ad   : > { %v1280_v29 = vpop.permute.xlu1 %1279  ;;  %v1168_v30 = vpop.permute.xlu0 %1167 }
 0x1ae   : > { %3317 = vmatmul.mubr.msk.bf16.vlgmr.msra.gmra.mrb[4].mxu0 %vm950_vm3, %v945_v17  ;;  %v1285_v31 = vsel %vm950_vm3, %v1280_v29, 0 }
 0x1af   : > { %3327 = vmatpush3.bf16.xpose.msra.mxu0 %v1064_v26  ;;  %3328 = vmatprep.mubr.msk.bf16.mxu0 %vm3798_vm1, %v3797_v2 }
 0x1b0   : > { %3338 = vmatprep.subr.bf16.mxu0 %v3797_v2 }
 0x1b1   : > { %v1278_v32 = vpop.permute.xlu0 %1277 }
 0x1b6   : > { %3329 = vmatmul.mubr.msk.bf16.vlgmr.msra.gmra.mrb[8].mxu0 %vm950_vm3, %v1057_v25 }
 0x1b7   : > { %3339 = vmatpush3.bf16.xpose.msra.mxu0 %v1175_v28  ;;  %3340 = vmatprep.mubr.msk.bf16.mxu0 %vm3798_vm1, %v3797_v2 }
 0x1b8   : > { %3350 = vmatprep.subr.bf16.mxu0 %v3797_v2 }
 0x1be   : > { %3341 = vmatmul.mubr.msk.bf16.vlgmr.msra.gmra.mrb[12].mxu0 %vm950_vm3, %v1168_v30 }
 0x1bf   : > { %3351 = vmatpush3.bf16.xpose.msra.mxu0 %v1285_v31  ;;  %3352 = vmatprep.mubr.msk.bf16.mxu0 %vm3798_vm1, %v3797_v2 }
 0x1c0   : > { %3362 = vmatprep.subr.bf16.mxu0 %v3797_v2 }
 0x1c6   : > { %3353 = vmatmul.mubr.msk.bf16.vlgmr.msra.gmra.mrb[16].mxu0 %vm950_vm3, %v1278_v32 }
 0x1c7   : > { %3366 = vmatprep.mubr.msk.bf16.mxu0 %vm3798_vm1, %v3797_v2 }
 0x281   : > { %v991_v33 = vpop.f32.mrb[4].mxu0 }
 0x282   : > { %v3318_v34 = vpop.f32.mrb[5].mxu0  ;;  %v997_v35 = vsel %vm950_vm3, %v991_v33, -inf }
 0x283   : > { %998 = vmax.xlane.f32.xlu1 %v997_v35  ;;  %v994_v36 = vpop.f32.mrb[6].mxu0 }
 0x284   : > { %v3319_v37 = vpop.f32.mrb[7].mxu0 }
 0x289   : > { %v1100_v38 = vpop.f32.mrb[8].mxu0 }
 0x28a   : > { %v3330_v39 = vpop.f32.mrb[9].mxu0  ;;  %v1106_v40 = vsel %vm950_vm3, %v1100_v38, -inf }
 0x28b   : > { %1107 = vmax.xlane.f32.xlu0 %v1106_v40  ;;  %v1103_v41 = vpop.f32.mrb[10].mxu0 }
 0x28c   : > { %v3331_v42 = vpop.f32.mrb[11].mxu0 }
 0x291   : > { %v1211_v43 = vpop.f32.mrb[12].mxu0 }
 0x292   : > { %v3342_v44 = vpop.f32.mrb[13].mxu0  ;;  %v1217_v45 = vsel %vm950_vm3, %v1211_v43, -inf }
 0x293   : > { %1218 = vmax.xlane.f32.xlu0 %v1217_v45  ;;  %v1214_v46 = vpop.f32.mrb[14].mxu0 }
 0x294   : > { %v3343_v47 = vpop.f32.mrb[15].mxu0 }
 0x299   : > { %v1321_v48 = vpop.f32.mrb[16].mxu0 }
 0x29a   : > { %v3354_v49 = vpop.f32.mrb[17].mxu0  ;;  %v1327_v50 = vsel %vm950_vm3, %v1321_v48, -inf }
 0x29b   : > { %1328 = vmax.xlane.f32.xlu1 %v1327_v50  ;;  %v1324_v51 = vpop.f32.mrb[18].mxu0 }
 0x29c   : > { %v3355_v52 = vpop.f32.mrb[19].mxu0  ;;  %v3644_v51 = vld [vmem:[%s4028_s20] sm:$0xff]   ;;  %s3809_s20 = smov 64  }
 0x29d   : > { %3363 = vmatpush3.bf16.msra.mxu0 %v3644_v51 }
 0x29e   : > { %3364 = vmatprep.subr.bf16.mxu0 %v3797_v2 }
 0x2a1   : > { %3365 = vmatpush3.bf16.msra.mxu0 %v3645_v61  ;;  %v1581_v61 = vld [vmem:[%s4814_s12 + $0x10] sm:$0xff] }
 0x2a2   : > { %3378 = vmatprep.subr.bf16.mxu0 %v3797_v2 }
 0x310   : > { %v999_v62 = vpop.xlane.xlu1 %998 }
 0x311   : > { %v1000_v63 = vsub.f32 %v991_v33, %v999_v62 }
 0x313   : > { %v1001_v0 = vmul.f32 1.442695, %v1000_v63 }
 0x315   : > { %3661 = vpow2.f32 %v1001_v0 }
 0x318   : > { %v1108_v1 = vpop.xlane.xlu0 %1107 }
 0x319   : > { %v1109_v3 = vsub.f32 %v1100_v38, %v1108_v1 }
 0x31b   : > { %v1110_v6 = vmul.f32 1.442695, %v1109_v3 }
 0x31d   : > { %3663 = vpow2.f32 %v1110_v6 }
 0x31f   : > { %v3662_v7 = vpop.eup %3661 }
 0x320   : > { %v1219_v11 = vpop.xlane.xlu0 %1218  ;;  %v1003_v13 = vsel %vm950_vm3, %v3662_v7, 0.0 }
 0x321   : > { %v1220_v14 = vsub.f32 %v1211_v43, %v1219_v11  ;;  %1004 = vadd.xlane.f32.xlu0 %v1003_v13 }
 0x323   : > { %v1221_v15 = vmul.f32 1.442695, %v1220_v14 }
 0x325   : > { %3665 = vpow2.f32 %v1221_v15 }
 0x327   : > { %v3664_v16 = vpop.eup %3663 }
 0x328   : > { %v1112_v17 = vsel %vm950_vm3, %v3664_v16, 0.0  ;;  %v1329_v20 = vpop.xlane.xlu1 %1328 }
 0x329   : > { %1113 = vadd.xlane.f32.xlu1 %v1112_v17  ;;  %v1330_v21 = vsub.f32 %v1321_v48, %v1329_v20 }
 0x32b   : > { %v1331_v22 = vmul.f32 1.442695, %v1330_v21 }
 0x32d   : > { %3667 = vpow2.f32 %v1331_v22 }
 0x32f   : > { %v3666_v18 = vpop.eup %3665 }
 0x330   : > { %v1223_v19 = vsel %vm950_vm3, %v3666_v18, 0.0 }
 0x331   : > { %1224 = vadd.xlane.f32.xlu0 %v1223_v19 }
 0x337   : > { %v3668_v23 = vpop.eup %3667 }
 0x338   : > { %v1333_v24 = vsel %vm950_vm3, %v3668_v23, 0.0 }
 0x33a   : > { %1229 = vrot.lane.b32.xlu1 %v946_v60, %s3804_s24 }
 0x347   : > { %1119 = vrot.lane.b32.xlu0 %v946_v60, %s3799_s14 }
 0x35e   : > { %1334 = vadd.xlane.f32.xlu1 %v1333_v24 }
 0x36f   : > { %1339 = vrot.lane.b32.xlu1 %v946_v60, %s3805_s5 }
 0x3ae   : > { %v1005_v25 = vpop.xlane.xlu0 %1004 }
 0x3af   : > { %3669 = vrcp.f32 %v1005_v25 }
 0x3b6   : > { %v1114_v26 = vpop.xlane.xlu1 %1113 }
 0x3b7   : > { %3671 = vrcp.f32 %v1114_v26 }
 0x3b9   : > { %v3670_v27 = vpop.eup %3669 }
 0x3ba   : > { %v1007_v28 = vmul.f32 %v3670_v27, %v3662_v7  ;;  %v1230_v35 = vpop.permute.xlu1 %1229 }
 0x3bb   : > { %v1235_v37 = vsel %vm1012_vm4, %v1230_v35, 0 }
 0x3bc   : > { %v1008_v29 = vpack.c.bf16 %v1007_v28, %v1007_v28 }
 0x3be   : > { %3323 = vmatmul.mubr.msk.bf16.vlgmr.msra.gmra.mrb[4].mxu1 %vm950_vm3, %v1008_v29  ;;  %v1225_v30 = vpop.xlane.xlu0 %1224 }
 0x3bf   : > { %3673 = vrcp.f32 %v1225_v30  ;;  %3334 = vmatprep.mubr.msk.bf16.mxu1 %vm3798_vm1, %v3797_v2  ;;  %v3646_v30 = vld [vmem:[%s4038_s0] sm:$0xff]  }
 0x3c1   : > { %v3672_v31 = vpop.eup %3671 }
 0x3c2   : > { %v1120_v32 = vpop.permute.xlu0 %1119  ;;  %v1116_v33 = vmul.f32 %v3672_v31, %v3664_v16  ;;  %v4179_v16 = vsub.s32 1, %v4090_v9  ;;  %v3647_v31 = vld [vmem:[%s4038_s0 + $0x8] sm:$0xff]   ;;  %s4813_s0 = scalar_lea.vmem %s4734_s2, %s3993_s17 }
 0x3c3   : > { %v1125_v34 = vsel %vm1012_vm4, %v1120_v32, 0  ;;  %v3649_v32 = vld [vmem:[%s4033_s11 + $0x8] sm:$0xff]  }
 0x3c4   : > { %3333 = vmatpush3.bf16.msra.mxu1 %v1125_v34  ;;  %v1117_v36 = vpack.c.bf16 %v1116_v33, %v1116_v33  ;;  %v1412_v17 = vrot.slane %v4137_v53, %v4179_v16  ;;  %v3650_v33 = vld [vmem:[%s4010_s15] sm:$0xff]   ;;  %v3651_v34 = vld [vmem:[%s4010_s15 + $0x8] ss:$0 sps:$4 sm:$0xff]  }
 0x3c5   : > { %3344 = vmatprep.subr.bf16.mxu1 %v3797_v2 }
 0x3c7   : > { %3335 = vmatmul.mubr.msk.bf16.vlgmr.msra.gmra.mrb[8].mxu1 %vm950_vm3, %v1117_v36 }
 0x3c8   : > { %3345 = vmatpush3.bf16.msra.mxu1 %v1235_v37  ;;  %3346 = vmatprep.mubr.msk.bf16.mxu1 %vm3798_vm1, %v3797_v2 }
 0x3c9   : > { %v3674_v38 = vpop.eup %3673  ;;  %3356 = vmatprep.subr.bf16.mxu1 %v3797_v2 }
 0x3ca   : > { %v1227_v39 = vmul.f32 %v3674_v38, %v3666_v18  ;;  %v1485_v38 = vsub.s32 2, %v4090_v9 }
 0x3cc   : > { %v1228_v40 = vpack.c.bf16 %v1227_v39, %v1227_v39  ;;  %v1490_v39 = vsub.s32 3, %v4090_v9 }
 0x3cf   : > { %3347 = vmatmul.mubr.msk.bf16.vlgmr.msra.gmra.mrb[12].mxu1 %vm950_vm3, %v1228_v40  ;;  %v1486_v40 = vrot.slane %v4137_v53, %v1485_v38 }
 0x3d0   : > { %3358 = vmatprep.mubr.msk.bf16.mxu1 %vm3798_vm1, %v3797_v2 }
 0x3eb   : > { %v1335_v41 = vpop.xlane.xlu1 %1334 }
 0x3ec   : > { %3675 = vrcp.f32 %v1335_v41 }
 0x3ef   : > { %v1340_v42 = vpop.permute.xlu1 %1339 }
 0x3f0   : > { %v1345_v43 = vsel %vm1012_vm4, %v1340_v42, 0 }
 0x3f1   : > { %3357 = vmatpush3.bf16.msra.mxu1 %v1345_v43  ;;  %v1491_v43 = vrot.slane %v4137_v53, %v1490_v39 }
 0x3f6   : > { %v3676_v44 = vpop.eup %3675 }
 0x3f7   : > { %v1337_v45 = vmul.f32 %v3676_v44, %v3668_v23 }
 0x3f9   : > { %v1338_v46 = vpack.c.bf16 %v1337_v45, %v1337_v45 }
 0x3fb   : > { %3359 = vmatmul.mubr.msk.bf16.vlgmr.msra.gmra.mrb[16].mxu1 %vm950_vm3, %v1338_v46 }
 0x3fc   : > { %3374 = vmatprep.mubr.msk.bf16.mxu1 %vm837_vm2, %v3650_v33  ;;  %v1580_v33 = vld [vmem:[%s4814_s12 + $0x8] sm:$0xff] }
 0x491   : > { %v1050_v47 = vpop.f32.mrb[4].mxu1 }
 0x492   : > { %v3324_v48 = vpop.f32.mrb[5].mxu1 }
 0x493   : > { %v1053_v49 = vpop.f32.mrb[6].mxu1  ;;  %v1765_v48 = vld [vmem:[%s4813_s0] sm:$0xff] }
 0x494   : > { %v3325_v50 = vpop.f32.mrb[7].mxu1  ;;  %v3810_v49 = vmov 0  }
 0x495   : > { %3585 = vset.pattern.permute.xlu1 %v3810_v49  ;;  %v3811_v50 = vmov 1  }
 0x496   : > { %3586 = vset.pattern.permute.xlu0 %v3811_v50 }
 0x49a   : > { %v1161_v52 = vpop.f32.mrb[8].mxu1 }
 0x49b   : > { %1388 = vrot.lane.b32.xlu0 %v1161_v52, %s3806_s16  ;;  %v3336_v54 = vpop.f32.mrb[9].mxu1 }
 0x49c   : > { %v1164_v55 = vpop.f32.mrb[10].mxu1 }
 0x49d   : > { %v3337_v56 = vpop.f32.mrb[11].mxu1 }
 0x4a2   : > { %v1271_v57 = vpop.f32.mrb[12].mxu1 }
 0x4a3   : > { %1392 = vrot.lane.b32.xlu1 %v1271_v57, %s3807_s19  ;;  %v3348_v58 = vpop.f32.mrb[13].mxu1 }
 0x4a4   : > { %v1274_v59 = vpop.f32.mrb[14].mxu1 }
 0x4a5   : > { %v3349_v60 = vpop.f32.mrb[15].mxu1 }
 0x4ce   : > { %v1381_v62 = vpop.f32.mrb[16].mxu1 }
 0x4cf   : > { %1396 = vrot.lane.b32.xlu0 %v1381_v62, %s3808_s18  ;;  %v3360_v63 = vpop.f32.mrb[17].mxu1 }
 0x4d0   : > { %v1384_v0 = vpop.f32.mrb[18].mxu1  ;;  %v3812_v63 = vmov 3  }
 0x4d1   : > { %v3361_v1 = vpop.f32.mrb[19].mxu1 }
 0x50d   : > { %v1389_v3 = vpop.permute.xlu0 %1388 }
 0x50e   : > { %v1399_v7 = vsel %vm950_vm3, %v1050_v47, %v1389_v3 }
 0x515   : > { %v1393_v6 = vpop.permute.xlu1 %1392 }
 0x516   : > { %v1401_v11 = vsel %vm1400_vm5, %v1399_v7, %v1393_v6 }
 0x541   : > { %v1397_v13 = vpop.permute.xlu0 %1396 }
 0x542   : > { %v1403_v14 = vsel %vm1402_vm6, %v1401_v11, %v1397_v13 }
 0x543   : > { %v1408_v15 = vpack.c.bf16 %v1403_v14, %v1403_v14  ;;  %v1766_v14 = vld [vmem:[%s4815_s29] sm:$0x3] }
 0x545   : > { %3367 = vmatmul.mubr.msk.bf16.vlgmr.msra.gmra.mrb[20].mxu0 %vm837_vm2, %v1408_v15  ;;  %v1503_v15 = vsub.s32 4, %v4090_v9 }
 0x546   : > { %3382 = vmatprep.mubr.msk.bf16.mxu0 %vm3798_vm1, %v3797_v2  ;;  %3379 = vmatpush3.bf16.msra.mxu0 %v3646_v30 }
 0x547   : > { %3380 = vmatprep.subr.bf16.mxu0 %v3797_v2 }
 0x54a   : > { %3381 = vmatpush3.bf16.msra.mxu0 %v3647_v31 }
 0x54b   : > { %3398 = vmatprep.subr.bf16.mxu0 %v3797_v2 }
 0x618   : > { %v1462_v18 = vpop.f32.mrb[20].mxu0 }
 0x619   : > { %v1463_v19 = vadd.f32 %v1462_v18, %v1412_v17  ;;  %v3368_v20 = vpop.f32.mrb[21].mxu0  ;;  %v1785_v17 = vrot.slane %v1766_v14, %v4179_v16 }
 0x61a   : > { %v1465_v21 = vpop.f32.mrb[22].mxu0  ;;  %v1775_v20 = vrot.slane %v1766_v14, %v4093_v10 }
 0x61b   : > { %v3369_v22 = vpop.f32.mrb[23].mxu0  ;;  %v1468_v23 = vadd.f32 %v1463_v19, %v4071_v4  ;;  %v3648_v4 = vld [vmem:[%s4033_s11] sm:$0xff]   ;;  %v4238_v21 = vrot.slane %v4137_v53, %v1503_v15 }
 0x61c   : > { %3370 = vmatprep.subr.bf16.mxu1 %v3648_v4 }
 0x61d   : > { %v1469_v24 = vsel %vm837_vm2, %v1468_v23, 0.0  ;;  %3371 = vmatpush3.bf16.msra.mxu1 %v3648_v4 }
 0x61e   : > { %1470 = vadd.xlane.f32.xlu1 %v1469_v24  ;;  %3372 = vmatprep.subr.bf16.mxu1 %v3649_v32 }
 0x621   : > { %3373 = vmatpush3.bf16.msra.mxu1 %v3649_v32 }
 0x622   : > { %3386 = vmatprep.subr.bf16.mxu1 %v3797_v2 }
 0x624   : > { %3375 = vmatmul.mubr.msk.bf16.vlgmr.msra.gmra.mrb[20].mxu1 %vm837_vm2, %v3651_v34 }
 0x625   : > { %3388 = vmatprep.mubr.msk.bf16.mxu1 %vm3798_vm1, %v3797_v2 }
 0x6ab   : > { %v1471_v25 = vpop.xlane.xlu1 %1470 }
 0x6ac   : > { %v1473_v26 = vmul.f32 0.03125, %v1471_v25 }
 0x6ae   : > { %v1474_v27 = vsub.f32 %v1468_v23, %v1473_v26 }
 0x6b0   : > { %v1475_v28 = vmul.f32 %v1474_v27, %v1474_v27 }
 0x6b2   : > { %v1476_v29 = vsel %vm837_vm2, %v1475_v28, 0.0  ;;  %v1579_v28 = vld [vmem:[%s4814_s12] sm:$0xff] }
 0x6b3   : > { %1477 = vadd.xlane.f32.xlu0 %v1476_v29 }
 0x6c9   : > { %1634 = vrot.lane.b32.xlu0 %v4097_v12, %s3809_s20 }
 0x6cd   : > { %1779 = vperm.xlu0 %3586, %v1765_v48  }
 0x6d1   : > { %3589 = vset.pattern.permute.xlu0 %v3812_v63 }
 0x6f7   : > { %v3376_v62 = vpop.f32.mrb[20].mxu1 }
 0x6f8   : > { %v4229_v7 = vpop.f32.mrb[21].mxu1 }
 0x6f9   : > { %v3377_v11 = vpop.f32.mrb[22].mxu1 }
 0x6fa   : > { %v1568_v34 = vpop.f32.mrb[23].mxu1 }
 0x740   : > { %v1478_v35 = vpop.xlane.xlu0 %1477 }
 0x741   : > { %v1479_v36 = vmul.f32 0.03125, %v1478_v35 }
 0x743   : > { %v1480_v37 = vadd.f32 1e-05, %v1479_v36 }
 0x744   : > { %v1635_v51 = vpop.permute.xlu0 %1634 }
 0x745   : > { %3677 = vrsqrt.f32 %v1480_v37 }
 0x74c   : > { %v1780_v19 = vpop.permute.xlu0 %1779 }
 0x74d   : > { %v1786_v23 = vmul.f32 %v1785_v17, %v1780_v19 }
 0x74f   : > { %v3678_v41 = vpop.eup %3677 }
 0x750   : > { %v1482_v42 = vmul.f32 %v3678_v41, %v1474_v27  ;;  %v1574_v27 = vadd.f32 %v3376_v62, %v4238_v21 }
 0x752   : > { %v1487_v44 = vmul.f32 %v1486_v40, %v1482_v42 }
 0x754   : > { %v4206_v45 = vadd.f32 %v1491_v43, %v1487_v44  ;;  %v3813_v44 = vmov 2  }
 0x756   : > { %v1493_v46 = vadd.f32 %v4206_v45, %v4078_v5 }
 0x758   : > { %v1621_v47 = vpack.c.bf16 %v1493_v46, %v1493_v46 }
 0x75a   : > { %3383 = vmatmul.mubr.msk.bf16.vlgmr.msra.gmra.mrb[24].mxu0 %vm837_vm2, %v1621_v47 }
 0x75b   : > { %3400 = vmatprep.mubr.msk.bf16.mxu0 %vm3798_vm1, %v3797_v2 }
 0x82d   : > { %v1674_v5 = vpop.f32.mrb[24].mxu0 }
 0x82e   : > { %v4220_v52 = vadd.f32 %v1674_v5, %v1635_v51  ;;  %v3384_v54 = vpop.f32.mrb[25].mxu0  ;;  %v3815_v5 = vmov 6  }
 0x82f   : > { %v1677_v55 = vpop.f32.mrb[26].mxu0 }
 0x830   : > { %v3385_v56 = vpop.f32.mrb[27].mxu0  ;;  %v1681_v57 = vsel %vm1680_vm7, %v4220_v52, -inf  ;;  %v1698_v58 = vsel %vm1697_vm8, %v4220_v52, -inf  ;;  %v1714_v59 = vsel %vm1713_vm9, %v4220_v52, -inf  ;;  %v1730_v60 = vsel %vm1729_vm10, %v4220_v52, -inf }
 0x831   : > { %1682 = vmax.xlane.f32.xlu1 %v1681_v57  ;;  %v3818_v57 = vmov 4  }
 0x835   : > { %1699 = vmax.xlane.f32.xlu1 %v1698_v58 }
 0x839   : > { %1715 = vmax.xlane.f32.xlu1 %v1714_v59 }
 0x83d   : > { %1731 = vmax.xlane.f32.xlu1 %v1730_v60  ;;  %v1566_v60 = vadd.f32 %v4229_v7, %v4238_v21 }
 0x84e   : > { %1769 = vperm.xlu1 %3585, %v1765_v48  }
 0x852   : > { %1594 = vperm.xlu1 %3585, %v1581_v61  }
 0x8be   : > { %v1683_v0 = vpop.xlane.xlu1 %1682 }
 0x8bf   : > { %v1684_v1 = vsub.f32 %v4220_v52, %v1683_v0  ;;  %v1569_v0 = vadd.f32 %v1568_v34, %v4238_v21  ;;  %v3820_v21 = vmov 14  }
 0x8c1   : > { %v1685_v3 = vmul.f32 1.442695, %v1684_v1 }
 0x8c2   : > { %v1700_v6 = vpop.xlane.xlu1 %1699 }
 0x8c3   : > { %3679 = vpow2.f32 %v1685_v3  ;;  %v1701_v24 = vsub.f32 %v4220_v52, %v1700_v6 }
 0x8c5   : > { %v1702_v30 = vmul.f32 1.442695, %v1701_v24 }
 0x8c6   : > { %v1716_v13 = vpop.xlane.xlu1 %1715 }
 0x8c7   : > { %v1717_v31 = vsub.f32 %v4220_v52, %v1716_v13  ;;  %3681 = vpow2.f32 %v1702_v30  ;;  %v3826_v30 = vmov 9  }
 0x8c9   : > { %v1718_v37 = vmul.f32 1.442695, %v1717_v31 }
 0x8ca   : > { %v1732_v18 = vpop.xlane.xlu1 %1731 }
 0x8cb   : > { %v1733_v39 = vsub.f32 %v4220_v52, %v1732_v18  ;;  %3683 = vpow2.f32 %v1718_v37 }
 0x8cd   : > { %v4240_v22 = vpop.eup %3679  ;;  %v1734_v43 = vmul.f32 1.442695, %v1733_v39 }
 0x8ce   : > { %1688 = vrot.lane.b32.xlu1 %v4240_v22, %s3804_s24  ;;  %v1770_v25 = vpop.permute.xlu1 %1769 }
 0x8cf   : > { %v1776_v26 = vmul.f32 %v1775_v20, %v1770_v25  ;;  %3685 = vpow2.f32 %v1734_v43  ;;  %v3819_v20 = vmov 10   ;;  %v3822_v25 = vmov 11  }
 0x8d1   : > { %v1787_v29 = vadd.f32 %v1786_v23, %v1776_v26  ;;  %v4263_v51 = vpop.eup %3681  ;;  %v3821_v23 = vmov 5   ;;  %v3823_v26 = vmov 15  }
 0x8d2   : > { %1584 = vperm.xlu1 %3585, %v1579_v28   ;;  %v1595_v53 = vpop.permute.xlu1 %1594  ;;  %v3824_v28 = vmov 8  }
 0x8d3   : > { %v1788_v4 = vadd.f32 %v1787_v29, %v4220_v52  ;;  %v1599_v32 = vmul.f32 %v1595_v53, %v1574_v27  ;;  %v3816_v52 = vmov 7   ;;  %v3825_v29 = vmov 12  }
 0x8d5   : > { %v3169_v35 = vadd.f32 -0.5, %v1788_v4  ;;  %v3238_v36 = vpack.c.bf16 %v1599_v32, %v1599_v32  ;;  %v4270_v54 = vpop.eup %3683 }
 0x8d6   : > { %1589 = vperm.xlu1 %3585, %v1580_v33  }
 0x8d7   : > { %v1790_v40 = vfloor.f32 %v3169_v35  ;;  %1616 = vst.msk [vmem:[#allocation3 + $0x8] sm:$0xf] %vm1613_vm11, %v3238_v36 }
 0x8d9   : > { %v3480_v41 = vtrunc.f32 %v1790_v40  ;;  %v4252_v42 = vsub.f32 %v3169_v35, %v1790_v40  ;;  %v4278_v56 = vpop.eup %3685 }
 0x8da   : > { %3587 = vset.pattern.permute.xlu1 %v3813_v44 }
 0x8db   : > { %v4255_v46 = vcvt.f32.s32 %v3480_v41 }
 0x8dd   : > { %2024 = vperm.xlu0 %3589, %v4255_v46   ;;  %2000 = vperm.xlu1 %3587, %v4255_v46   ;;  %v4273_v55 = vadd.s32 1, %v4255_v46 }
 0x8de   : > { %v4259_v47 = vld [vmem:[#allocation3 + $0x8] sm:$0xf] }
 0x8df   : > { %v2053_v48 = vsel %vm1012_vm4, %v4259_v47, 0  ;;  %v4317_v24 = vcombine.low %v4259_v47, %v4259_v47 }
 0x8e0   : > { %3387 = vmatpush3.bf16.msra.mxu1 %v2053_v48 }
 0x8e1   : > { %1705 = vrot.lane.b32.xlu0 %v4263_v51, %s3814_s28  ;;  %3588 = vset.pattern.permute.xlu1 %v3815_v5 }
 0x8e2   : > { %2145 = vperm.xlu1 %3588, %v4255_v46   ;;  %3590 = vset.pattern.permute.xlu0 %v3816_v52 }
 0x8e3   : > { %3392 = vmatprep.subr.bf16.mxu1 %v3797_v2 }
 0x8e5   : > { %1721 = vrot.lane.b32.xlu0 %v4270_v54, %s3805_s5 }
 0x8e6   : > { %2157 = vperm.xlu1 %3588, %v4273_v55  }
 0x8e9   : > { %1737 = vrot.lane.b32.xlu0 %v4278_v56, %s3817_s22 }
 0x8ea   : > { %3591 = vset.pattern.permute.xlu1 %v3812_v63 }
 0x8eb   : > { %2036 = vperm.xlu1 %3591, %v4273_v55  }
 0x8ed   : > { %2169 = vperm.xlu0 %3590, %v4255_v46  }
 0x8ef   : > { %3592 = vset.pattern.permute.xlu1 %v3816_v52 }
 0x8f0   : > { %2181 = vperm.xlu1 %3592, %v4273_v55  }
 0x8f1   : > { %3594 = vset.pattern.permute.xlu0 %v3810_v49 }
 0x8f4   : > { %3593 = vset.pattern.permute.xlu1 %v3810_v49 }
 0x8f5   : > { %1800 = vperm.xlu1 %3593, %v4255_v46  }
 0x8f9   : > { %3595 = vset.pattern.permute.xlu1 %v3818_v57 }
 0x940   : > { %v1689_v58 = vpop.permute.xlu1 %1688 }
 0x941   : > { %v1692_v59 = vsel %vm1691_vm12, %v1689_v58, 0.0 }
 0x942   : > { %1693 = vadd.xlane.f32.xlu0 %v1692_v59 }
 0x951   : > { %v1585_v61 = vpop.permute.xlu1 %1584 }
 0x952   : > { %v1597_v62 = vmul.f32 %v1585_v61, %v1566_v60 }
 0x954   : > { %v3236_v1 = vpack.c.bf16 %v1597_v62, %v1597_v62 }
 0x955   : > { %v1590_v3 = vpop.permute.xlu1 %1589 }
 0x956   : > { %1614 = vst.msk [vmem:[#allocation3] sm:$0xf] %vm1613_vm11, %v3236_v1  ;;  %v1598_v6 = vmul.f32 %v1590_v3, %v1569_v0 }
 0x958   : > { %v3237_v11 = vpack.c.bf16 %v1598_v6, %v1598_v6 }
 0x95a   : > { %1615 = vst.msk [vmem:[#allocation3 + $0x4] sm:$0xf] %vm1613_vm11, %v3237_v11 }
 0x95c   : > { %v4296_v13 = vpop.permute.xlu0 %2024  ;;  %v4354_v53 = vpop.permute.xlu1 %2000 }
 0x960   : > { %v1706_v14 = vpop.permute.xlu0 %1705 }
 0x961   : > { %v1708_v15 = vsel %vm1691_vm12, %v1706_v14, 0.0  ;;  %v4327_v27 = vld [vmem:[#allocation3] sm:$0xff]   ;;  %v4356_v32 = vpop.permute.xlu1 %2145 }
 0x962   : > { %1709 = vadd.xlane.f32.xlu1 %v1708_v15 }
 0x964   : > { %v1722_v17 = vpop.permute.xlu0 %1721 }
 0x965   : > { %v1724_v7 = vsel %vm1691_vm12, %v1722_v17, 0.0  ;;  %v4358_v33 = vpop.permute.xlu1 %2157 }
 0x966   : > { %1725 = vadd.xlane.f32.xlu0 %v1724_v7 }
 0x968   : > { %v1738_v18 = vpop.permute.xlu0 %1737 }
 0x969   : > { %v1740_v19 = vsel %vm1691_vm12, %v1738_v18, 0.0 }
 0x96a   : > { %1741 = vadd.xlane.f32.xlu0 %v1740_v19  ;;  %v4362_v36 = vpop.permute.xlu1 %2036 }
 0x96c   : > { %v4352_v31 = vpop.permute.xlu0 %2169 }
 0x96f   : > { %v4364_v37 = vpop.permute.xlu1 %2181 }
 0x973   : > { %1853 = vperm.xlu1 %3595, %v4255_v46  }
 0x974   : > { %v4366_v39 = vpop.permute.xlu1 %1800 }
 0x977   : > { %1865 = vperm.xlu1 %3595, %v4273_v55  }
 0x97b   : > { %3598 = vset.pattern.permute.xlu1 %v3811_v50 }
 0x97c   : > { %1838 = vperm.xlu1 %3598, %v4273_v55  }
 0x980   : > { %3599 = vset.pattern.permute.xlu1 %v3819_v20  ;;  %1813 = vperm.xlu0 %3594, %v4273_v55  }
 0x981   : > { %2291 = vperm.xlu1 %3599, %v4255_v46  }
 0x984   : > { %3596 = vset.pattern.permute.xlu0 %v3811_v50 }
 0x985   : > { %3601 = vset.pattern.permute.xlu1 %v3820_v21  ;;  %1826 = vperm.xlu0 %3596, %v4255_v46  }
 0x986   : > { %2434 = vperm.xlu1 %3601, %v4255_v46  }
 0x989   : > { %3597 = vset.pattern.permute.xlu0 %v3821_v23 }
 0x98a   : > { %2446 = vperm.xlu1 %3601, %v4273_v55   ;;  %1877 = vperm.xlu0 %3597, %v4255_v46  }
 0x98e   : > { %3604 = vset.pattern.permute.xlu1 %v3822_v25  ;;  %2196 = vrot.lane.b32.xlu0 %v4317_v24, %s3799_s14 }
 0x98f   : > { %2327 = vperm.xlu1 %3604, %v4273_v55  }
 0x992   : > { %1889 = vperm.xlu0 %3597, %v4273_v55  }
 0x993   : > { %3605 = vset.pattern.permute.xlu1 %v3823_v26 }
 0x994   : > { %2470 = vperm.xlu1 %3605, %v4273_v55  }
 0x996   : > { %3600 = vset.pattern.permute.xlu0 %v3819_v20 }
 0x997   : > { %2303 = vperm.xlu0 %3600, %v4273_v55  }
 0x998   : > { %2244 = vrot.lane.b32.xlu1 %v4327_v27, %s3799_s14 }
 0x999   : > { %3607 = vset.pattern.permute.xlu1 %v3824_v28 }
 0x99b   : > { %3602 = vset.pattern.permute.xlu0 %v3822_v25 }
 0x99c   : > { %2315 = vperm.xlu0 %3602, %v4255_v46   ;;  %1914 = vperm.xlu1 %3607, %v4273_v55  }
 0x9a0   : > { %3603 = vset.pattern.permute.xlu0 %v3823_v26  ;;  %3608 = vset.pattern.permute.xlu1 %v3825_v29 }
 0x9a1   : > { %2458 = vperm.xlu0 %3603, %v4255_v46   ;;  %1951 = vperm.xlu1 %3608, %v4255_v46  }
 0x9a5   : > { %3606 = vset.pattern.permute.xlu0 %v3824_v28  ;;  %2339 = vrot.lane.b32.xlu1 %v4317_v24, %s3804_s24 }
 0x9a6   : > { %1902 = vperm.xlu0 %3606, %v4255_v46   ;;  %3612 = vset.pattern.permute.xlu1 %v3813_v44 }
 0x9aa   : > { %3609 = vset.pattern.permute.xlu0 %v3825_v29 }
 0x9ab   : > { %1963 = vperm.xlu0 %3609, %v4273_v55  }
 0x9af   : > { %3610 = vset.pattern.permute.xlu0 %v3826_v30 }
 0x9b0   : > { %1926 = vperm.xlu0 %3610, %v4255_v46  }
 0x9b4   : > { %1938 = vperm.xlu0 %3610, %v4273_v55  }
 0x9b8   : > { %3611 = vset.pattern.permute.xlu0 %v3813_v44 }
 0x9b9   : > { %2012 = vperm.xlu0 %3611, %v4273_v55  }
 0x9cf   : > { %v1694_v4 = vpop.xlane.xlu0 %1693 }
 0x9d0   : > { %3687 = vrcp.f32 %v1694_v4 }
 0x9da   : > { %v3688_v34 = vpop.eup %3687 }
 0x9db   : > { %v1696_v35 = vmul.f32 %v3688_v34, %v4240_v22 }
 0x9dd   : > { %1746 = vrot.lane.b32.xlu1 %v1696_v35, %s3804_s24 }
 0x9ef   : > { %v1710_v40 = vpop.xlane.xlu1 %1709 }
 0x9f0   : > { %3689 = vrcp.f32 %v1710_v40 }
 0x9f3   : > { %v1726_v41 = vpop.xlane.xlu0 %1725  ;;  %v4382_v1 = vpop.permute.xlu1 %1853 }
 0x9f4   : > { %3691 = vrcp.f32 %v1726_v41 }
 0x9f7   : > { %v1742_v43 = vpop.xlane.xlu0 %1741 }
 0x9f8   : > { %3693 = vrcp.f32 %v1742_v43  ;;  %v1792_v43 = vsub.f32 1.0, %v4252_v42 }
 0x9fa   : > { %v3690_v44 = vpop.eup %3689 }
 0x9fb   : > { %v1712_v47 = vmul.f32 %v3690_v44, %v4263_v51 }
 0x9fd   : > { %1750 = vrot.lane.b32.xlu1 %v1712_v47, %s3804_s24 }
 0x9fe   : > { %v3692_v22 = vpop.eup %3691 }
 0x9ff   : > { %v4370_v48 = vpop.permute.xlu0 %1813  ;;  %v1728_v58 = vmul.f32 %v3692_v22, %v4270_v54  ;;  %v4384_v54 = vpop.permute.xlu1 %1865 }
 0xa01   : > { %1754 = vrot.lane.b32.xlu1 %v1728_v58, %s3804_s24 }
 0xa02   : > { %v3694_v59 = vpop.eup %3693 }
 0xa03   : > { %v1744_v60 = vmul.f32 %v3694_v59, %v4278_v56  ;;  %v4386_v3 = vpop.permute.xlu1 %1838 }
 0xa04   : > { %v4375_v61 = vpop.permute.xlu0 %1826 }
 0xa05   : > { %1758 = vrot.lane.b32.xlu1 %v1744_v60, %s3804_s24 }
 0xa07   : > { %v4388_v6 = vpop.permute.xlu1 %2291 }
 0xa09   : > { %v4378_v62 = vpop.permute.xlu0 %1877 }
 0xa0b   : > { %v4390_v56 = vpop.permute.xlu1 %2434 }
 0xa0d   : > { %v2197_v0 = vpop.permute.xlu0 %2196 }
 0xa0e   : > { %v2202_v51 = vsel %vm1012_vm4, %v2197_v0, 0 }
 0xa0f   : > { %3399 = vmatpush3.bf16.msra.mxu0 %v2202_v51  ;;  %v4392_v11 = vpop.permute.xlu1 %2446 }
 0xa10   : > { %3404 = vmatprep.subr.bf16.mxu0 %v3797_v2 }
 0xa13   : > { %v4394_v14 = vpop.permute.xlu1 %2327 }
 0xa17   : > { %v4396_v15 = vpop.permute.xlu1 %2470 }
 0xa1b   : > { %v4398_v17 = vpop.permute.xlu1 %2244 }
 0xa1f   : > { %v4400_v7 = vpop.permute.xlu1 %1914 }
 0xa23   : > { %v4402_v18 = vpop.permute.xlu1 %1951 }
 0xa27   : > { %v4404_v19 = vpop.permute.xlu1 %2339 }
 0xa4f   : > { %v1747_v4 = vpop.permute.xlu1 %1746 }
 0xa6f   : > { %v1751_v34 = vpop.permute.xlu1 %1750 }
 0xa70   : > { %v1761_v40 = vsel %vm1691_vm12, %v1747_v4, %v1751_v34 }
 0xa73   : > { %v1755_v35 = vpop.permute.xlu1 %1754 }
 0xa74   : > { %v1762_v41 = vsel %vm950_vm3, %v1761_v40, %v1755_v35 }
 0xa77   : > { %v1759_v44 = vpop.permute.xlu1 %1758 }
 0xa78   : > { %v1764_v47 = vsel %vm1763_vm13, %v1762_v41, %v1759_v44 }
 0xa79   : > { %v4409_v22 = vmul.f32 %v1792_v43, %v1764_v47  ;;  %v4412_v58 = vmul.f32 %v4252_v42, %v1764_v47 }
 0xa7b   : > { %2018 = vperm.xlu1 %3612, %v4412_v58   ;;  %2006 = vperm.xlu0 %3611, %v4409_v22  }
 0xa7f   : > { %3613 = vset.pattern.permute.xlu1 %v3815_v5  ;;  %3615 = vset.pattern.permute.xlu0 %v3816_v52 }
 0xa80   : > { %2151 = vperm.xlu1 %3613, %v4409_v22   ;;  %2175 = vperm.xlu0 %3615, %v4409_v22  }
 0xa84   : > { %2163 = vperm.xlu1 %3613, %v4412_v58   ;;  %3616 = vset.pattern.permute.xlu0 %v3812_v63 }
 0xa85   : > { %2042 = vperm.xlu0 %3616, %v4412_v58  }
 0xa88   : > { %3614 = vset.pattern.permute.xlu1 %v3812_v63 }
 0xa89   : > { %2030 = vperm.xlu1 %3614, %v4409_v22   ;;  %3618 = vset.pattern.permute.xlu0 %v3810_v49 }
 0xa8a   : > { %1807 = vperm.xlu0 %3618, %v4409_v22  }
 0xa8d   : > { %3617 = vset.pattern.permute.xlu1 %v3816_v52 }
 0xa8e   : > { %2187 = vperm.xlu1 %3617, %v4412_v58   ;;  %3624 = vset.pattern.permute.xlu0 %v3821_v23 }
 0xa8f   : > { %1895 = vperm.xlu0 %3624, %v4412_v58  }
 0xa92   : > { %3619 = vset.pattern.permute.xlu1 %v3810_v49  ;;  %v3827_v49 = vmov 13  }
 0xa93   : > { %1820 = vperm.xlu1 %3619, %v4412_v58   ;;  %3625 = vset.pattern.permute.xlu0 %v3819_v20 }
 0xa94   : > { %2297 = vperm.xlu0 %3625, %v4409_v22  }
 0xa97   : > { %3620 = vset.pattern.permute.xlu1 %v3818_v57 }
 0xa98   : > { %1859 = vperm.xlu1 %3620, %v4409_v22   ;;  %3629 = vset.pattern.permute.xlu0 %v3823_v26 }
 0xa99   : > { %2464 = vperm.xlu0 %3629, %v4409_v22  }
 0xa9c   : > { %1871 = vperm.xlu1 %3620, %v4412_v58  }
 0xa9d   : > { %3630 = vset.pattern.permute.xlu0 %v3822_v25 }
 0xa9e   : > { %2333 = vperm.xlu0 %3630, %v4412_v58  }
 0xaa0   : > { %3621 = vset.pattern.permute.xlu1 %v3811_v50 }
 0xaa1   : > { %1832 = vperm.xlu1 %3621, %v4409_v22  }
 0xaa2   : > { %3631 = vset.pattern.permute.xlu0 %v3827_v49 }
 0xaa3   : > { %1975 = vperm.xlu0 %3631, %v4255_v46  }
 0xaa5   : > { %3622 = vset.pattern.permute.xlu1 %v3821_v23 }
 0xaa6   : > { %1883 = vperm.xlu1 %3622, %v4409_v22  }
 0xaa7   : > { %1987 = vperm.xlu0 %3631, %v4273_v55  }
 0xaaa   : > { %3623 = vset.pattern.permute.xlu1 %v3811_v50  ;;  %v4464_v50 = vpop.permute.xlu0 %1889 }
 0xaab   : > { %1844 = vperm.xlu1 %3623, %v4412_v58   ;;  %2387 = vrot.lane.b32.xlu0 %v4327_v27, %s3804_s24 }
 0xaac   : > { %3639 = vset.pattern.permute.xlu0 %v3823_v26 }
 0xaae   : > { %v4468_v63 = vpop.permute.xlu0 %2303 }
 0xaaf   : > { %3626 = vset.pattern.permute.xlu1 %v3819_v20 }
 0xab0   : > { %2309 = vperm.xlu1 %3626, %v4412_v58  }
 0xab2   : > { %v4472_v42 = vpop.permute.xlu0 %2315 }
 0xab4   : > { %3627 = vset.pattern.permute.xlu1 %v3820_v21 }
 0xab5   : > { %2440 = vperm.xlu1 %3627, %v4409_v22  }
 0xab6   : > { %v4476_v46 = vpop.permute.xlu0 %2458 }
 0xab9   : > { %2452 = vperm.xlu1 %3627, %v4412_v58  }
 0xaba   : > { %v4480_v5 = vpop.permute.xlu0 %1902 }
 0xabd   : > { %3628 = vset.pattern.permute.xlu1 %v3822_v25 }
 0xabe   : > { %2321 = vperm.xlu1 %3628, %v4409_v22   ;;  %v4483_v52 = vpop.permute.xlu0 %1963 }
 0xac2   : > { %2482 = vrot.lane.b32.xlu1 %v4317_v24, %s3805_s5  ;;  %v4487_v55 = vpop.permute.xlu0 %1926  ;;  %v4495_v24 = vand.u32 127, %v820_v8 }
 0xac3   : > { %3632 = vset.pattern.permute.xlu1 %v3823_v26 }
 0xac4   : > { %vm2002_vm14 = vcmp.eq.s32.totalorder %v4495_v24, %v4354_v53  ;;  %vm2159_vm0 = vcmp.eq.s32.totalorder %v4495_v24, %v4358_v33  ;;  %vm2147_vm7 = vcmp.eq.s32.totalorder %v4495_v24, %v4356_v32  ;;  %vm2026_vm8 = vcmp.eq.s32.totalorder %v4495_v24, %v4296_v13 }
 0xac5   : > { %v3194_v53 = vsel %vm2159_vm0, 1.0, %v3797_v2  ;;  %vm2038_vm9 = vcmp.eq.s32.totalorder %v4495_v24, %v4362_v36  ;;  %v3193_v33 = vsel %vm2147_vm7, 1.0, %v3797_v2  ;;  %vm2171_vm10 = vcmp.eq.s32.totalorder %v4495_v24, %v4352_v31 }
 0xac6   : > { %2476 = vperm.xlu1 %3632, %v4412_v58   ;;  %v4492_v57 = vpop.permute.xlu0 %1938  ;;  %v3188_v51 = vsel %vm2026_vm8, 1.0, %v3797_v2  ;;  %vm2183_vm11 = vcmp.eq.s32.totalorder %v4495_v24, %v4364_v37  ;;  %v3189_v40 = vsel %vm2038_vm9, 1.0, %v3797_v2  ;;  %v3195_v36 = vsel %vm2171_vm10, 1.0, %v3797_v2 }
 0xac7   : > { %v3196_v31 = vsel %vm2183_vm11, 1.0, %v3797_v2  ;;  %vm1855_vm12 = vcmp.eq.s32.totalorder %v4495_v24, %v4382_v1  ;;  %vm1867_vm13 = vcmp.eq.s32.totalorder %v4495_v24, %v4384_v54  ;;  %vm1828_vm0 = vcmp.eq.s32.totalorder %v4495_v24, %v4375_v61 }
 0xac8   : > { %vm1879_vm7 = vcmp.eq.s32.totalorder %v4495_v24, %v4378_v62  ;;  %vm1891_vm8 = vcmp.eq.s32.totalorder %v4495_v24, %v4464_v50  ;;  %vm1840_vm9 = vcmp.eq.s32.totalorder %v4495_v24, %v4386_v3  ;;  %vm2293_vm10 = vcmp.eq.s32.totalorder %v4495_v24, %v4388_v6 }
 0xac9   : > { %v3176_v61 = vsel %vm1879_vm7, 1.0, %v3797_v2  ;;  %v3173_v62 = vsel %vm1840_vm9, 1.0, %v3797_v2  ;;  %vm2305_vm11 = vcmp.eq.s32.totalorder %v4495_v24, %v4468_v63  ;;  %v3200_v3 = vsel %vm2293_vm10, 1.0, %v3797_v2 }
 0xaca   : > { %3633 = vset.pattern.permute.xlu1 %v3824_v28  ;;  %v2013_v20 = vpop.permute.xlu0 %2012  ;;  %v2345_v6 = vsel %vm1012_vm4, %v4404_v19, 0  ;;  %vm2472_vm7 = vcmp.eq.s32.totalorder %v4495_v24, %v4396_v15  ;;  %vm1953_vm9 = vcmp.eq.s32.totalorder %v4495_v24, %v4402_v18  ;;  %vm1965_vm10 = vcmp.eq.s32.totalorder %v4495_v24, %v4483_v52 }
 0xacb   : > { %1908 = vperm.xlu1 %3633, %v4409_v22   ;;  %vm2014_vm15 = vcmp.eq.s32.totalorder %v4495_v24, %v2013_v20 }
 0xacf   : > { %1920 = vperm.xlu1 %3633, %v4412_v58  }
 0xad3   : > { %3634 = vset.pattern.permute.xlu1 %v3825_v29  ;;  %v3187_v29 = vsel %vm2014_vm15, 1.0, %v3797_v2  ;;  %vm1802_vm15 = vcmp.eq.s32.totalorder %v4495_v24, %v4366_v39  ;;  %v3172_v39 = vsel %vm1828_vm0, 1.0, %v3797_v2  ;;  %vm2329_vm0 = vcmp.eq.s32.totalorder %v4495_v24, %v4394_v14 }
 0xad4   : > { %1957 = vperm.xlu1 %3634, %v4409_v22   ;;  %v3170_v54 = vsel %vm1802_vm15, 1.0, %v3797_v2  ;;  %vm2317_vm15 = vcmp.eq.s32.totalorder %v4495_v24, %v4472_v42  ;;  %v3209_v14 = vsel %vm2472_vm7, 1.0, %v3797_v2 }
 0xad8   : > { %1969 = vperm.xlu1 %3634, %v4412_v58  }
 0xadc   : > { %3635 = vset.pattern.permute.xlu1 %v3826_v30 }
 0xadd   : > { %1932 = vperm.xlu1 %3635, %v4409_v22  }
 0xae1   : > { %3636 = vset.pattern.permute.xlu1 %v3827_v49 }
 0xae2   : > { %1981 = vperm.xlu1 %3636, %v4409_v22  }
 0xae6   : > { %3637 = vset.pattern.permute.xlu1 %v3826_v30  ;;  %v3186_v30 = vsel %vm2002_vm14, 1.0, %v3797_v2  ;;  %vm1815_vm14 = vcmp.eq.s32.totalorder %v4495_v24, %v4370_v48 }
 0xae7   : > { %1944 = vperm.xlu1 %3637, %v4412_v58  }
 0xaeb   : > { %3638 = vset.pattern.permute.xlu1 %v3827_v49 }
 0xaec   : > { %1993 = vperm.xlu1 %3638, %v4412_v58  }
 0xaf0   : > { %2530 = vrot.lane.b32.xlu1 %v4327_v27, %s3805_s5 }
 0xafa   : > { %v2019_v21 = vpop.permute.xlu1 %2018  ;;  %v2007_v23 = vpop.permute.xlu0 %2006 }
 0xafb   : > { %v2021_v8 = vmul.f32 %v3187_v29, %v2019_v21  ;;  %v2009_v59 = vmul.f32 %v3186_v30, %v2007_v23  ;;  %v3171_v29 = vsel %vm1815_vm14, 1.0, %v3797_v2  ;;  %vm2460_vm14 = vcmp.eq.s32.totalorder %v4495_v24, %v4476_v46 }
 0xafd   : > { %v2022_v34 = vadd.f32 %v2021_v8, %v2009_v59 }
 0xaff   : > { %v2152_v25 = vpop.permute.xlu1 %2151  ;;  %v2176_v26 = vpop.permute.xlu0 %2175 }
 0xb00   : > { %v2154_v32 = vmul.f32 %v3193_v33, %v2152_v25  ;;  %v2178_v44 = vmul.f32 %v3195_v36, %v2176_v26 }
 0xb03   : > { %v2164_v28 = vpop.permute.xlu1 %2163 }
 0xb04   : > { %v2166_v60 = vmul.f32 %v3194_v53, %v2164_v28  ;;  %v2043_v0 = vpop.permute.xlu0 %2042 }
 0xb05   : > { %v2045_v41 = vmul.f32 %v3189_v40, %v2043_v0 }
 0xb06   : > { %v2167_v35 = vadd.f32 %v2166_v60, %v2154_v32 }
 0xb08   : > { %v2031_v4 = vpop.permute.xlu1 %2030  ;;  %v2179_v58 = vadd.f32 %v2178_v44, %v2167_v35 }
 0xb09   : > { %v2033_v13 = vmul.f32 %v3188_v51, %v2031_v4  ;;  %v1808_v28 = vpop.permute.xlu0 %1807 }
 0xb0a   : > { %v1810_v59 = vmul.f32 %v3170_v54, %v1808_v28 }
 0xb0b   : > { %v2034_v43 = vadd.f32 %v2033_v13, %v2022_v34  ;;  %v3177_v34 = vsel %vm1891_vm8, 1.0, %v3797_v2  ;;  %vm1904_vm8 = vcmp.eq.s32.totalorder %v4495_v24, %v4480_v5  ;;  %v3183_v5 = vsel %vm1965_vm10, 1.0, %v3797_v2 }
 0xb0d   : > { %v2046_v47 = vadd.f32 %v2045_v41, %v2034_v43  ;;  %v2188_v22 = vpop.permute.xlu1 %2187 }
 0xb0e   : > { %v2190_v49 = vmul.f32 %v3196_v31, %v2188_v22  ;;  %v1896_v32 = vpop.permute.xlu0 %1895  ;;  %v3201_v22 = vsel %vm2305_vm11, 1.0, %v3797_v2  ;;  %vm1928_vm11 = vcmp.eq.s32.totalorder %v4495_v24, %v4487_v55 }
 0xb0f   : > { %v2048_v20 = vpack.c.bf16 %v2046_v47, %v2046_v47  ;;  %v1898_v13 = vmul.f32 %v3177_v34, %v1896_v32 }
 0xb10   : > { %v2191_v21 = vadd.f32 %v2190_v49, %v2179_v58 }
 0xb11   : > { %3389 = vmatmul.mubr.msk.bf16.vlgmr.msra.gmra.mrb[24].mxu1 %vm950_vm3, %v2048_v20 }
 0xb12   : > { %v2192_v23 = vpack.c.bf16 %v2191_v21, %v2191_v21  ;;  %3393 = vmatpush3.bf16.msra.mxu1 %v4327_v27  ;;  %v1821_v37 = vpop.permute.xlu1 %1820  ;;  %3394 = vmatprep.mubr.msk.bf16.mxu1 %vm3798_vm1, %v3797_v2  ;;  %v3174_v27 = vsel %vm1855_vm12, 1.0, %v3797_v2  ;;  %vm2436_vm12 = vcmp.eq.s32.totalorder %v4495_v24, %v4390_v56 }
 0xb13   : > { %3410 = vmatprep.subr.bf16.mxu1 %v3797_v2  ;;  %v1823_v1 = vmul.f32 %v3171_v29, %v1821_v37  ;;  %v2298_v35 = vpop.permute.xlu0 %2297  ;;  %v3206_v19 = vsel %vm2436_vm12, 1.0, %v3797_v2  ;;  %vm1940_vm12 = vcmp.eq.s32.totalorder %v4495_v24, %v4492_v57 }
 0xb14   : > { %3401 = vmatmul.mubr.msk.bf16.vlgmr.msra.gmra.mrb[28].mxu0 %vm950_vm3, %v2192_v23  ;;  %v2300_v49 = vmul.f32 %v3200_v3, %v2298_v35  ;;  %v3181_v52 = vsel %vm1940_vm12, 1.0, %v3797_v2 }
 0xb15   : > { %3405 = vmatpush3.bf16.msra.mxu0 %v4398_v17  ;;  %3406 = vmatprep.mubr.msk.bf16.mxu0 %vm3798_vm1, %v3797_v2  ;;  %v3175_v17 = vsel %vm1867_vm13, 1.0, %v3797_v2  ;;  %v1824_v60 = vadd.f32 %v1823_v1, %v1810_v59  ;;  %vm2448_vm13 = vcmp.eq.s32.totalorder %v4495_v24, %v4392_v11  ;;  %v3202_v11 = vsel %vm2317_vm15, 1.0, %v3797_v2 }
 0xb16   : > { %3422 = vmatprep.subr.bf16.mxu0 %v3797_v2  ;;  %v3207_v37 = vsel %vm2448_vm13, 1.0, %v3797_v2  ;;  %v3203_v1 = vsel %vm2329_vm0, 1.0, %v3797_v2 }
 0xb17   : > { %v1860_v25 = vpop.permute.xlu1 %1859 }
 0xb18   : > { %v1862_v30 = vmul.f32 %v3174_v27, %v1860_v25  ;;  %v2465_v47 = vpop.permute.xlu0 %2464 }
 0xb1b   : > { %v1872_v26 = vpop.permute.xlu1 %1871 }
 0xb1c   : > { %v1874_v8 = vmul.f32 %v3175_v17, %v1872_v26  ;;  %v3208_v26 = vsel %vm2460_vm14, 1.0, %v3797_v2 }
 0xb1d   : > { %v2334_v21 = vpop.permute.xlu0 %2333  ;;  %v2467_v56 = vmul.f32 %v3208_v26, %v2465_v47  ;;  %v3180_v47 = vsel %vm1928_vm11, 1.0, %v3797_v2 }
 0xb1e   : > { %v1875_v48 = vadd.f32 %v1874_v8, %v1862_v30  ;;  %v2336_v54 = vmul.f32 %v3203_v1, %v2334_v21 }
 0xb20   : > { %v1833_v53 = vpop.permute.xlu1 %1832 }
 0xb21   : > { %v1835_v33 = vmul.f32 %v3172_v39, %v1833_v53 }
 0xb22   : > { %v1976_v28 = vpop.permute.xlu0 %1975 }
 0xb23   : > { %v1836_v0 = vadd.f32 %v1835_v33, %v1824_v60  ;;  %vm1977_vm13 = vcmp.eq.s32.totalorder %v4495_v24, %v1976_v28 }
 0xb25   : > { %v1884_v51 = vpop.permute.xlu1 %1883 }
 0xb26   : > { %v1886_v4 = vmul.f32 %v3176_v61, %v1884_v51 }
 0xb28   : > { %v1887_v40 = vadd.f32 %v1886_v4, %v1875_v48  ;;  %v1988_v48 = vpop.permute.xlu0 %1987  ;;  %v3178_v4 = vsel %vm1904_vm8, 1.0, %v3797_v2 }
 0xb29   : > { %vm1989_vm14 = vcmp.eq.s32.totalorder %v4495_v24, %v1988_v48 }
 0xb2a   : > { %v1899_v36 = vadd.f32 %v1898_v13, %v1887_v40  ;;  %v1845_v41 = vpop.permute.xlu1 %1844 }
 0xb2b   : > { %v1847_v43 = vmul.f32 %v3173_v62, %v1845_v41 }
 0xb2c   : > { %v1900_v50 = vpack.c.bf16 %v1899_v36, %v1899_v36  ;;  %v2388_v32 = vpop.permute.xlu0 %2387 }
 0xb2d   : > { %v1848_v44 = vadd.f32 %v1847_v43, %v1836_v0 }
 0xb2e   : > { %3407 = vmatmul.mubr.msk.bf16.vlgmr.msra.gmra.mrb[28].mxu0 %vm1400_vm5, %v1900_v50 }
 0xb2f   : > { %v1851_v31 = vpack.c.bf16 %v1848_v44, %v1848_v44  ;;  %v2310_v58 = vpop.permute.xlu1 %2309  ;;  %3424 = vmatprep.mubr.msk.bf16.mxu0 %vm3798_vm1, %v3797_v2 }
 0xb30   : > { %v2312_v20 = vmul.f32 %v3201_v22, %v2310_v58 }
 0xb31   : > { %3395 = vmatmul.mubr.msk.bf16.vlgmr.msra.gmra.mrb[24].mxu1 %vm1400_vm5, %v1851_v31 }
 0xb32   : > { %v2313_v63 = vadd.f32 %v2312_v20, %v2300_v49  ;;  %3411 = vmatpush3.bf16.msra.mxu1 %v2345_v6  ;;  %3412 = vmatprep.mubr.msk.bf16.mxu1 %vm3798_vm1, %v3797_v2  ;;  %v3184_v49 = vsel %vm1977_vm13, 1.0, %v3797_v2 }
 0xb33   : > { %3416 = vmatprep.subr.bf16.mxu1 %v3797_v2 }
 0xb34   : > { %v2441_v23 = vpop.permute.xlu1 %2440 }
 0xb35   : > { %v2443_v27 = vmul.f32 %v3206_v19, %v2441_v23  ;;  %v3185_v23 = vsel %vm1989_vm14, 1.0, %v3797_v2 }
 0xb38   : > { %v2453_v25 = vpop.permute.xlu1 %2452 }
 0xb39   : > { %v2455_v17 = vmul.f32 %v3207_v37, %v2453_v25 }
 0xb3b   : > { %v2456_v29 = vadd.f32 %v2455_v17, %v2443_v27 }
 0xb3d   : > { %v2322_v46 = vpop.permute.xlu1 %2321  ;;  %v2468_v30 = vadd.f32 %v2467_v56, %v2456_v29 }
 0xb3e   : > { %v2324_v8 = vmul.f32 %v3202_v11, %v2322_v46 }
 0xb40   : > { %v2325_v59 = vadd.f32 %v2324_v8, %v2313_v63  ;;  %v3654_v8 = vld [vmem:[%s4816_s6 + $0x8] sm:$0xff]  }
 0xb41   : > { %v2483_v39 = vpop.permute.xlu1 %2482 }
 0xb42   : > { %v2337_v42 = vadd.f32 %v2336_v54, %v2325_v59  ;;  %v2488_v53 = vsel %vm1012_vm4, %v2483_v39, 0  ;;  %vm1916_vm4 = vcmp.eq.s32.totalorder %v4495_v24, %v4400_v7  ;;  %v3182_v7 = vsel %vm1953_vm9, 1.0, %v3797_v2 }
 0xb43   : > { %3423 = vmatpush3.bf16.msra.mxu0 %v2488_v53  ;;  %v3179_v34 = vsel %vm1916_vm4, 1.0, %v3797_v2 }
 0xb44   : > { %v2338_v60 = vpack.c.bf16 %v2337_v42, %v2337_v42  ;;  %3428 = vmatprep.subr.bf16.mxu0 %v3797_v2 }
 0xb45   : > { %v2477_v33 = vpop.permute.xlu1 %2476 }
 0xb46   : > { %v2479_v0 = vmul.f32 %v3209_v14, %v2477_v33  ;;  %3413 = vmatmul.mubr.msk.bf16.vlgmr.msra.gmra.mrb[28].mxu1 %vm950_vm3, %v2338_v60 }
 0xb47   : > { %3417 = vmatpush3.bf16.msra.mxu1 %v2388_v32  ;;  %3418 = vmatprep.mubr.msk.bf16.mxu1 %vm3798_vm1, %v3797_v2 }
 0xb48   : > { %v2480_v61 = vadd.f32 %v2479_v0, %v2468_v30  ;;  %3434 = vmatprep.subr.bf16.mxu1 %v3797_v2  ;;  %v3653_v30 = vld [vmem:[%s4816_s6] sm:$0xff]  }
 0xb4a   : > { %v2481_v15 = vpack.c.bf16 %v2480_v61, %v2480_v61  ;;  %v1909_v51 = vpop.permute.xlu1 %1908 }
 0xb4b   : > { %v1911_v35 = vmul.f32 %v3178_v4, %v1909_v51  ;;  %v2598_v4 = vsub.s32 5, %v4090_v9 }
 0xb4c   : > { %3425 = vmatmul.mubr.msk.bf16.vlgmr.msra.gmra.mrb[32].mxu0 %vm950_vm3, %v2481_v15 }
 0xb4d   : > { %3430 = vmatprep.mubr.msk.bf16.mxu0 %vm3798_vm1, %v3797_v2 }
 0xb4e   : > { %v1921_v13 = vpop.permute.xlu1 %1920 }
 0xb4f   : > { %v1923_v40 = vmul.f32 %v3179_v34, %v1921_v13  ;;  %v3699_v34 = vld [vmem:[%s4053_s8] sm:$0xff] }
 0xb50   : > { %v2599_v13 = vrot.slane %v3699_v34, %v2598_v4 }
 0xb51   : > { %v1924_v36 = vadd.f32 %v1923_v40, %v1911_v35 }
 0xb53   : > { %v1958_v62 = vpop.permute.xlu1 %1957 }
 0xb54   : > { %v1960_v43 = vmul.f32 %v3182_v7, %v1958_v62 }
 0xb57   : > { %v1970_v41 = vpop.permute.xlu1 %1969 }
 0xb58   : > { %v1972_v50 = vmul.f32 %v3183_v5, %v1970_v41 }
 0xb5a   : > { %v1973_v44 = vadd.f32 %v1972_v50, %v1960_v43 }
 0xb5c   : > { %v1933_v3 = vpop.permute.xlu1 %1932 }
 0xb5d   : > { %v1935_v31 = vmul.f32 %v3180_v47, %v1933_v3 }
 0xb5f   : > { %v1936_v22 = vadd.f32 %v1935_v31, %v1924_v36  ;;  %v3655_v31 = vld [vmem:[%s4048_s25] sm:$0xff]  }
 0xb61   : > { %v1982_v18 = vpop.permute.xlu1 %1981 }
 0xb62   : > { %v1984_v55 = vmul.f32 %v3184_v49, %v1982_v18  ;;  %v3700_v18 = vld [vmem:[%s4063_s13] sm:$0x3] }
 0xb64   : > { %v1985_v19 = vadd.f32 %v1984_v55, %v1973_v44 }
 0xb66   : > { %v1945_v58 = vpop.permute.xlu1 %1944 }
 0xb67   : > { %v1947_v20 = vmul.f32 %v3181_v52, %v1945_v58  ;;  %v3657_v52 = vld [vmem:[%s4058_s10] sm:$0xff]   ;;  %v3658_v58 = vld [vmem:[%s4058_s10 + $0x8] sm:$0xff]  }
 0xb69   : > { %v1948_v6 = vadd.f32 %v1947_v20, %v1936_v22  ;;  %v3656_v22 = vld [vmem:[%s4048_s25 + $0x8] sm:$0xff]  }
 0xb6b   : > { %v1949_v63 = vpack.c.bf16 %v1948_v6, %v1948_v6  ;;  %v1994_v21 = vpop.permute.xlu1 %1993  ;;  %v2671_v6 = vsub.s32 6, %v4090_v9 }
 0xb6c   : > { %v1996_v37 = vmul.f32 %v3185_v23, %v1994_v21 }
 0xb6d   : > { %3419 = vmatmul.mubr.msk.bf16.vlgmr.msra.gmra.mrb[28].mxu1 %vm1400_vm5, %v1949_v63  ;;  %v2676_v63 = vsub.s32 7, %v4090_v9  ;;  %v2672_v21 = vrot.slane %v3699_v34, %v2671_v6 }
 0xb6e   : > { %v1997_v57 = vadd.f32 %v1996_v37, %v1985_v19  ;;  %3438 = vmatprep.mubr.msk.bf16.mxu1 %vm3798_vm1, %v3797_v2  ;;  %3435 = vmatpush3.bf16.msra.mxu1 %v3653_v30 }
 0xb6f   : > { %v2531_v25 = vpop.permute.xlu1 %2530  ;;  %3436 = vmatprep.subr.bf16.mxu1 %v3797_v2  ;;  %v2677_v19 = vrot.slane %v3699_v34, %v2676_v63 }
 0xb70   : > { %v1998_v27 = vpack.c.bf16 %v1997_v57, %v1997_v57  ;;  %3429 = vmatpush3.bf16.msra.mxu0 %v2531_v25 }
 0xb71   : > { %3442 = vmatprep.subr.bf16.mxu0 %v3797_v2 }
 0xb72   : > { %3437 = vmatpush3.bf16.msra.mxu1 %v3654_v8 }
 0xb73   : > { %3431 = vmatmul.mubr.msk.bf16.vlgmr.msra.gmra.mrb[32].mxu0 %vm1400_vm5, %v1998_v27  ;;  %3450 = vmatprep.subr.bf16.mxu1 %v3797_v2  ;;  %v3659_v27 = vld [vmem:[%s4058_s10 + $0x10] sm:$0xff]  }
 0xb74   : > { %3446 = vmatprep.mubr.msk.bf16.mxu0 %vm3798_vm1, %v3797_v2  ;;  %3443 = vmatpush3.bf16.msra.mxu0 %v3655_v31 }
 0xb75   : > { %3444 = vmatprep.subr.bf16.mxu0 %v3797_v2 }
 0xb78   : > { %3445 = vmatpush3.bf16.msra.mxu0 %v3656_v22 }
 0xc01   : > { %v2284_v24 = vpop.f32.mrb[28].mxu0 }
 0xc02   : > { %2577 = vrot.lane.b32.xlu0 %v2284_v24, %s3806_s16  ;;  %v3408_v17 = vpop.f32.mrb[29].mxu0  ;;  %v3660_v24 = vld [vmem:[%s4058_s10 + $0x18] sm:$0xff]   ;;  %s4817_s10 = sld [smem:[#allocation11_spill]]  ;;  %s3701_s16 = scalar_lea.vmem %s4675_s9, 128 }
 0xc03   : > { %v2287_v26 = vpop.f32.mrb[30].mxu0  ;;  %p3702_p1 = scmp.ne.s32.totalorder %s4675_s9, %s3701_s16 }
 0xc04   : > { %v2138_v28 = vpop.f32.mrb[24].mxu1  ;;  %v3409_v56 = vpop.f32.mrb[31].mxu0 }
 0xc05   : > { %v3396_v29 = vpop.f32.mrb[25].mxu1  ;;  %p3703_p2 = pnand %p3702_p1, %p3964_p3 }
 0xc06   : > { %v2141_v11 = vpop.f32.mrb[26].mxu1 }
 0xc07   : > { %v3397_v46 = vpop.f32.mrb[27].mxu1  ;;  %p3704_p4 = pneg %p3703_p2 }
 0xc08   : > { %s3224_s25 = sshll.u32 %s4817_s10, 7 }
 0xc09   : > { %s4673_s27 = scalar_lea.hbm %s4820_s23, %s3224_s25 }
 0xc40   : > { %v2427_v1 = vpop.f32.mrb[28].mxu1 }
 0xc41   : > { %2581 = vrot.lane.b32.xlu1 %v2427_v1, %s3807_s19  ;;  %v3420_v54 = vpop.f32.mrb[29].mxu1  ;;  %s3829_s19 = smov [#allocation4]  }
 0xc42   : > { %v2430_v48 = vpop.f32.mrb[30].mxu1  ;;  %v811_v54 = vld [vmem:[%s4053_s8 + $0x8] sm:$0x7]  ;;  %s4818_s8 = sld [smem:[#allocation8_spill]] }
 0xc43   : > { %v3421_v59 = vpop.f32.mrb[31].mxu1  ;;  %v2762_v48 = vrot.slane %v811_v54, %v4093_v10  ;;  %v2848_v34 = vrot.slane %v811_v54, %v4179_v16 }
 0xc46   : > { %v2570_v39 = vpop.f32.mrb[32].mxu0 }
 0xc47   : > { %2585 = vrot.lane.b32.xlu0 %v2570_v39, %s3808_s18  ;;  %v3432_v42 = vpop.f32.mrb[33].mxu0  ;;  %s3705_s18 = sshll.u32 %s3829_s19, 4  ;;  %s3706_s18 = int_to_ptr.vmem [resolvable:$false] %s3705_s18 }
 0xc48   : > { %v2573_v53 = vpop.f32.mrb[34].mxu0  ;;  %s4822_s24 = sand.u32 1, %s4818_s8   ;;  %s3707_s20 = scalar_lea.vmem %s3706_s18, 256 }
 0xc49   : > { %v3433_v60 = vpop.f32.mrb[35].mxu0  ;;  %s2858_s5 = scalar_lea.sflag [#allocation5], %s4822_s24  ;;  %p3708_p5 = scmp.lt.s32.totalorder %s4675_s9, %s3706_s18 }
 0xc4a   : > { %p3709_p6 = scmp.lt.s32.totalorder %s3707_s20, %s3701_s16 }
 0xc4c   : > { %p3710_p7 = por %p3709_p6, %p3708_p5 }
 0xc4e   : > { %p3711_p8 = pnand %p3710_p7, %p3704_p4 }
 0xc74   : > { %v2578_v14 = vpop.permute.xlu0 %2577 }
 0xc75   : > { %v2588_v32 = vsel %vm950_vm3, %v2138_v28, %v2578_v14 }
 0xcb3   : > { %v2582_v33 = vpop.permute.xlu1 %2581 }
 0xcb4   : > { %v2589_v0 = vsel %vm1400_vm5, %v2588_v32, %v2582_v33 }
 0xcb9   : > { %v2586_v61 = vpop.permute.xlu0 %2585 }
 0xcba   : > { %v2590_v15 = vsel %vm1402_vm6, %v2589_v0, %v2586_v61 }
 0xcbb   : > { %v2595_v51 = vpack.c.bf16 %v2590_v15, %v2590_v15 }
 0xcbd   : > { %3439 = vmatmul.mubr.msk.bf16.vlgmr.msra.gmra.mrb[32].mxu1 %vm837_vm2, %v2595_v51 }
 0xcbe   : > { %3458 = vmatprep.mubr.msk.bf16.mxu1 %vm3798_vm1, %v3797_v2  ;;  %3451 = vmatpush3.bf16.msra.mxu1 %v3657_v52  ;;  %vm2787_vm1 = vcmask 523264  }
 0xcbf   : > { %3452 = vmatprep.subr.bf16.mxu1 %v3797_v2 }
 0xcc2   : > { %3453 = vmatpush3.bf16.msra.mxu1 %v3658_v58 }
 0xcc3   : > { %3454 = vmatprep.subr.bf16.mxu1 %v3797_v2 }
 0xcc6   : > { %3455 = vmatpush3.bf16.msra.mxu1 %v3659_v27 }
 0xcc7   : > { %3456 = vmatprep.subr.bf16.mxu1 %v3797_v2 }
 0xcca   : > { %3457 = vmatpush3.bf16.msra.mxu1 %v3660_v24 }
 0xd90   : > { %v2649_v35 = vpop.f32.mrb[32].mxu1 }
 0xd91   : > { %v2650_v40 = vadd.f32 %v2649_v35, %v2599_v13  ;;  %v3440_v36 = vpop.f32.mrb[33].mxu1  ;;  %v2853_v35 = vrot.slane %v811_v54, %v1485_v38 }
 0xd92   : > { %v2652_v62 = vpop.f32.mrb[34].mxu1 }
 0xd93   : > { %v2655_v7 = vadd.f32 %v2650_v40, %v4206_v45  ;;  %v3441_v5 = vpop.f32.mrb[35].mxu1  ;;  %v2687_v45 = vrot.slane %v3700_v18, %v4179_v16 }
 0xd95   : > { %v2656_v41 = vsel %vm837_vm2, %v2655_v7, 0.0 }
 0xd96   : > { %2657 = vadd.xlane.f32.xlu1 %v2656_v41 }
 0xda7   : > { %2702 = vrot.lane.b32.xlu1 %v2687_v45, %s3828_s7 }
 0xe23   : > { %v2658_v43 = vpop.xlane.xlu1 %2657 }
 0xe24   : > { %v2659_v50 = vmul.f32 0.03125, %v2658_v43 }
 0xe26   : > { %v2660_v44 = vsub.f32 %v2655_v7, %v2659_v50 }
 0xe27   : > { %v2703_v26 = vpop.permute.xlu1 %2702 }
 0xe28   : > { %v2661_v47 = vmul.f32 %v2660_v44, %v2660_v44 }
 0xe2a   : > { %v2662_v3 = vsel %vm837_vm2, %v2661_v47, 0.0 }
 0xe2b   : > { %2663 = vadd.xlane.f32.xlu0 %v2662_v3 }
 0xe41   : > { %2700 = vrot.lane.b32.xlu0 %v4097_v12, %s3828_s7 }
 0xeb8   : > { %v2664_v49 = vpop.xlane.xlu0 %2663 }
 0xeb9   : > { %v2665_v20 = vmul.f32 0.03125, %v2664_v49 }
 0xebb   : > { %v2666_v55 = vadd.f32 1e-05, %v2665_v20 }
 0xebc   : > { %v2701_v17 = vpop.permute.xlu0 %2700 }
 0xebd   : > { %3695 = vrsqrt.f32 %v2666_v55  ;;  %v2704_v28 = vsel %vm837_vm2, %v2701_v17, %v2703_v26 }
 0xec7   : > { %v3696_v23 = vpop.eup %3695 }
 0xec8   : > { %v2668_v12 = vmul.f32 %v3696_v23, %v2660_v44 }
 0xeca   : > { %v2673_v37 = vmul.f32 %v2672_v21, %v2668_v12 }
 0xecc   : > { %v2678_v57 = vadd.f32 %v2677_v19, %v2673_v37 }
 0xece   : > { %v2683_v25 = vpack.c.bf16 %v2678_v57, %v2678_v57 }
 0xed0   : > { %3447 = vmatmul.mubr.msk.bf16.vlgmr.msra.gmra.mrb[36].mxu0 %vm837_vm2, %v2683_v25 }
 0xfa3   : > { %v2743_v56 = vpop.f32.mrb[36].mxu0 }
 0xfa4   : > { %v2744_v29 = vadd.f32 %v2743_v56, %v2704_v28  ;;  %v3448_v11 = vpop.f32.mrb[37].mxu0 }
 0xfa5   : > { %v2746_v46 = vpop.f32.mrb[38].mxu0 }
 0xfa6   : > { %v2749_v30 = vmax.f32 %v2744_v29, 0.0  ;;  %v3449_v8 = vpop.f32.mrb[39].mxu0 }
 0xfa8   : > { %v2758_v1 = vpack.c.bf16 %v2749_v30, %v2749_v30 }
 0xfaa   : > { %3459 = vmatmul.mubr.msk.bf16.vlgmr.msra.gmra.mrb[36].mxu1 %vm2787_vm1, %v2758_v1 }
0x107d   : > { %v2825_v59 = vpop.f32.mrb[36].mxu1 }
0x107e   : > { %v2826_v2 = vadd.f32 %v2825_v59, %v2762_v48  ;;  %v3460_v39 = vpop.f32.mrb[37].mxu1 }
0x107f   : > { %v2828_v42 = vpop.f32.mrb[38].mxu1 }
0x1080   : > { %v2831_v53 = vadd.f32 %v2826_v2, %v2678_v57  ;;  %v3461_v60 = vpop.f32.mrb[39].mxu1 }
0x1082   : > { %v2832_v14 = vsel %vm837_vm2, %v2831_v53, 0.0 }
0x1083   : > { %2833 = vadd.xlane.f32.xlu1 %v2832_v14 }
0x1110   : > { %v2834_v33 = vpop.xlane.xlu1 %2833 }
0x1111   : > { %v2835_v32 = vmul.f32 0.03125, %v2834_v33 }
0x1113   : > { %v2836_v0 = vsub.f32 %v2831_v53, %v2835_v32 }
0x1115   : > { %v2837_v61 = vmul.f32 %v2836_v0, %v2836_v0 }
0x1117   : > { %v2838_v15 = vsel %vm837_vm2, %v2837_v61, 0.0 }
0x1118   : > { %2839 = vadd.xlane.f32.xlu0 %v2838_v15 }
0x11a5   : > { %v2840_v10 = vpop.xlane.xlu0 %2839 }
0x11a6   : > { %v2841_v51 = vmul.f32 0.03125, %v2840_v10 }
0x11a8   : > { %v2842_v4 = vadd.f32 1e-05, %v2841_v51 }
0x11aa   : > { %3697 = vrsqrt.f32 %v2842_v4 }
0x11b4   : > { %v3698_v13 = vpop.eup %3697 }
0x11b5   : > { %v2844_v40 = vmul.f32 %v3698_v13, %v2836_v0 }
0x11b7   : > { %v2849_v36 = vmul.f32 %v2848_v34, %v2844_v40 }
0x11b9   : > { %v2854_v62 = vadd.f32 %v2853_v35, %v2849_v36 }
0x11bb   : > { %2855 = vst.msk [vmem:[#allocation2] sm:$0xff] %vm837_vm2, %v2854_v62  ;;  %2856 = vst.msk [vmem:[%s728_s4] sm:$0xff] %vm837_vm2, %v2854_v62 }
0x11bc   : > { %3714 = shalt.err (!%p3711_p8)
}
0x11bd   : > { %s3715_s26 = scalar_lea.hbm %s4673_s27, 128  ;;  %s3719_s11 = scalar_lea.hbm %s4821_s30, 256 }
0x11be   : > { %p3716_p10 = scmp.ne.s32.totalorder %s4673_s27, %s3715_s26  ;;  %p3720_p13 = scmp.lt.u32.totalorder %s4673_s27, %s4821_s30 }
0x11bf   : > { %p3721_p0 = scmp.lt.u32.totalorder %s3719_s11, %s3715_s26  ;;  %p3723_p2 = scmp.lt.u32.totalorder %s3715_s26, %s4673_s27 }
0x11c0   : > { %p3717_p11 = pnand %p3716_p10, %p3964_p3 }
0x11c1   : > { %p3722_p1 = por %p3721_p0, %p3720_p13 }
0x11c2   : > { %p3718_p12 = pneg %p3717_p11 }
0x11c3   : > { %p3724_p4 = por %p3723_p2, %p3722_p1 }
0x11c5   : > { %p3725_p5 = pnand %p3724_p4, %p3718_p12 }
0x11c7   : > { %3728 = shalt.err (!%p3725_p5)
}
0x11c8   : > { %3482 = dma.vmem_to_hbm [thread:$0]  (%p3964_p3), %s4675_s9, 128, %s4673_s27, %s2858_s5  }
0x11c9 PF: > { %s4823_s17 = sld [smem:[#allocation14_spill]]  ;;  %s4824_s3 = sld [smem:[#allocation7_spill]] }
0x11cf   : > { %p3488_p6 = scmp.ge.s32.totalorder %s4823_s17, 2  ;;  %s2883_s28 = sand.u32 1, %s4824_s3  }
0x11d0   : > { %s2884_s22 = scalar_lea.sflag [#allocation5], %s2883_s28 }
0x11d1   : > { %p3485_p7 = pnand %p3488_p6, %p3974_p9 }
0x11d3   : > { %3762 = dma.done.wait (!%p3485_p7), %s2884_s22, 128  }
0x11d4   : > { %3764 = vsyncadd (!%p3485_p7), %s2884_s22, 4294967168  ;;  %s29_s28 = sadd.s32 1, %s4823_s17   ;;  %s4826_s21 = sld [smem:[#allocation8_spill]] }
0x11d5   : > { %p26_p8 = scmp.ge.s32.totalorder %s29_s28, 6   ;;  %s4827_s22 = sld [smem:[#allocation9_spill]] }
0x11d6   : > { %s4828_s23 = sld [smem:[#allocation19_spill]]  ;;  %s4829_s24 = sld [smem:[#allocation12_spill]] }
0x11d7   : > { %s4830_s25 = sld [smem:[#allocation13_spill]]  ;;  %s4831_s26 = sld [smem:[#allocation15_spill]] }
0x11d8   : > { %s4832_s27 = sld [smem:[#allocation17_spill]]  ;;  %28 = sbr.rel (!%p26_p8) target bundleno = 21 (0x15), region = 165 }
0x11df   :  { %2889 = vsyncpa [#allocation5], 1 }
0x11e0   :  { %2891 = vsyncpa [#allocation5 + $0x1], 1 }

</bundles_post_ra>
